<compile_context>
chip_gen: v7x
topology: tpu7x:2x2x1
jax: 0.10.0
libtpu: 0.0.40
codegen_flags: <defaults>
</compile_context>

<pallas_src>
import jax
import jax.numpy as jnp
from jax.experimental import pallas as pl
from jax.experimental.pallas import tpu as pltpu


def _make_aspp_kernel(H, W, HW, Cout, rates, n_cin_tiles):
    """Build the fused ASPP kernel body (all shapes / rates are Python constants)."""

    def kernel(coords_ref, x_ref, w0_ref, wd1_ref, wd2_ref, wd3_ref, w4_ref,
               scale_ref, shift_ref, out_ref, acc_main, acc_pool):
        k = pl.program_id(1)

        @pl.when(k == 0)
        def _init():
            acc_main[...] = jnp.zeros_like(acc_main)
            acc_pool[...] = jnp.zeros_like(acc_pool)

        x = x_ref[0]                      # (tCin, HW): lanes = flattened H*W
        h_pos = coords_ref[0:1, :]        # (1, HW) int32 row index of each lane
        w_pos = coords_ref[1:2, :]        # (1, HW) int32 col index of each lane

        # ---- b0: 1x1 conv ----------------------------------------------------
        acc_main[0:Cout, :] += jnp.dot(w0_ref[...], x,
                                       preferred_element_type=jnp.float32)

        # ---- b1..b3: dilated 3x3 convs as 9 shifted matmuls per branch -------
        for bi, (wd_ref, r) in enumerate(zip((wd1_ref, wd2_ref, wd3_ref), rates)):
            acc_b = jnp.zeros((Cout, HW), jnp.float32)
            for t in range(9):
                ky, kx = divmod(t, 3)
                oy, ox = (ky - 1) * r, (kx - 1) * r
                if oy == 0 and ox == 0:
                    s = x
                else:
                    # s[:, h*W + w] = x[:, (h+oy)*W + (w+ox)], zero outside the map.
                    valid = ((h_pos + oy >= 0) & (h_pos + oy < H) &
                             (w_pos + ox >= 0) & (w_pos + ox < W))
                    rolled = jnp.roll(x, -(oy * W + ox), axis=1)
                    s = jnp.where(valid, rolled, jnp.zeros_like(rolled))
                acc_b = acc_b + jnp.dot(wd_ref[t], s,
                                        preferred_element_type=jnp.float32)
            lo = (bi + 1) * Cout
            acc_main[lo:lo + Cout, :] += acc_b

        # ---- b4: global-average-pool branch (1x1 conv, spatial mean deferred) -
        yp = jnp.dot(w4_ref[...], x, preferred_element_type=jnp.float32)  # (Cout, HW)
        acc_pool[...] += jnp.sum(yp, axis=-1, keepdims=True)

        # ---- finalize: folded BN + ReLU, write the concatenated channels ------
        @pl.when(k == n_cin_tiles - 1)
        def _finalize():
            scale = scale_ref[...]        # (5*Cout, 1) f32
            shift = shift_ref[...]
            main = acc_main[...] * scale[0:4 * Cout] + shift[0:4 * Cout]
            out_ref[0, 0:4 * Cout, :] = jnp.maximum(main, 0.0).astype(out_ref.dtype)
            pool = acc_pool[...] * (1.0 / float(HW))                      # (Cout, 1)
            pool = jnp.maximum(pool * scale[4 * Cout:] + shift[4 * Cout:], 0.0)
            out_ref[0, 4 * Cout:, :] = jnp.broadcast_to(
                pool, (Cout, HW)).astype(out_ref.dtype)

    return kernel


def aspp_module_forward(x, w0, w1, w2, w3, w4, bn_params, rates,
                        eps=1e-5, cin_tile=None):
    """Fused ASPP_Module forward.

    x         : (N, Cin, H, W)
    w0, w4    : (Cout, Cin, 1, 1)   1x1 conv weights (b0 / pooling branch)
    w1..w3    : (Cout, Cin, 3, 3)   dilated 3x3 conv weights
    bn_params : 5 tuples (gamma, beta, running_mean, running_var) for b0..b4
    rates     : the 3 atrous rates for b1..b3
    returns   : (N, 5*Cout, H, W)  channel concat of the five branches
    """
    N, Cin, H, W = x.shape
    Cout = w0.shape[0]
    HW = H * W
    dt = x.dtype

    # Cin (contraction) tile: lane-aligned multiple of 128 when tiling, else full Cin.
    if cin_tile is None:
        t_cin = Cin
        for cand in (512, 256, 128):
            if Cin > cand and Cin % cand == 0:
                t_cin = cand
                break
    else:
        t_cin = cin_tile
    assert Cin % t_cin == 0, (Cin, t_cin)
    assert t_cin == Cin or t_cin % 128 == 0, t_cin
    n_k = Cin // t_cin

    # Pure reshapes (no transposes): HW is the lane axis end to end.
    x_flat = x.reshape(N, Cin, HW)
    w0m = w0.reshape(Cout, Cin).astype(dt)
    w4m = w4.reshape(Cout, Cin).astype(dt)

    def _taps(w):   # (Cout, Cin, 3, 3) -> (9, Cout, Cin); tap index = ky*3 + kx
        return jnp.transpose(w, (2, 3, 0, 1)).reshape(9, Cout, Cin).astype(dt)
    wd1, wd2, wd3 = _taps(w1), _taps(w2), _taps(w3)

    # Fold eval-mode BatchNorm into per-channel scale / shift (concatenated order).
    scales, shifts = [], []
    for g, b, m, v in bn_params:
        s = g.astype(jnp.float32) * jax.lax.rsqrt(v.astype(jnp.float32) + eps)
        scales.append(s)
        shifts.append(b.astype(jnp.float32) - m.astype(jnp.float32) * s)
    scale = jnp.concatenate(scales).reshape(5 * Cout, 1)
    shift = jnp.concatenate(shifts).reshape(5 * Cout, 1)

    # (h, w) index of each flattened lane (keeps integer div/mod out of the kernel).
    p = jnp.arange(HW, dtype=jnp.int32)
    coords = jnp.stack([p // W, p % W], axis=0)            # (2, HW) int32

    kernel = _make_aspp_kernel(H, W, HW, Cout, tuple(rates), n_k)

    out_flat = pl.pallas_call(
        kernel,
        out_shape=jax.ShapeDtypeStruct((N, 5 * Cout, HW), dt),
        grid_spec=pltpu.PrefetchScalarGridSpec(
            num_scalar_prefetch=0,
            grid=(N, n_k),
            in_specs=[
                pl.BlockSpec((2, HW), lambda n, k: (0, 0)),              # coords
                pl.BlockSpec((1, t_cin, HW), lambda n, k: (n, k, 0)),    # x
                pl.BlockSpec((Cout, t_cin), lambda n, k: (0, k)),        # w0
                pl.BlockSpec((9, Cout, t_cin), lambda n, k: (0, 0, k)),  # w1 taps
                pl.BlockSpec((9, Cout, t_cin), lambda n, k: (0, 0, k)),  # w2 taps
                pl.BlockSpec((9, Cout, t_cin), lambda n, k: (0, 0, k)),  # w3 taps
                pl.BlockSpec((Cout, t_cin), lambda n, k: (0, k)),        # w4
                pl.BlockSpec((5 * Cout, 1), lambda n, k: (0, 0)),        # BN scale
                pl.BlockSpec((5 * Cout, 1), lambda n, k: (0, 0)),        # BN shift
            ],
            out_specs=pl.BlockSpec((1, 5 * Cout, HW), lambda n, k: (n, 0, 0)),
            scratch_shapes=[pltpu.VMEM((4 * Cout, HW), jnp.float32),
                            pltpu.VMEM((Cout, 1), jnp.float32)],
        ),
        compiler_params=pltpu.CompilerParams(
            dimension_semantics=("parallel", "arbitrary"),
            vmem_limit_bytes=32 * 1024 * 1024),
    )(coords, x_flat, w0m, wd1, wd2, wd3, w4m, scale, shift)

    return out_flat.reshape(N, 5 * Cout, H, W)


# ----------------------------- pure-JAX reference ------------------------------
def _reference(x, w0, w1, w2, w3, w4, bn_params, rates, eps=1e-5):
    xf = x.astype(jnp.float32)

    def conv(inp, w, rate):
        pad = rate if w.shape[-1] == 3 else 0
        return jax.lax.conv_general_dilated(
            inp, w.astype(jnp.float32), window_strides=(1, 1),
            padding=((pad, pad), (pad, pad)), rhs_dilation=(rate, rate),
            dimension_numbers=('NCHW', 'OIHW', 'NCHW'))

    def bn_relu(y, prm):
        g, b, m, v = [t.astype(jnp.float32) for t in prm]
        y = (y - m[None, :, None, None]) * (
            g[None, :, None, None] / jnp.sqrt(v[None, :, None, None] + eps))
        return jnp.maximum(y + b[None, :, None, None], 0.0)

    f0 = bn_relu(conv(xf, w0, 1), bn_params[0])
    f1 = bn_relu(conv(xf, w1, rates[0]), bn_params[1])
    f2 = bn_relu(conv(xf, w2, rates[1]), bn_params[2])
    f3 = bn_relu(conv(xf, w3, rates[2]), bn_params[3])
    # Pooling branch: mean(x) -> 1x1 conv -> BN -> ReLU -> align_corners bilinear
    # upsample of a 1x1 map == broadcast.  1x1 conv and the spatial mean commute
    # (both linear), written conv-then-mean here.
    f4 = bn_relu(jnp.mean(conv(xf, w4, 1), axis=(2, 3), keepdims=True), bn_params[4])
    N, _, H, W = x.shape
    f4 = jnp.broadcast_to(f4, (N, f4.shape[1], H, W))
    return jnp.concatenate([f0, f1, f2, f3, f4], axis=1).astype(x.dtype)


if __name__ == "__main__":
    root = jax.random.PRNGKey(0)

    def _bf16_exact(a):
        # Round test data to bf16-representable values so the check is insensitive
        # to the MXU's f32-matmul input-rounding mode (products then exact in f32).
        return a.astype(jnp.bfloat16).astype(jnp.float32)

    def make_case(key, N, Cin, H, W):
        Cout = Cin // 8
        ks = jax.random.split(key, 11)
        x = _bf16_exact(jax.random.normal(ks[0], (N, Cin, H, W), jnp.float32))
        w0 = _bf16_exact(0.1 * jax.random.normal(ks[1], (Cout, Cin, 1, 1), jnp.float32))
        w1 = _bf16_exact(0.1 * jax.random.normal(ks[2], (Cout, Cin, 3, 3), jnp.float32))
        w2 = _bf16_exact(0.1 * jax.random.normal(ks[3], (Cout, Cin, 3, 3), jnp.float32))
        w3 = _bf16_exact(0.1 * jax.random.normal(ks[4], (Cout, Cin, 3, 3), jnp.float32))
        w4 = _bf16_exact(0.1 * jax.random.normal(ks[5], (Cout, Cin, 1, 1), jnp.float32))
        bn = []
        for i in range(5):
            kg, kb, km, kv = jax.random.split(ks[6 + i], 4)
            bn.append((0.5 + jax.random.uniform(kg, (Cout,), jnp.float32),
                       0.1 * jax.random.normal(kb, (Cout,), jnp.float32),
                       0.1 * jax.random.normal(km, (Cout,), jnp.float32),
                       0.5 + jax.random.uniform(kv, (Cout,), jnp.float32)))
        return x, (w0, w1, w2, w3, w4), bn

    def run_case(key, N, Cin, H, W, rates):
        x, ws, bn = make_case(key, N, Cin, H, W)
        out = jax.block_until_ready(
            aspp_module_forward(x, *ws, bn_params=bn, rates=rates))
        ref = _reference(x, *ws, bn_params=bn, rates=rates)
        assert out.shape == (N, 5 * (Cin // 8), H, W), out.shape
        err = float(jnp.max(jnp.abs(out.astype(jnp.float32) -
                                    ref.astype(jnp.float32))))
        assert err < 1e-3, err
        return err

    k1, k2 = jax.random.split(root)
    run_case(k1, N=2, Cin=32, H=16, W=16, rates=(1, 2, 3))   # single Cin tile
    run_case(k2, N=2, Cin=256, H=8, W=8, rates=(2, 3, 4))    # Cin tiled (2 x 128)
    print("KERNEL_OK")
</pallas_src>

<mosaic_0001>
module attributes {stable_mosaic.version = 11 : i64} {
  func.func @kernel(%arg0: i32, %arg1: i32, %arg2: memref<2x256xi32, #tpu.memory_space<vmem>>, %arg3: memref<1x32x256xf32, #tpu.memory_space<vmem>>, %arg4: memref<4x32xf32, #tpu.memory_space<vmem>>, %arg5: memref<9x4x32xf32, #tpu.memory_space<vmem>>, %arg6: memref<9x4x32xf32, #tpu.memory_space<vmem>>, %arg7: memref<9x4x32xf32, #tpu.memory_space<vmem>>, %arg8: memref<4x32xf32, #tpu.memory_space<vmem>>, %arg9: memref<20x1xf32, #tpu.memory_space<vmem>>, %arg10: memref<20x1xf32, #tpu.memory_space<vmem>>, %arg11: memref<1x20x256xf32, #tpu.memory_space<vmem>>, %arg12: memref<16x256xf32, #tpu.memory_space<vmem>>, %arg13: memref<4x1xf32, #tpu.memory_space<vmem>>) attributes {dimension_semantics = [#tpu.dimension_semantics<parallel>, #tpu.dimension_semantics<arbitrary>], iteration_bounds = array<i64: 2, 1>, scalar_prefetch = 0 : i64, scratch_operands = 2 : i64, tpu.core_type = #tpu.core_type<tc>, window_params = [{pipeline_mode = #tpu.pipeline_mode<synchronous>, transform_indices = @transform_0, window_bounds = array<i64: 2, 256>}, {transform_indices = @transform_1, window_bounds = array<i64: 1, 32, 256>}, {transform_indices = @transform_2, window_bounds = array<i64: 4, 32>}, {transform_indices = @transform_3, window_bounds = array<i64: 9, 4, 32>}, {transform_indices = @transform_4, window_bounds = array<i64: 9, 4, 32>}, {transform_indices = @transform_5, window_bounds = array<i64: 9, 4, 32>}, {transform_indices = @transform_6, window_bounds = array<i64: 4, 32>}, {pipeline_mode = #tpu.pipeline_mode<synchronous>, transform_indices = @transform_7, window_bounds = array<i64: 20, 1>}, {pipeline_mode = #tpu.pipeline_mode<synchronous>, transform_indices = @transform_8, window_bounds = array<i64: 20, 1>}, {transform_indices = @transform_9, window_bounds = array<i64: 1, 20, 256>}]} {
    %c0_i32 = arith.constant 0 : i32
    %0 = arith.cmpi eq, %arg1, %c0_i32 : i32
    %1 = arith.extui %0 : i1 to i32
    %c0_i32_0 = arith.constant 0 : i32
    %2 = arith.cmpi ne, %1, %c0_i32_0 : i32
    scf.if %2 {
      %cst_346 = arith.constant 0.000000e+00 : f32
      %766 = vector.broadcast %cst_346 : f32 to vector<16x256xf32>
      %c0_347 = arith.constant 0 : index
      %c0_348 = arith.constant 0 : index
      %767 = vector.load %arg12[%c0_347, %c0_348] : memref<16x256xf32, #tpu.memory_space<vmem>>, vector<16x256xf32>
      tpu.vector_store %arg12[%c0_347, %c0_348], %766 {strides = array<i32>} : memref<16x256xf32, #tpu.memory_space<vmem>>, vector<16x256xf32>,
      %cst_349 = arith.constant 0.000000e+00 : f32
      %768 = vector.broadcast %cst_349 : f32 to vector<4x1xf32>
      %c0_350 = arith.constant 0 : index
      %c0_351 = arith.constant 0 : index
      %769 = vector.load %arg13[%c0_350, %c0_351] : memref<4x1xf32, #tpu.memory_space<vmem>>, vector<4x1xf32>
      tpu.vector_store %arg13[%c0_350, %c0_351], %768 {strides = array<i32>} : memref<4x1xf32, #tpu.memory_space<vmem>>, vector<4x1xf32>,
    } else {
    }
    %c0 = arith.constant 0 : index
    %c0_1 = arith.constant 0 : index
    %c0_2 = arith.constant 0 : index
    %3 = vector.load %arg3[%c0, %c0_1, %c0_2] : memref<1x32x256xf32, #tpu.memory_space<vmem>>, vector<1x32x256xf32>
    %4 = vector.shape_cast %3 : vector<1x32x256xf32> to vector<32x256xf32>
    %c0_3 = arith.constant 0 : index
    %c0_4 = arith.constant 0 : index
    %5 = vector.load %arg2[%c0_3, %c0_4] : memref<2x256xi32, #tpu.memory_space<vmem>>, vector<1x256xi32>
    %c1 = arith.constant 1 : index
    %c0_5 = arith.constant 0 : index
    %6 = vector.load %arg2[%c1, %c0_5] : memref<2x256xi32, #tpu.memory_space<vmem>>, vector<1x256xi32>
    %c0_6 = arith.constant 0 : index
    %c0_7 = arith.constant 0 : index
    %7 = vector.load %arg12[%c0_6, %c0_7] : memref<16x256xf32, #tpu.memory_space<vmem>>, vector<4x256xf32>
    %c0_8 = arith.constant 0 : index
    %c0_9 = arith.constant 0 : index
    %8 = vector.load %arg4[%c0_8, %c0_9] : memref<4x32xf32, #tpu.memory_space<vmem>>, vector<4x32xf32>
    %cst = arith.constant dense<0.000000e+00> : vector<4x256xf32>
    %9 = tpu.matmul %8, %4, %cst {dimension_numbers = #tpu.dot_dimension_numbers<[1], [0], [0], [1], [0, 0, 1, 1], [], []>} : vector<4x32xf32>, vector<32x256xf32>, vector<4x256xf32> -> vector<4x256xf32>
    %10 = arith.addf %7, %9 : vector<4x256xf32>
    %c0_10 = arith.constant 0 : index
    %c0_11 = arith.constant 0 : index
    %11 = vector.load %arg12[%c0_10, %c0_11] : memref<16x256xf32, #tpu.memory_space<vmem>>, vector<4x256xf32>
    tpu.vector_store %arg12[%c0_10, %c0_11], %10 {strides = array<i32>} : memref<16x256xf32, #tpu.memory_space<vmem>>, vector<4x256xf32>,
    %cst_12 = arith.constant 0.000000e+00 : f32
    %12 = vector.broadcast %cst_12 : f32 to vector<4x256xf32>
    %c-1_i32 = arith.constant -1 : i32
    %13 = vector.broadcast %c-1_i32 : i32 to vector<1x256xi32>
    %14 = arith.addi %5, %13 : vector<1x256xi32>
    %c0_i32_13 = arith.constant 0 : i32
    %15 = vector.broadcast %c0_i32_13 : i32 to vector<1x256xi32>
    %16 = arith.cmpi sge, %14, %15 : vector<1x256xi32>
    %c-1_i32_14 = arith.constant -1 : i32
    %17 = vector.broadcast %c-1_i32_14 : i32 to vector<1x256xi32>
    %18 = arith.addi %5, %17 : vector<1x256xi32>
    %c16_i32 = arith.constant 16 : i32
    %19 = vector.broadcast %c16_i32 : i32 to vector<1x256xi32>
    %20 = arith.cmpi slt, %18, %19 : vector<1x256xi32>
    %21 = arith.andi %16, %20 : vector<1x256xi1>
    %c-1_i32_15 = arith.constant -1 : i32
    %22 = vector.broadcast %c-1_i32_15 : i32 to vector<1x256xi32>
    %23 = arith.addi %6, %22 : vector<1x256xi32>
    %c0_i32_16 = arith.constant 0 : i32
    %24 = vector.broadcast %c0_i32_16 : i32 to vector<1x256xi32>
    %25 = arith.cmpi sge, %23, %24 : vector<1x256xi32>
    %26 = arith.andi %21, %25 : vector<1x256xi1>
    %c-1_i32_17 = arith.constant -1 : i32
    %27 = vector.broadcast %c-1_i32_17 : i32 to vector<1x256xi32>
    %28 = arith.addi %6, %27 : vector<1x256xi32>
    %c16_i32_18 = arith.constant 16 : i32
    %29 = vector.broadcast %c16_i32_18 : i32 to vector<1x256xi32>
    %30 = arith.cmpi slt, %28, %29 : vector<1x256xi32>
    %31 = arith.andi %26, %30 : vector<1x256xi1>
    %32 = vector.extract_strided_slice %4 {offsets = [0, 239], sizes = [32, 17], strides = [1, 1]} : vector<32x256xf32> to vector<32x17xf32>
    %33 = vector.extract_strided_slice %4 {offsets = [0, 0], sizes = [32, 239], strides = [1, 1]} : vector<32x256xf32> to vector<32x239xf32>
    %34 = tpu.concatenate %32, %33 in 1 : vector<32x17xf32>, vector<32x239xf32> -> vector<32x256xf32>
    %cst_19 = arith.constant 0.000000e+00 : f32
    %35 = vector.broadcast %cst_19 : f32 to vector<32x256xf32>
    %36 = vector.shape_cast %31 : vector<1x256xi1> to vector<1x256xi1>
    %37 = vector.broadcast %36 : vector<1x256xi1> to vector<32x256xi1>
    %38 = arith.select %37, %34, %35 : vector<32x256xi1>, vector<32x256xf32>
    %c0_20 = arith.constant 0 : index
    %c0_21 = arith.constant 0 : index
    %c0_22 = arith.constant 0 : index
    %39 = vector.load %arg5[%c0_20, %c0_21, %c0_22] : memref<9x4x32xf32, #tpu.memory_space<vmem>>, vector<1x4x32xf32>
    %40 = vector.shape_cast %39 : vector<1x4x32xf32> to vector<4x32xf32>
    %cst_23 = arith.constant dense<0.000000e+00> : vector<4x256xf32>
    %41 = tpu.matmul %40, %38, %cst_23 {dimension_numbers = #tpu.dot_dimension_numbers<[1], [0], [0], [1], [0, 0, 1, 1], [], []>} : vector<4x32xf32>, vector<32x256xf32>, vector<4x256xf32> -> vector<4x256xf32>
    %42 = arith.addf %12, %41 : vector<4x256xf32>
    %c-1_i32_24 = arith.constant -1 : i32
    %43 = vector.broadcast %c-1_i32_24 : i32 to vector<1x256xi32>
    %44 = arith.addi %5, %43 : vector<1x256xi32>
    %c0_i32_25 = arith.constant 0 : i32
    %45 = vector.broadcast %c0_i32_25 : i32 to vector<1x256xi32>
    %46 = arith.cmpi sge, %44, %45 : vector<1x256xi32>
    %c-1_i32_26 = arith.constant -1 : i32
    %47 = vector.broadcast %c-1_i32_26 : i32 to vector<1x256xi32>
    %48 = arith.addi %5, %47 : vector<1x256xi32>
    %c16_i32_27 = arith.constant 16 : i32
    %49 = vector.broadcast %c16_i32_27 : i32 to vector<1x256xi32>
    %50 = arith.cmpi slt, %48, %49 : vector<1x256xi32>
    %51 = arith.andi %46, %50 : vector<1x256xi1>
    %c0_i32_28 = arith.constant 0 : i32
    %52 = vector.broadcast %c0_i32_28 : i32 to vector<1x256xi32>
    %53 = arith.addi %6, %52 : vector<1x256xi32>
    %c0_i32_29 = arith.constant 0 : i32
    %54 = vector.broadcast %c0_i32_29 : i32 to vector<1x256xi32>
    %55 = arith.cmpi sge, %53, %54 : vector<1x256xi32>
    %56 = arith.andi %51, %55 : vector<1x256xi1>
    %c0_i32_30 = arith.constant 0 : i32
    %57 = vector.broadcast %c0_i32_30 : i32 to vector<1x256xi32>
    %58 = arith.addi %6, %57 : vector<1x256xi32>
    %c16_i32_31 = arith.constant 16 : i32
    %59 = vector.broadcast %c16_i32_31 : i32 to vector<1x256xi32>
    %60 = arith.cmpi slt, %58, %59 : vector<1x256xi32>
    %61 = arith.andi %56, %60 : vector<1x256xi1>
    %62 = vector.extract_strided_slice %4 {offsets = [0, 240], sizes = [32, 16], strides = [1, 1]} : vector<32x256xf32> to vector<32x16xf32>
    %63 = vector.extract_strided_slice %4 {offsets = [0, 0], sizes = [32, 240], strides = [1, 1]} : vector<32x256xf32> to vector<32x240xf32>
    %64 = tpu.concatenate %62, %63 in 1 : vector<32x16xf32>, vector<32x240xf32> -> vector<32x256xf32>
    %cst_32 = arith.constant 0.000000e+00 : f32
    %65 = vector.broadcast %cst_32 : f32 to vector<32x256xf32>
    %66 = vector.shape_cast %61 : vector<1x256xi1> to vector<1x256xi1>
    %67 = vector.broadcast %66 : vector<1x256xi1> to vector<32x256xi1>
    %68 = arith.select %67, %64, %65 : vector<32x256xi1>, vector<32x256xf32>
    %c1_33 = arith.constant 1 : index
    %c0_34 = arith.constant 0 : index
    %c0_35 = arith.constant 0 : index
    %69 = vector.load %arg5[%c1_33, %c0_34, %c0_35] : memref<9x4x32xf32, #tpu.memory_space<vmem>>, vector<1x4x32xf32>
    %70 = vector.shape_cast %69 : vector<1x4x32xf32> to vector<4x32xf32>
    %cst_36 = arith.constant dense<0.000000e+00> : vector<4x256xf32>
    %71 = tpu.matmul %70, %68, %cst_36 {dimension_numbers = #tpu.dot_dimension_numbers<[1], [0], [0], [1], [0, 0, 1, 1], [], []>} : vector<4x32xf32>, vector<32x256xf32>, vector<4x256xf32> -> vector<4x256xf32>
    %72 = arith.addf %42, %71 : vector<4x256xf32>
    %c-1_i32_37 = arith.constant -1 : i32
    %73 = vector.broadcast %c-1_i32_37 : i32 to vector<1x256xi32>
    %74 = arith.addi %5, %73 : vector<1x256xi32>
    %c0_i32_38 = arith.constant 0 : i32
    %75 = vector.broadcast %c0_i32_38 : i32 to vector<1x256xi32>
    %76 = arith.cmpi sge, %74, %75 : vector<1x256xi32>
    %c-1_i32_39 = arith.constant -1 : i32
    %77 = vector.broadcast %c-1_i32_39 : i32 to vector<1x256xi32>
    %78 = arith.addi %5, %77 : vector<1x256xi32>
    %c16_i32_40 = arith.constant 16 : i32
    %79 = vector.broadcast %c16_i32_40 : i32 to vector<1x256xi32>
    %80 = arith.cmpi slt, %78, %79 : vector<1x256xi32>
    %81 = arith.andi %76, %80 : vector<1x256xi1>
    %c1_i32 = arith.constant 1 : i32
    %82 = vector.broadcast %c1_i32 : i32 to vector<1x256xi32>
    %83 = arith.addi %6, %82 : vector<1x256xi32>
    %c0_i32_41 = arith.constant 0 : i32
    %84 = vector.broadcast %c0_i32_41 : i32 to vector<1x256xi32>
    %85 = arith.cmpi sge, %83, %84 : vector<1x256xi32>
    %86 = arith.andi %81, %85 : vector<1x256xi1>
    %c1_i32_42 = arith.constant 1 : i32
    %87 = vector.broadcast %c1_i32_42 : i32 to vector<1x256xi32>
    %88 = arith.addi %6, %87 : vector<1x256xi32>
    %c16_i32_43 = arith.constant 16 : i32
    %89 = vector.broadcast %c16_i32_43 : i32 to vector<1x256xi32>
    %90 = arith.cmpi slt, %88, %89 : vector<1x256xi32>
    %91 = arith.andi %86, %90 : vector<1x256xi1>
    %92 = vector.extract_strided_slice %4 {offsets = [0, 241], sizes = [32, 15], strides = [1, 1]} : vector<32x256xf32> to vector<32x15xf32>
    %93 = vector.extract_strided_slice %4 {offsets = [0, 0], sizes = [32, 241], strides = [1, 1]} : vector<32x256xf32> to vector<32x241xf32>
    %94 = tpu.concatenate %92, %93 in 1 : vector<32x15xf32>, vector<32x241xf32> -> vector<32x256xf32>
    %cst_44 = arith.constant 0.000000e+00 : f32
    %95 = vector.broadcast %cst_44 : f32 to vector<32x256xf32>
    %96 = vector.shape_cast %91 : vector<1x256xi1> to vector<1x256xi1>
    %97 = vector.broadcast %96 : vector<1x256xi1> to vector<32x256xi1>
    %98 = arith.select %97, %94, %95 : vector<32x256xi1>, vector<32x256xf32>
    %c2 = arith.constant 2 : index
    %c0_45 = arith.constant 0 : index
    %c0_46 = arith.constant 0 : index
    %99 = vector.load %arg5[%c2, %c0_45, %c0_46] : memref<9x4x32xf32, #tpu.memory_space<vmem>>, vector<1x4x32xf32>
    %100 = vector.shape_cast %99 : vector<1x4x32xf32> to vector<4x32xf32>
    %cst_47 = arith.constant dense<0.000000e+00> : vector<4x256xf32>
    %101 = tpu.matmul %100, %98, %cst_47 {dimension_numbers = #tpu.dot_dimension_numbers<[1], [0], [0], [1], [0, 0, 1, 1], [], []>} : vector<4x32xf32>, vector<32x256xf32>, vector<4x256xf32> -> vector<4x256xf32>
    %102 = arith.addf %72, %101 : vector<4x256xf32>
    %c0_i32_48 = arith.constant 0 : i32
    %103 = vector.broadcast %c0_i32_48 : i32 to vector<1x256xi32>
    %104 = arith.addi %5, %103 : vector<1x256xi32>
    %c0_i32_49 = arith.constant 0 : i32
    %105 = vector.broadcast %c0_i32_49 : i32 to vector<1x256xi32>
    %106 = arith.cmpi sge, %104, %105 : vector<1x256xi32>
    %c0_i32_50 = arith.constant 0 : i32
    %107 = vector.broadcast %c0_i32_50 : i32 to vector<1x256xi32>
    %108 = arith.addi %5, %107 : vector<1x256xi32>
    %c16_i32_51 = arith.constant 16 : i32
    %109 = vector.broadcast %c16_i32_51 : i32 to vector<1x256xi32>
    %110 = arith.cmpi slt, %108, %109 : vector<1x256xi32>
    %111 = arith.andi %106, %110 : vector<1x256xi1>
    %c-1_i32_52 = arith.constant -1 : i32
    %112 = vector.broadcast %c-1_i32_52 : i32 to vector<1x256xi32>
    %113 = arith.addi %6, %112 : vector<1x256xi32>
    %c0_i32_53 = arith.constant 0 : i32
    %114 = vector.broadcast %c0_i32_53 : i32 to vector<1x256xi32>
    %115 = arith.cmpi sge, %113, %114 : vector<1x256xi32>
    %116 = arith.andi %111, %115 : vector<1x256xi1>
    %c-1_i32_54 = arith.constant -1 : i32
    %117 = vector.broadcast %c-1_i32_54 : i32 to vector<1x256xi32>
    %118 = arith.addi %6, %117 : vector<1x256xi32>
    %c16_i32_55 = arith.constant 16 : i32
    %119 = vector.broadcast %c16_i32_55 : i32 to vector<1x256xi32>
    %120 = arith.cmpi slt, %118, %119 : vector<1x256xi32>
    %121 = arith.andi %116, %120 : vector<1x256xi1>
    %122 = vector.extract_strided_slice %4 {offsets = [0, 255], sizes = [32, 1], strides = [1, 1]} : vector<32x256xf32> to vector<32x1xf32>
    %123 = vector.extract_strided_slice %4 {offsets = [0, 0], sizes = [32, 255], strides = [1, 1]} : vector<32x256xf32> to vector<32x255xf32>
    %124 = tpu.concatenate %122, %123 in 1 : vector<32x1xf32>, vector<32x255xf32> -> vector<32x256xf32>
    %cst_56 = arith.constant 0.000000e+00 : f32
    %125 = vector.broadcast %cst_56 : f32 to vector<32x256xf32>
    %126 = vector.shape_cast %121 : vector<1x256xi1> to vector<1x256xi1>
    %127 = vector.broadcast %126 : vector<1x256xi1> to vector<32x256xi1>
    %128 = arith.select %127, %124, %125 : vector<32x256xi1>, vector<32x256xf32>
    %c3 = arith.constant 3 : index
    %c0_57 = arith.constant 0 : index
    %c0_58 = arith.constant 0 : index
    %129 = vector.load %arg5[%c3, %c0_57, %c0_58] : memref<9x4x32xf32, #tpu.memory_space<vmem>>, vector<1x4x32xf32>
    %130 = vector.shape_cast %129 : vector<1x4x32xf32> to vector<4x32xf32>
    %cst_59 = arith.constant dense<0.000000e+00> : vector<4x256xf32>
    %131 = tpu.matmul %130, %128, %cst_59 {dimension_numbers = #tpu.dot_dimension_numbers<[1], [0], [0], [1], [0, 0, 1, 1], [], []>} : vector<4x32xf32>, vector<32x256xf32>, vector<4x256xf32> -> vector<4x256xf32>
    %132 = arith.addf %102, %131 : vector<4x256xf32>
    %c4 = arith.constant 4 : index
    %c0_60 = arith.constant 0 : index
    %c0_61 = arith.constant 0 : index
    %133 = vector.load %arg5[%c4, %c0_60, %c0_61] : memref<9x4x32xf32, #tpu.memory_space<vmem>>, vector<1x4x32xf32>
    %134 = vector.shape_cast %133 : vector<1x4x32xf32> to vector<4x32xf32>
    %cst_62 = arith.constant dense<0.000000e+00> : vector<4x256xf32>
    %135 = tpu.matmul %134, %4, %cst_62 {dimension_numbers = #tpu.dot_dimension_numbers<[1], [0], [0], [1], [0, 0, 1, 1], [], []>} : vector<4x32xf32>, vector<32x256xf32>, vector<4x256xf32> -> vector<4x256xf32>
    %136 = arith.addf %132, %135 : vector<4x256xf32>
    %c0_i32_63 = arith.constant 0 : i32
    %137 = vector.broadcast %c0_i32_63 : i32 to vector<1x256xi32>
    %138 = arith.addi %5, %137 : vector<1x256xi32>
    %c0_i32_64 = arith.constant 0 : i32
    %139 = vector.broadcast %c0_i32_64 : i32 to vector<1x256xi32>
    %140 = arith.cmpi sge, %138, %139 : vector<1x256xi32>
    %c0_i32_65 = arith.constant 0 : i32
    %141 = vector.broadcast %c0_i32_65 : i32 to vector<1x256xi32>
    %142 = arith.addi %5, %141 : vector<1x256xi32>
    %c16_i32_66 = arith.constant 16 : i32
    %143 = vector.broadcast %c16_i32_66 : i32 to vector<1x256xi32>
    %144 = arith.cmpi slt, %142, %143 : vector<1x256xi32>
    %145 = arith.andi %140, %144 : vector<1x256xi1>
    %c1_i32_67 = arith.constant 1 : i32
    %146 = vector.broadcast %c1_i32_67 : i32 to vector<1x256xi32>
    %147 = arith.addi %6, %146 : vector<1x256xi32>
    %c0_i32_68 = arith.constant 0 : i32
    %148 = vector.broadcast %c0_i32_68 : i32 to vector<1x256xi32>
    %149 = arith.cmpi sge, %147, %148 : vector<1x256xi32>
    %150 = arith.andi %145, %149 : vector<1x256xi1>
    %c1_i32_69 = arith.constant 1 : i32
    %151 = vector.broadcast %c1_i32_69 : i32 to vector<1x256xi32>
    %152 = arith.addi %6, %151 : vector<1x256xi32>
    %c16_i32_70 = arith.constant 16 : i32
    %153 = vector.broadcast %c16_i32_70 : i32 to vector<1x256xi32>
    %154 = arith.cmpi slt, %152, %153 : vector<1x256xi32>
    %155 = arith.andi %150, %154 : vector<1x256xi1>
    %156 = vector.extract_strided_slice %4 {offsets = [0, 1], sizes = [32, 255], strides = [1, 1]} : vector<32x256xf32> to vector<32x255xf32>
    %157 = vector.extract_strided_slice %4 {offsets = [0, 0], sizes = [32, 1], strides = [1, 1]} : vector<32x256xf32> to vector<32x1xf32>
    %158 = tpu.concatenate %156, %157 in 1 : vector<32x255xf32>, vector<32x1xf32> -> vector<32x256xf32>
    %cst_71 = arith.constant 0.000000e+00 : f32
    %159 = vector.broadcast %cst_71 : f32 to vector<32x256xf32>
    %160 = vector.shape_cast %155 : vector<1x256xi1> to vector<1x256xi1>
    %161 = vector.broadcast %160 : vector<1x256xi1> to vector<32x256xi1>
    %162 = arith.select %161, %158, %159 : vector<32x256xi1>, vector<32x256xf32>
    %c5 = arith.constant 5 : index
    %c0_72 = arith.constant 0 : index
    %c0_73 = arith.constant 0 : index
    %163 = vector.load %arg5[%c5, %c0_72, %c0_73] : memref<9x4x32xf32, #tpu.memory_space<vmem>>, vector<1x4x32xf32>
    %164 = vector.shape_cast %163 : vector<1x4x32xf32> to vector<4x32xf32>
    %cst_74 = arith.constant dense<0.000000e+00> : vector<4x256xf32>
    %165 = tpu.matmul %164, %162, %cst_74 {dimension_numbers = #tpu.dot_dimension_numbers<[1], [0], [0], [1], [0, 0, 1, 1], [], []>} : vector<4x32xf32>, vector<32x256xf32>, vector<4x256xf32> -> vector<4x256xf32>
    %166 = arith.addf %136, %165 : vector<4x256xf32>
    %c1_i32_75 = arith.constant 1 : i32
    %167 = vector.broadcast %c1_i32_75 : i32 to vector<1x256xi32>
    %168 = arith.addi %5, %167 : vector<1x256xi32>
    %c0_i32_76 = arith.constant 0 : i32
    %169 = vector.broadcast %c0_i32_76 : i32 to vector<1x256xi32>
    %170 = arith.cmpi sge, %168, %169 : vector<1x256xi32>
    %c1_i32_77 = arith.constant 1 : i32
    %171 = vector.broadcast %c1_i32_77 : i32 to vector<1x256xi32>
    %172 = arith.addi %5, %171 : vector<1x256xi32>
    %c16_i32_78 = arith.constant 16 : i32
    %173 = vector.broadcast %c16_i32_78 : i32 to vector<1x256xi32>
    %174 = arith.cmpi slt, %172, %173 : vector<1x256xi32>
    %175 = arith.andi %170, %174 : vector<1x256xi1>
    %c-1_i32_79 = arith.constant -1 : i32
    %176 = vector.broadcast %c-1_i32_79 : i32 to vector<1x256xi32>
    %177 = arith.addi %6, %176 : vector<1x256xi32>
    %c0_i32_80 = arith.constant 0 : i32
    %178 = vector.broadcast %c0_i32_80 : i32 to vector<1x256xi32>
    %179 = arith.cmpi sge, %177, %178 : vector<1x256xi32>
    %180 = arith.andi %175, %179 : vector<1x256xi1>
    %c-1_i32_81 = arith.constant -1 : i32
    %181 = vector.broadcast %c-1_i32_81 : i32 to vector<1x256xi32>
    %182 = arith.addi %6, %181 : vector<1x256xi32>
    %c16_i32_82 = arith.constant 16 : i32
    %183 = vector.broadcast %c16_i32_82 : i32 to vector<1x256xi32>
    %184 = arith.cmpi slt, %182, %183 : vector<1x256xi32>
    %185 = arith.andi %180, %184 : vector<1x256xi1>
    %186 = vector.extract_strided_slice %4 {offsets = [0, 15], sizes = [32, 241], strides = [1, 1]} : vector<32x256xf32> to vector<32x241xf32>
    %187 = vector.extract_strided_slice %4 {offsets = [0, 0], sizes = [32, 15], strides = [1, 1]} : vector<32x256xf32> to vector<32x15xf32>
    %188 = tpu.concatenate %186, %187 in 1 : vector<32x241xf32>, vector<32x15xf32> -> vector<32x256xf32>
    %cst_83 = arith.constant 0.000000e+00 : f32
    %189 = vector.broadcast %cst_83 : f32 to vector<32x256xf32>
    %190 = vector.shape_cast %185 : vector<1x256xi1> to vector<1x256xi1>
    %191 = vector.broadcast %190 : vector<1x256xi1> to vector<32x256xi1>
    %192 = arith.select %191, %188, %189 : vector<32x256xi1>, vector<32x256xf32>
    %c6 = arith.constant 6 : index
    %c0_84 = arith.constant 0 : index
    %c0_85 = arith.constant 0 : index
    %193 = vector.load %arg5[%c6, %c0_84, %c0_85] : memref<9x4x32xf32, #tpu.memory_space<vmem>>, vector<1x4x32xf32>
    %194 = vector.shape_cast %193 : vector<1x4x32xf32> to vector<4x32xf32>
    %cst_86 = arith.constant dense<0.000000e+00> : vector<4x256xf32>
    %195 = tpu.matmul %194, %192, %cst_86 {dimension_numbers = #tpu.dot_dimension_numbers<[1], [0], [0], [1], [0, 0, 1, 1], [], []>} : vector<4x32xf32>, vector<32x256xf32>, vector<4x256xf32> -> vector<4x256xf32>
    %196 = arith.addf %166, %195 : vector<4x256xf32>
    %c1_i32_87 = arith.constant 1 : i32
    %197 = vector.broadcast %c1_i32_87 : i32 to vector<1x256xi32>
    %198 = arith.addi %5, %197 : vector<1x256xi32>
    %c0_i32_88 = arith.constant 0 : i32
    %199 = vector.broadcast %c0_i32_88 : i32 to vector<1x256xi32>
    %200 = arith.cmpi sge, %198, %199 : vector<1x256xi32>
    %c1_i32_89 = arith.constant 1 : i32
    %201 = vector.broadcast %c1_i32_89 : i32 to vector<1x256xi32>
    %202 = arith.addi %5, %201 : vector<1x256xi32>
    %c16_i32_90 = arith.constant 16 : i32
    %203 = vector.broadcast %c16_i32_90 : i32 to vector<1x256xi32>
    %204 = arith.cmpi slt, %202, %203 : vector<1x256xi32>
    %205 = arith.andi %200, %204 : vector<1x256xi1>
    %c0_i32_91 = arith.constant 0 : i32
    %206 = vector.broadcast %c0_i32_91 : i32 to vector<1x256xi32>
    %207 = arith.addi %6, %206 : vector<1x256xi32>
    %c0_i32_92 = arith.constant 0 : i32
    %208 = vector.broadcast %c0_i32_92 : i32 to vector<1x256xi32>
    %209 = arith.cmpi sge, %207, %208 : vector<1x256xi32>
    %210 = arith.andi %205, %209 : vector<1x256xi1>
    %c0_i32_93 = arith.constant 0 : i32
    %211 = vector.broadcast %c0_i32_93 : i32 to vector<1x256xi32>
    %212 = arith.addi %6, %211 : vector<1x256xi32>
    %c16_i32_94 = arith.constant 16 : i32
    %213 = vector.broadcast %c16_i32_94 : i32 to vector<1x256xi32>
    %214 = arith.cmpi slt, %212, %213 : vector<1x256xi32>
    %215 = arith.andi %210, %214 : vector<1x256xi1>
    %216 = vector.extract_strided_slice %4 {offsets = [0, 16], sizes = [32, 240], strides = [1, 1]} : vector<32x256xf32> to vector<32x240xf32>
    %217 = vector.extract_strided_slice %4 {offsets = [0, 0], sizes = [32, 16], strides = [1, 1]} : vector<32x256xf32> to vector<32x16xf32>
    %218 = tpu.concatenate %216, %217 in 1 : vector<32x240xf32>, vector<32x16xf32> -> vector<32x256xf32>
    %cst_95 = arith.constant 0.000000e+00 : f32
    %219 = vector.broadcast %cst_95 : f32 to vector<32x256xf32>
    %220 = vector.shape_cast %215 : vector<1x256xi1> to vector<1x256xi1>
    %221 = vector.broadcast %220 : vector<1x256xi1> to vector<32x256xi1>
    %222 = arith.select %221, %218, %219 : vector<32x256xi1>, vector<32x256xf32>
    %c7 = arith.constant 7 : index
    %c0_96 = arith.constant 0 : index
    %c0_97 = arith.constant 0 : index
    %223 = vector.load %arg5[%c7, %c0_96, %c0_97] : memref<9x4x32xf32, #tpu.memory_space<vmem>>, vector<1x4x32xf32>
    %224 = vector.shape_cast %223 : vector<1x4x32xf32> to vector<4x32xf32>
    %cst_98 = arith.constant dense<0.000000e+00> : vector<4x256xf32>
    %225 = tpu.matmul %224, %222, %cst_98 {dimension_numbers = #tpu.dot_dimension_numbers<[1], [0], [0], [1], [0, 0, 1, 1], [], []>} : vector<4x32xf32>, vector<32x256xf32>, vector<4x256xf32> -> vector<4x256xf32>
    %226 = arith.addf %196, %225 : vector<4x256xf32>
    %c1_i32_99 = arith.constant 1 : i32
    %227 = vector.broadcast %c1_i32_99 : i32 to vector<1x256xi32>
    %228 = arith.addi %5, %227 : vector<1x256xi32>
    %c0_i32_100 = arith.constant 0 : i32
    %229 = vector.broadcast %c0_i32_100 : i32 to vector<1x256xi32>
    %230 = arith.cmpi sge, %228, %229 : vector<1x256xi32>
    %c1_i32_101 = arith.constant 1 : i32
    %231 = vector.broadcast %c1_i32_101 : i32 to vector<1x256xi32>
    %232 = arith.addi %5, %231 : vector<1x256xi32>
    %c16_i32_102 = arith.constant 16 : i32
    %233 = vector.broadcast %c16_i32_102 : i32 to vector<1x256xi32>
    %234 = arith.cmpi slt, %232, %233 : vector<1x256xi32>
    %235 = arith.andi %230, %234 : vector<1x256xi1>
    %c1_i32_103 = arith.constant 1 : i32
    %236 = vector.broadcast %c1_i32_103 : i32 to vector<1x256xi32>
    %237 = arith.addi %6, %236 : vector<1x256xi32>
    %c0_i32_104 = arith.constant 0 : i32
    %238 = vector.broadcast %c0_i32_104 : i32 to vector<1x256xi32>
    %239 = arith.cmpi sge, %237, %238 : vector<1x256xi32>
    %240 = arith.andi %235, %239 : vector<1x256xi1>
    %c1_i32_105 = arith.constant 1 : i32
    %241 = vector.broadcast %c1_i32_105 : i32 to vector<1x256xi32>
    %242 = arith.addi %6, %241 : vector<1x256xi32>
    %c16_i32_106 = arith.constant 16 : i32
    %243 = vector.broadcast %c16_i32_106 : i32 to vector<1x256xi32>
    %244 = arith.cmpi slt, %242, %243 : vector<1x256xi32>
    %245 = arith.andi %240, %244 : vector<1x256xi1>
    %246 = vector.extract_strided_slice %4 {offsets = [0, 17], sizes = [32, 239], strides = [1, 1]} : vector<32x256xf32> to vector<32x239xf32>
    %247 = vector.extract_strided_slice %4 {offsets = [0, 0], sizes = [32, 17], strides = [1, 1]} : vector<32x256xf32> to vector<32x17xf32>
    %248 = tpu.concatenate %246, %247 in 1 : vector<32x239xf32>, vector<32x17xf32> -> vector<32x256xf32>
    %cst_107 = arith.constant 0.000000e+00 : f32
    %249 = vector.broadcast %cst_107 : f32 to vector<32x256xf32>
    %250 = vector.shape_cast %245 : vector<1x256xi1> to vector<1x256xi1>
    %251 = vector.broadcast %250 : vector<1x256xi1> to vector<32x256xi1>
    %252 = arith.select %251, %248, %249 : vector<32x256xi1>, vector<32x256xf32>
    %c8 = arith.constant 8 : index
    %c0_108 = arith.constant 0 : index
    %c0_109 = arith.constant 0 : index
    %253 = vector.load %arg5[%c8, %c0_108, %c0_109] : memref<9x4x32xf32, #tpu.memory_space<vmem>>, vector<1x4x32xf32>
    %254 = vector.shape_cast %253 : vector<1x4x32xf32> to vector<4x32xf32>
    %cst_110 = arith.constant dense<0.000000e+00> : vector<4x256xf32>
    %255 = tpu.matmul %254, %252, %cst_110 {dimension_numbers = #tpu.dot_dimension_numbers<[1], [0], [0], [1], [0, 0, 1, 1], [], []>} : vector<4x32xf32>, vector<32x256xf32>, vector<4x256xf32> -> vector<4x256xf32>
    %256 = arith.addf %226, %255 : vector<4x256xf32>
    %c4_111 = arith.constant 4 : index
    %c0_112 = arith.constant 0 : index
    %257 = vector.load %arg12[%c4_111, %c0_112] : memref<16x256xf32, #tpu.memory_space<vmem>>, vector<4x256xf32>
    %258 = arith.addf %257, %256 : vector<4x256xf32>
    %c4_113 = arith.constant 4 : index
    %c0_114 = arith.constant 0 : index
    %259 = vector.load %arg12[%c4_113, %c0_114] : memref<16x256xf32, #tpu.memory_space<vmem>>, vector<4x256xf32>
    tpu.vector_store %arg12[%c4_113, %c0_114], %258 {strides = array<i32>} : memref<16x256xf32, #tpu.memory_space<vmem>>, vector<4x256xf32>,
    %cst_115 = arith.constant 0.000000e+00 : f32
    %260 = vector.broadcast %cst_115 : f32 to vector<4x256xf32>
    %c-2_i32 = arith.constant -2 : i32
    %261 = vector.broadcast %c-2_i32 : i32 to vector<1x256xi32>
    %262 = arith.addi %5, %261 : vector<1x256xi32>
    %c0_i32_116 = arith.constant 0 : i32
    %263 = vector.broadcast %c0_i32_116 : i32 to vector<1x256xi32>
    %264 = arith.cmpi sge, %262, %263 : vector<1x256xi32>
    %c-2_i32_117 = arith.constant -2 : i32
    %265 = vector.broadcast %c-2_i32_117 : i32 to vector<1x256xi32>
    %266 = arith.addi %5, %265 : vector<1x256xi32>
    %c16_i32_118 = arith.constant 16 : i32
    %267 = vector.broadcast %c16_i32_118 : i32 to vector<1x256xi32>
    %268 = arith.cmpi slt, %266, %267 : vector<1x256xi32>
    %269 = arith.andi %264, %268 : vector<1x256xi1>
    %c-2_i32_119 = arith.constant -2 : i32
    %270 = vector.broadcast %c-2_i32_119 : i32 to vector<1x256xi32>
    %271 = arith.addi %6, %270 : vector<1x256xi32>
    %c0_i32_120 = arith.constant 0 : i32
    %272 = vector.broadcast %c0_i32_120 : i32 to vector<1x256xi32>
    %273 = arith.cmpi sge, %271, %272 : vector<1x256xi32>
    %274 = arith.andi %269, %273 : vector<1x256xi1>
    %c-2_i32_121 = arith.constant -2 : i32
    %275 = vector.broadcast %c-2_i32_121 : i32 to vector<1x256xi32>
    %276 = arith.addi %6, %275 : vector<1x256xi32>
    %c16_i32_122 = arith.constant 16 : i32
    %277 = vector.broadcast %c16_i32_122 : i32 to vector<1x256xi32>
    %278 = arith.cmpi slt, %276, %277 : vector<1x256xi32>
    %279 = arith.andi %274, %278 : vector<1x256xi1>
    %280 = vector.extract_strided_slice %4 {offsets = [0, 222], sizes = [32, 34], strides = [1, 1]} : vector<32x256xf32> to vector<32x34xf32>
    %281 = vector.extract_strided_slice %4 {offsets = [0, 0], sizes = [32, 222], strides = [1, 1]} : vector<32x256xf32> to vector<32x222xf32>
    %282 = tpu.concatenate %280, %281 in 1 : vector<32x34xf32>, vector<32x222xf32> -> vector<32x256xf32>
    %cst_123 = arith.constant 0.000000e+00 : f32
    %283 = vector.broadcast %cst_123 : f32 to vector<32x256xf32>
    %284 = vector.shape_cast %279 : vector<1x256xi1> to vector<1x256xi1>
    %285 = vector.broadcast %284 : vector<1x256xi1> to vector<32x256xi1>
    %286 = arith.select %285, %282, %283 : vector<32x256xi1>, vector<32x256xf32>
    %c0_124 = arith.constant 0 : index
    %c0_125 = arith.constant 0 : index
    %c0_126 = arith.constant 0 : index
    %287 = vector.load %arg6[%c0_124, %c0_125, %c0_126] : memref<9x4x32xf32, #tpu.memory_space<vmem>>, vector<1x4x32xf32>
    %288 = vector.shape_cast %287 : vector<1x4x32xf32> to vector<4x32xf32>
    %cst_127 = arith.constant dense<0.000000e+00> : vector<4x256xf32>
    %289 = tpu.matmul %288, %286, %cst_127 {dimension_numbers = #tpu.dot_dimension_numbers<[1], [0], [0], [1], [0, 0, 1, 1], [], []>} : vector<4x32xf32>, vector<32x256xf32>, vector<4x256xf32> -> vector<4x256xf32>
    %290 = arith.addf %260, %289 : vector<4x256xf32>
    %c-2_i32_128 = arith.constant -2 : i32
    %291 = vector.broadcast %c-2_i32_128 : i32 to vector<1x256xi32>
    %292 = arith.addi %5, %291 : vector<1x256xi32>
    %c0_i32_129 = arith.constant 0 : i32
    %293 = vector.broadcast %c0_i32_129 : i32 to vector<1x256xi32>
    %294 = arith.cmpi sge, %292, %293 : vector<1x256xi32>
    %c-2_i32_130 = arith.constant -2 : i32
    %295 = vector.broadcast %c-2_i32_130 : i32 to vector<1x256xi32>
    %296 = arith.addi %5, %295 : vector<1x256xi32>
    %c16_i32_131 = arith.constant 16 : i32
    %297 = vector.broadcast %c16_i32_131 : i32 to vector<1x256xi32>
    %298 = arith.cmpi slt, %296, %297 : vector<1x256xi32>
    %299 = arith.andi %294, %298 : vector<1x256xi1>
    %c0_i32_132 = arith.constant 0 : i32
    %300 = vector.broadcast %c0_i32_132 : i32 to vector<1x256xi32>
    %301 = arith.addi %6, %300 : vector<1x256xi32>
    %c0_i32_133 = arith.constant 0 : i32
    %302 = vector.broadcast %c0_i32_133 : i32 to vector<1x256xi32>
    %303 = arith.cmpi sge, %301, %302 : vector<1x256xi32>
    %304 = arith.andi %299, %303 : vector<1x256xi1>
    %c0_i32_134 = arith.constant 0 : i32
    %305 = vector.broadcast %c0_i32_134 : i32 to vector<1x256xi32>
    %306 = arith.addi %6, %305 : vector<1x256xi32>
    %c16_i32_135 = arith.constant 16 : i32
    %307 = vector.broadcast %c16_i32_135 : i32 to vector<1x256xi32>
    %308 = arith.cmpi slt, %306, %307 : vector<1x256xi32>
    %309 = arith.andi %304, %308 : vector<1x256xi1>
    %310 = vector.extract_strided_slice %4 {offsets = [0, 224], sizes = [32, 32], strides = [1, 1]} : vector<32x256xf32> to vector<32x32xf32>
    %311 = vector.extract_strided_slice %4 {offsets = [0, 0], sizes = [32, 224], strides = [1, 1]} : vector<32x256xf32> to vector<32x224xf32>
    %312 = tpu.concatenate %310, %311 in 1 : vector<32x32xf32>, vector<32x224xf32> -> vector<32x256xf32>
    %cst_136 = arith.constant 0.000000e+00 : f32
    %313 = vector.broadcast %cst_136 : f32 to vector<32x256xf32>
    %314 = vector.shape_cast %309 : vector<1x256xi1> to vector<1x256xi1>
    %315 = vector.broadcast %314 : vector<1x256xi1> to vector<32x256xi1>
    %316 = arith.select %315, %312, %313 : vector<32x256xi1>, vector<32x256xf32>
    %c1_137 = arith.constant 1 : index
    %c0_138 = arith.constant 0 : index
    %c0_139 = arith.constant 0 : index
    %317 = vector.load %arg6[%c1_137, %c0_138, %c0_139] : memref<9x4x32xf32, #tpu.memory_space<vmem>>, vector<1x4x32xf32>
    %318 = vector.shape_cast %317 : vector<1x4x32xf32> to vector<4x32xf32>
    %cst_140 = arith.constant dense<0.000000e+00> : vector<4x256xf32>
    %319 = tpu.matmul %318, %316, %cst_140 {dimension_numbers = #tpu.dot_dimension_numbers<[1], [0], [0], [1], [0, 0, 1, 1], [], []>} : vector<4x32xf32>, vector<32x256xf32>, vector<4x256xf32> -> vector<4x256xf32>
    %320 = arith.addf %290, %319 : vector<4x256xf32>
    %c-2_i32_141 = arith.constant -2 : i32
    %321 = vector.broadcast %c-2_i32_141 : i32 to vector<1x256xi32>
    %322 = arith.addi %5, %321 : vector<1x256xi32>
    %c0_i32_142 = arith.constant 0 : i32
    %323 = vector.broadcast %c0_i32_142 : i32 to vector<1x256xi32>
    %324 = arith.cmpi sge, %322, %323 : vector<1x256xi32>
    %c-2_i32_143 = arith.constant -2 : i32
    %325 = vector.broadcast %c-2_i32_143 : i32 to vector<1x256xi32>
    %326 = arith.addi %5, %325 : vector<1x256xi32>
    %c16_i32_144 = arith.constant 16 : i32
    %327 = vector.broadcast %c16_i32_144 : i32 to vector<1x256xi32>
    %328 = arith.cmpi slt, %326, %327 : vector<1x256xi32>
    %329 = arith.andi %324, %328 : vector<1x256xi1>
    %c2_i32 = arith.constant 2 : i32
    %330 = vector.broadcast %c2_i32 : i32 to vector<1x256xi32>
    %331 = arith.addi %6, %330 : vector<1x256xi32>
    %c0_i32_145 = arith.constant 0 : i32
    %332 = vector.broadcast %c0_i32_145 : i32 to vector<1x256xi32>
    %333 = arith.cmpi sge, %331, %332 : vector<1x256xi32>
    %334 = arith.andi %329, %333 : vector<1x256xi1>
    %c2_i32_146 = arith.constant 2 : i32
    %335 = vector.broadcast %c2_i32_146 : i32 to vector<1x256xi32>
    %336 = arith.addi %6, %335 : vector<1x256xi32>
    %c16_i32_147 = arith.constant 16 : i32
    %337 = vector.broadcast %c16_i32_147 : i32 to vector<1x256xi32>
    %338 = arith.cmpi slt, %336, %337 : vector<1x256xi32>
    %339 = arith.andi %334, %338 : vector<1x256xi1>
    %340 = vector.extract_strided_slice %4 {offsets = [0, 226], sizes = [32, 30], strides = [1, 1]} : vector<32x256xf32> to vector<32x30xf32>
    %341 = vector.extract_strided_slice %4 {offsets = [0, 0], sizes = [32, 226], strides = [1, 1]} : vector<32x256xf32> to vector<32x226xf32>
    %342 = tpu.concatenate %340, %341 in 1 : vector<32x30xf32>, vector<32x226xf32> -> vector<32x256xf32>
    %cst_148 = arith.constant 0.000000e+00 : f32
    %343 = vector.broadcast %cst_148 : f32 to vector<32x256xf32>
    %344 = vector.shape_cast %339 : vector<1x256xi1> to vector<1x256xi1>
    %345 = vector.broadcast %344 : vector<1x256xi1> to vector<32x256xi1>
    %346 = arith.select %345, %342, %343 : vector<32x256xi1>, vector<32x256xf32>
    %c2_149 = arith.constant 2 : index
    %c0_150 = arith.constant 0 : index
    %c0_151 = arith.constant 0 : index
    %347 = vector.load %arg6[%c2_149, %c0_150, %c0_151] : memref<9x4x32xf32, #tpu.memory_space<vmem>>, vector<1x4x32xf32>
    %348 = vector.shape_cast %347 : vector<1x4x32xf32> to vector<4x32xf32>
    %cst_152 = arith.constant dense<0.000000e+00> : vector<4x256xf32>
    %349 = tpu.matmul %348, %346, %cst_152 {dimension_numbers = #tpu.dot_dimension_numbers<[1], [0], [0], [1], [0, 0, 1, 1], [], []>} : vector<4x32xf32>, vector<32x256xf32>, vector<4x256xf32> -> vector<4x256xf32>
    %350 = arith.addf %320, %349 : vector<4x256xf32>
    %c0_i32_153 = arith.constant 0 : i32
    %351 = vector.broadcast %c0_i32_153 : i32 to vector<1x256xi32>
    %352 = arith.addi %5, %351 : vector<1x256xi32>
    %c0_i32_154 = arith.constant 0 : i32
    %353 = vector.broadcast %c0_i32_154 : i32 to vector<1x256xi32>
    %354 = arith.cmpi sge, %352, %353 : vector<1x256xi32>
    %c0_i32_155 = arith.constant 0 : i32
    %355 = vector.broadcast %c0_i32_155 : i32 to vector<1x256xi32>
    %356 = arith.addi %5, %355 : vector<1x256xi32>
    %c16_i32_156 = arith.constant 16 : i32
    %357 = vector.broadcast %c16_i32_156 : i32 to vector<1x256xi32>
    %358 = arith.cmpi slt, %356, %357 : vector<1x256xi32>
    %359 = arith.andi %354, %358 : vector<1x256xi1>
    %c-2_i32_157 = arith.constant -2 : i32
    %360 = vector.broadcast %c-2_i32_157 : i32 to vector<1x256xi32>
    %361 = arith.addi %6, %360 : vector<1x256xi32>
    %c0_i32_158 = arith.constant 0 : i32
    %362 = vector.broadcast %c0_i32_158 : i32 to vector<1x256xi32>
    %363 = arith.cmpi sge, %361, %362 : vector<1x256xi32>
    %364 = arith.andi %359, %363 : vector<1x256xi1>
    %c-2_i32_159 = arith.constant -2 : i32
    %365 = vector.broadcast %c-2_i32_159 : i32 to vector<1x256xi32>
    %366 = arith.addi %6, %365 : vector<1x256xi32>
    %c16_i32_160 = arith.constant 16 : i32
    %367 = vector.broadcast %c16_i32_160 : i32 to vector<1x256xi32>
    %368 = arith.cmpi slt, %366, %367 : vector<1x256xi32>
    %369 = arith.andi %364, %368 : vector<1x256xi1>
    %370 = vector.extract_strided_slice %4 {offsets = [0, 254], sizes = [32, 2], strides = [1, 1]} : vector<32x256xf32> to vector<32x2xf32>
    %371 = vector.extract_strided_slice %4 {offsets = [0, 0], sizes = [32, 254], strides = [1, 1]} : vector<32x256xf32> to vector<32x254xf32>
    %372 = tpu.concatenate %370, %371 in 1 : vector<32x2xf32>, vector<32x254xf32> -> vector<32x256xf32>
    %cst_161 = arith.constant 0.000000e+00 : f32
    %373 = vector.broadcast %cst_161 : f32 to vector<32x256xf32>
    %374 = vector.shape_cast %369 : vector<1x256xi1> to vector<1x256xi1>
    %375 = vector.broadcast %374 : vector<1x256xi1> to vector<32x256xi1>
    %376 = arith.select %375, %372, %373 : vector<32x256xi1>, vector<32x256xf32>
    %c3_162 = arith.constant 3 : index
    %c0_163 = arith.constant 0 : index
    %c0_164 = arith.constant 0 : index
    %377 = vector.load %arg6[%c3_162, %c0_163, %c0_164] : memref<9x4x32xf32, #tpu.memory_space<vmem>>, vector<1x4x32xf32>
    %378 = vector.shape_cast %377 : vector<1x4x32xf32> to vector<4x32xf32>
    %cst_165 = arith.constant dense<0.000000e+00> : vector<4x256xf32>
    %379 = tpu.matmul %378, %376, %cst_165 {dimension_numbers = #tpu.dot_dimension_numbers<[1], [0], [0], [1], [0, 0, 1, 1], [], []>} : vector<4x32xf32>, vector<32x256xf32>, vector<4x256xf32> -> vector<4x256xf32>
    %380 = arith.addf %350, %379 : vector<4x256xf32>
    %c4_166 = arith.constant 4 : index
    %c0_167 = arith.constant 0 : index
    %c0_168 = arith.constant 0 : index
    %381 = vector.load %arg6[%c4_166, %c0_167, %c0_168] : memref<9x4x32xf32, #tpu.memory_space<vmem>>, vector<1x4x32xf32>
    %382 = vector.shape_cast %381 : vector<1x4x32xf32> to vector<4x32xf32>
    %cst_169 = arith.constant dense<0.000000e+00> : vector<4x256xf32>
    %383 = tpu.matmul %382, %4, %cst_169 {dimension_numbers = #tpu.dot_dimension_numbers<[1], [0], [0], [1], [0, 0, 1, 1], [], []>} : vector<4x32xf32>, vector<32x256xf32>, vector<4x256xf32> -> vector<4x256xf32>
    %384 = arith.addf %380, %383 : vector<4x256xf32>
    %c0_i32_170 = arith.constant 0 : i32
    %385 = vector.broadcast %c0_i32_170 : i32 to vector<1x256xi32>
    %386 = arith.addi %5, %385 : vector<1x256xi32>
    %c0_i32_171 = arith.constant 0 : i32
    %387 = vector.broadcast %c0_i32_171 : i32 to vector<1x256xi32>
    %388 = arith.cmpi sge, %386, %387 : vector<1x256xi32>
    %c0_i32_172 = arith.constant 0 : i32
    %389 = vector.broadcast %c0_i32_172 : i32 to vector<1x256xi32>
    %390 = arith.addi %5, %389 : vector<1x256xi32>
    %c16_i32_173 = arith.constant 16 : i32
    %391 = vector.broadcast %c16_i32_173 : i32 to vector<1x256xi32>
    %392 = arith.cmpi slt, %390, %391 : vector<1x256xi32>
    %393 = arith.andi %388, %392 : vector<1x256xi1>
    %c2_i32_174 = arith.constant 2 : i32
    %394 = vector.broadcast %c2_i32_174 : i32 to vector<1x256xi32>
    %395 = arith.addi %6, %394 : vector<1x256xi32>
    %c0_i32_175 = arith.constant 0 : i32
    %396 = vector.broadcast %c0_i32_175 : i32 to vector<1x256xi32>
    %397 = arith.cmpi sge, %395, %396 : vector<1x256xi32>
    %398 = arith.andi %393, %397 : vector<1x256xi1>
    %c2_i32_176 = arith.constant 2 : i32
    %399 = vector.broadcast %c2_i32_176 : i32 to vector<1x256xi32>
    %400 = arith.addi %6, %399 : vector<1x256xi32>
    %c16_i32_177 = arith.constant 16 : i32
    %401 = vector.broadcast %c16_i32_177 : i32 to vector<1x256xi32>
    %402 = arith.cmpi slt, %400, %401 : vector<1x256xi32>
    %403 = arith.andi %398, %402 : vector<1x256xi1>
    %404 = vector.extract_strided_slice %4 {offsets = [0, 2], sizes = [32, 254], strides = [1, 1]} : vector<32x256xf32> to vector<32x254xf32>
    %405 = vector.extract_strided_slice %4 {offsets = [0, 0], sizes = [32, 2], strides = [1, 1]} : vector<32x256xf32> to vector<32x2xf32>
    %406 = tpu.concatenate %404, %405 in 1 : vector<32x254xf32>, vector<32x2xf32> -> vector<32x256xf32>
    %cst_178 = arith.constant 0.000000e+00 : f32
    %407 = vector.broadcast %cst_178 : f32 to vector<32x256xf32>
    %408 = vector.shape_cast %403 : vector<1x256xi1> to vector<1x256xi1>
    %409 = vector.broadcast %408 : vector<1x256xi1> to vector<32x256xi1>
    %410 = arith.select %409, %406, %407 : vector<32x256xi1>, vector<32x256xf32>
    %c5_179 = arith.constant 5 : index
    %c0_180 = arith.constant 0 : index
    %c0_181 = arith.constant 0 : index
    %411 = vector.load %arg6[%c5_179, %c0_180, %c0_181] : memref<9x4x32xf32, #tpu.memory_space<vmem>>, vector<1x4x32xf32>
    %412 = vector.shape_cast %411 : vector<1x4x32xf32> to vector<4x32xf32>
    %cst_182 = arith.constant dense<0.000000e+00> : vector<4x256xf32>
    %413 = tpu.matmul %412, %410, %cst_182 {dimension_numbers = #tpu.dot_dimension_numbers<[1], [0], [0], [1], [0, 0, 1, 1], [], []>} : vector<4x32xf32>, vector<32x256xf32>, vector<4x256xf32> -> vector<4x256xf32>
    %414 = arith.addf %384, %413 : vector<4x256xf32>
    %c2_i32_183 = arith.constant 2 : i32
    %415 = vector.broadcast %c2_i32_183 : i32 to vector<1x256xi32>
    %416 = arith.addi %5, %415 : vector<1x256xi32>
    %c0_i32_184 = arith.constant 0 : i32
    %417 = vector.broadcast %c0_i32_184 : i32 to vector<1x256xi32>
    %418 = arith.cmpi sge, %416, %417 : vector<1x256xi32>
    %c2_i32_185 = arith.constant 2 : i32
    %419 = vector.broadcast %c2_i32_185 : i32 to vector<1x256xi32>
    %420 = arith.addi %5, %419 : vector<1x256xi32>
    %c16_i32_186 = arith.constant 16 : i32
    %421 = vector.broadcast %c16_i32_186 : i32 to vector<1x256xi32>
    %422 = arith.cmpi slt, %420, %421 : vector<1x256xi32>
    %423 = arith.andi %418, %422 : vector<1x256xi1>
    %c-2_i32_187 = arith.constant -2 : i32
    %424 = vector.broadcast %c-2_i32_187 : i32 to vector<1x256xi32>
    %425 = arith.addi %6, %424 : vector<1x256xi32>
    %c0_i32_188 = arith.constant 0 : i32
    %426 = vector.broadcast %c0_i32_188 : i32 to vector<1x256xi32>
    %427 = arith.cmpi sge, %425, %426 : vector<1x256xi32>
    %428 = arith.andi %423, %427 : vector<1x256xi1>
    %c-2_i32_189 = arith.constant -2 : i32
    %429 = vector.broadcast %c-2_i32_189 : i32 to vector<1x256xi32>
    %430 = arith.addi %6, %429 : vector<1x256xi32>
    %c16_i32_190 = arith.constant 16 : i32
    %431 = vector.broadcast %c16_i32_190 : i32 to vector<1x256xi32>
    %432 = arith.cmpi slt, %430, %431 : vector<1x256xi32>
    %433 = arith.andi %428, %432 : vector<1x256xi1>
    %434 = vector.extract_strided_slice %4 {offsets = [0, 30], sizes = [32, 226], strides = [1, 1]} : vector<32x256xf32> to vector<32x226xf32>
    %435 = vector.extract_strided_slice %4 {offsets = [0, 0], sizes = [32, 30], strides = [1, 1]} : vector<32x256xf32> to vector<32x30xf32>
    %436 = tpu.concatenate %434, %435 in 1 : vector<32x226xf32>, vector<32x30xf32> -> vector<32x256xf32>
    %cst_191 = arith.constant 0.000000e+00 : f32
    %437 = vector.broadcast %cst_191 : f32 to vector<32x256xf32>
    %438 = vector.shape_cast %433 : vector<1x256xi1> to vector<1x256xi1>
    %439 = vector.broadcast %438 : vector<1x256xi1> to vector<32x256xi1>
    %440 = arith.select %439, %436, %437 : vector<32x256xi1>, vector<32x256xf32>
    %c6_192 = arith.constant 6 : index
    %c0_193 = arith.constant 0 : index
    %c0_194 = arith.constant 0 : index
    %441 = vector.load %arg6[%c6_192, %c0_193, %c0_194] : memref<9x4x32xf32, #tpu.memory_space<vmem>>, vector<1x4x32xf32>
    %442 = vector.shape_cast %441 : vector<1x4x32xf32> to vector<4x32xf32>
    %cst_195 = arith.constant dense<0.000000e+00> : vector<4x256xf32>
    %443 = tpu.matmul %442, %440, %cst_195 {dimension_numbers = #tpu.dot_dimension_numbers<[1], [0], [0], [1], [0, 0, 1, 1], [], []>} : vector<4x32xf32>, vector<32x256xf32>, vector<4x256xf32> -> vector<4x256xf32>
    %444 = arith.addf %414, %443 : vector<4x256xf32>
    %c2_i32_196 = arith.constant 2 : i32
    %445 = vector.broadcast %c2_i32_196 : i32 to vector<1x256xi32>
    %446 = arith.addi %5, %445 : vector<1x256xi32>
    %c0_i32_197 = arith.constant 0 : i32
    %447 = vector.broadcast %c0_i32_197 : i32 to vector<1x256xi32>
    %448 = arith.cmpi sge, %446, %447 : vector<1x256xi32>
    %c2_i32_198 = arith.constant 2 : i32
    %449 = vector.broadcast %c2_i32_198 : i32 to vector<1x256xi32>
    %450 = arith.addi %5, %449 : vector<1x256xi32>
    %c16_i32_199 = arith.constant 16 : i32
    %451 = vector.broadcast %c16_i32_199 : i32 to vector<1x256xi32>
    %452 = arith.cmpi slt, %450, %451 : vector<1x256xi32>
    %453 = arith.andi %448, %452 : vector<1x256xi1>
    %c0_i32_200 = arith.constant 0 : i32
    %454 = vector.broadcast %c0_i32_200 : i32 to vector<1x256xi32>
    %455 = arith.addi %6, %454 : vector<1x256xi32>
    %c0_i32_201 = arith.constant 0 : i32
    %456 = vector.broadcast %c0_i32_201 : i32 to vector<1x256xi32>
    %457 = arith.cmpi sge, %455, %456 : vector<1x256xi32>
    %458 = arith.andi %453, %457 : vector<1x256xi1>
    %c0_i32_202 = arith.constant 0 : i32
    %459 = vector.broadcast %c0_i32_202 : i32 to vector<1x256xi32>
    %460 = arith.addi %6, %459 : vector<1x256xi32>
    %c16_i32_203 = arith.constant 16 : i32
    %461 = vector.broadcast %c16_i32_203 : i32 to vector<1x256xi32>
    %462 = arith.cmpi slt, %460, %461 : vector<1x256xi32>
    %463 = arith.andi %458, %462 : vector<1x256xi1>
    %464 = vector.extract_strided_slice %4 {offsets = [0, 32], sizes = [32, 224], strides = [1, 1]} : vector<32x256xf32> to vector<32x224xf32>
    %465 = vector.extract_strided_slice %4 {offsets = [0, 0], sizes = [32, 32], strides = [1, 1]} : vector<32x256xf32> to vector<32x32xf32>
    %466 = tpu.concatenate %464, %465 in 1 : vector<32x224xf32>, vector<32x32xf32> -> vector<32x256xf32>
    %cst_204 = arith.constant 0.000000e+00 : f32
    %467 = vector.broadcast %cst_204 : f32 to vector<32x256xf32>
    %468 = vector.shape_cast %463 : vector<1x256xi1> to vector<1x256xi1>
    %469 = vector.broadcast %468 : vector<1x256xi1> to vector<32x256xi1>
    %470 = arith.select %469, %466, %467 : vector<32x256xi1>, vector<32x256xf32>
    %c7_205 = arith.constant 7 : index
    %c0_206 = arith.constant 0 : index
    %c0_207 = arith.constant 0 : index
    %471 = vector.load %arg6[%c7_205, %c0_206, %c0_207] : memref<9x4x32xf32, #tpu.memory_space<vmem>>, vector<1x4x32xf32>
    %472 = vector.shape_cast %471 : vector<1x4x32xf32> to vector<4x32xf32>
    %cst_208 = arith.constant dense<0.000000e+00> : vector<4x256xf32>
    %473 = tpu.matmul %472, %470, %cst_208 {dimension_numbers = #tpu.dot_dimension_numbers<[1], [0], [0], [1], [0, 0, 1, 1], [], []>} : vector<4x32xf32>, vector<32x256xf32>, vector<4x256xf32> -> vector<4x256xf32>
    %474 = arith.addf %444, %473 : vector<4x256xf32>
    %c2_i32_209 = arith.constant 2 : i32
    %475 = vector.broadcast %c2_i32_209 : i32 to vector<1x256xi32>
    %476 = arith.addi %5, %475 : vector<1x256xi32>
    %c0_i32_210 = arith.constant 0 : i32
    %477 = vector.broadcast %c0_i32_210 : i32 to vector<1x256xi32>
    %478 = arith.cmpi sge, %476, %477 : vector<1x256xi32>
    %c2_i32_211 = arith.constant 2 : i32
    %479 = vector.broadcast %c2_i32_211 : i32 to vector<1x256xi32>
    %480 = arith.addi %5, %479 : vector<1x256xi32>
    %c16_i32_212 = arith.constant 16 : i32
    %481 = vector.broadcast %c16_i32_212 : i32 to vector<1x256xi32>
    %482 = arith.cmpi slt, %480, %481 : vector<1x256xi32>
    %483 = arith.andi %478, %482 : vector<1x256xi1>
    %c2_i32_213 = arith.constant 2 : i32
    %484 = vector.broadcast %c2_i32_213 : i32 to vector<1x256xi32>
    %485 = arith.addi %6, %484 : vector<1x256xi32>
    %c0_i32_214 = arith.constant 0 : i32
    %486 = vector.broadcast %c0_i32_214 : i32 to vector<1x256xi32>
    %487 = arith.cmpi sge, %485, %486 : vector<1x256xi32>
    %488 = arith.andi %483, %487 : vector<1x256xi1>
    %c2_i32_215 = arith.constant 2 : i32
    %489 = vector.broadcast %c2_i32_215 : i32 to vector<1x256xi32>
    %490 = arith.addi %6, %489 : vector<1x256xi32>
    %c16_i32_216 = arith.constant 16 : i32
    %491 = vector.broadcast %c16_i32_216 : i32 to vector<1x256xi32>
    %492 = arith.cmpi slt, %490, %491 : vector<1x256xi32>
    %493 = arith.andi %488, %492 : vector<1x256xi1>
    %494 = vector.extract_strided_slice %4 {offsets = [0, 34], sizes = [32, 222], strides = [1, 1]} : vector<32x256xf32> to vector<32x222xf32>
    %495 = vector.extract_strided_slice %4 {offsets = [0, 0], sizes = [32, 34], strides = [1, 1]} : vector<32x256xf32> to vector<32x34xf32>
    %496 = tpu.concatenate %494, %495 in 1 : vector<32x222xf32>, vector<32x34xf32> -> vector<32x256xf32>
    %cst_217 = arith.constant 0.000000e+00 : f32
    %497 = vector.broadcast %cst_217 : f32 to vector<32x256xf32>
    %498 = vector.shape_cast %493 : vector<1x256xi1> to vector<1x256xi1>
    %499 = vector.broadcast %498 : vector<1x256xi1> to vector<32x256xi1>
    %500 = arith.select %499, %496, %497 : vector<32x256xi1>, vector<32x256xf32>
    %c8_218 = arith.constant 8 : index
    %c0_219 = arith.constant 0 : index
    %c0_220 = arith.constant 0 : index
    %501 = vector.load %arg6[%c8_218, %c0_219, %c0_220] : memref<9x4x32xf32, #tpu.memory_space<vmem>>, vector<1x4x32xf32>
    %502 = vector.shape_cast %501 : vector<1x4x32xf32> to vector<4x32xf32>
    %cst_221 = arith.constant dense<0.000000e+00> : vector<4x256xf32>
    %503 = tpu.matmul %502, %500, %cst_221 {dimension_numbers = #tpu.dot_dimension_numbers<[1], [0], [0], [1], [0, 0, 1, 1], [], []>} : vector<4x32xf32>, vector<32x256xf32>, vector<4x256xf32> -> vector<4x256xf32>
    %504 = arith.addf %474, %503 : vector<4x256xf32>
    %c8_222 = arith.constant 8 : index
    %c0_223 = arith.constant 0 : index
    %505 = vector.load %arg12[%c8_222, %c0_223] : memref<16x256xf32, #tpu.memory_space<vmem>>, vector<4x256xf32>
    %506 = arith.addf %505, %504 : vector<4x256xf32>
    %c8_224 = arith.constant 8 : index
    %c0_225 = arith.constant 0 : index
    %507 = vector.load %arg12[%c8_224, %c0_225] : memref<16x256xf32, #tpu.memory_space<vmem>>, vector<4x256xf32>
    tpu.vector_store %arg12[%c8_224, %c0_225], %506 {strides = array<i32>} : memref<16x256xf32, #tpu.memory_space<vmem>>, vector<4x256xf32>,
    %cst_226 = arith.constant 0.000000e+00 : f32
    %508 = vector.broadcast %cst_226 : f32 to vector<4x256xf32>
    %c-3_i32 = arith.constant -3 : i32
    %509 = vector.broadcast %c-3_i32 : i32 to vector<1x256xi32>
    %510 = arith.addi %5, %509 : vector<1x256xi32>
    %c0_i32_227 = arith.constant 0 : i32
    %511 = vector.broadcast %c0_i32_227 : i32 to vector<1x256xi32>
    %512 = arith.cmpi sge, %510, %511 : vector<1x256xi32>
    %c-3_i32_228 = arith.constant -3 : i32
    %513 = vector.broadcast %c-3_i32_228 : i32 to vector<1x256xi32>
    %514 = arith.addi %5, %513 : vector<1x256xi32>
    %c16_i32_229 = arith.constant 16 : i32
    %515 = vector.broadcast %c16_i32_229 : i32 to vector<1x256xi32>
    %516 = arith.cmpi slt, %514, %515 : vector<1x256xi32>
    %517 = arith.andi %512, %516 : vector<1x256xi1>
    %c-3_i32_230 = arith.constant -3 : i32
    %518 = vector.broadcast %c-3_i32_230 : i32 to vector<1x256xi32>
    %519 = arith.addi %6, %518 : vector<1x256xi32>
    %c0_i32_231 = arith.constant 0 : i32
    %520 = vector.broadcast %c0_i32_231 : i32 to vector<1x256xi32>
    %521 = arith.cmpi sge, %519, %520 : vector<1x256xi32>
    %522 = arith.andi %517, %521 : vector<1x256xi1>
    %c-3_i32_232 = arith.constant -3 : i32
    %523 = vector.broadcast %c-3_i32_232 : i32 to vector<1x256xi32>
    %524 = arith.addi %6, %523 : vector<1x256xi32>
    %c16_i32_233 = arith.constant 16 : i32
    %525 = vector.broadcast %c16_i32_233 : i32 to vector<1x256xi32>
    %526 = arith.cmpi slt, %524, %525 : vector<1x256xi32>
    %527 = arith.andi %522, %526 : vector<1x256xi1>
    %528 = vector.extract_strided_slice %4 {offsets = [0, 205], sizes = [32, 51], strides = [1, 1]} : vector<32x256xf32> to vector<32x51xf32>
    %529 = vector.extract_strided_slice %4 {offsets = [0, 0], sizes = [32, 205], strides = [1, 1]} : vector<32x256xf32> to vector<32x205xf32>
    %530 = tpu.concatenate %528, %529 in 1 : vector<32x51xf32>, vector<32x205xf32> -> vector<32x256xf32>
    %cst_234 = arith.constant 0.000000e+00 : f32
    %531 = vector.broadcast %cst_234 : f32 to vector<32x256xf32>
    %532 = vector.shape_cast %527 : vector<1x256xi1> to vector<1x256xi1>
    %533 = vector.broadcast %532 : vector<1x256xi1> to vector<32x256xi1>
    %534 = arith.select %533, %530, %531 : vector<32x256xi1>, vector<32x256xf32>
    %c0_235 = arith.constant 0 : index
    %c0_236 = arith.constant 0 : index
    %c0_237 = arith.constant 0 : index
    %535 = vector.load %arg7[%c0_235, %c0_236, %c0_237] : memref<9x4x32xf32, #tpu.memory_space<vmem>>, vector<1x4x32xf32>
    %536 = vector.shape_cast %535 : vector<1x4x32xf32> to vector<4x32xf32>
    %cst_238 = arith.constant dense<0.000000e+00> : vector<4x256xf32>
    %537 = tpu.matmul %536, %534, %cst_238 {dimension_numbers = #tpu.dot_dimension_numbers<[1], [0], [0], [1], [0, 0, 1, 1], [], []>} : vector<4x32xf32>, vector<32x256xf32>, vector<4x256xf32> -> vector<4x256xf32>
    %538 = arith.addf %508, %537 : vector<4x256xf32>
    %c-3_i32_239 = arith.constant -3 : i32
    %539 = vector.broadcast %c-3_i32_239 : i32 to vector<1x256xi32>
    %540 = arith.addi %5, %539 : vector<1x256xi32>
    %c0_i32_240 = arith.constant 0 : i32
    %541 = vector.broadcast %c0_i32_240 : i32 to vector<1x256xi32>
    %542 = arith.cmpi sge, %540, %541 : vector<1x256xi32>
    %c-3_i32_241 = arith.constant -3 : i32
    %543 = vector.broadcast %c-3_i32_241 : i32 to vector<1x256xi32>
    %544 = arith.addi %5, %543 : vector<1x256xi32>
    %c16_i32_242 = arith.constant 16 : i32
    %545 = vector.broadcast %c16_i32_242 : i32 to vector<1x256xi32>
    %546 = arith.cmpi slt, %544, %545 : vector<1x256xi32>
    %547 = arith.andi %542, %546 : vector<1x256xi1>
    %c0_i32_243 = arith.constant 0 : i32
    %548 = vector.broadcast %c0_i32_243 : i32 to vector<1x256xi32>
    %549 = arith.addi %6, %548 : vector<1x256xi32>
    %c0_i32_244 = arith.constant 0 : i32
    %550 = vector.broadcast %c0_i32_244 : i32 to vector<1x256xi32>
    %551 = arith.cmpi sge, %549, %550 : vector<1x256xi32>
    %552 = arith.andi %547, %551 : vector<1x256xi1>
    %c0_i32_245 = arith.constant 0 : i32
    %553 = vector.broadcast %c0_i32_245 : i32 to vector<1x256xi32>
    %554 = arith.addi %6, %553 : vector<1x256xi32>
    %c16_i32_246 = arith.constant 16 : i32
    %555 = vector.broadcast %c16_i32_246 : i32 to vector<1x256xi32>
    %556 = arith.cmpi slt, %554, %555 : vector<1x256xi32>
    %557 = arith.andi %552, %556 : vector<1x256xi1>
    %558 = vector.extract_strided_slice %4 {offsets = [0, 208], sizes = [32, 48], strides = [1, 1]} : vector<32x256xf32> to vector<32x48xf32>
    %559 = vector.extract_strided_slice %4 {offsets = [0, 0], sizes = [32, 208], strides = [1, 1]} : vector<32x256xf32> to vector<32x208xf32>
    %560 = tpu.concatenate %558, %559 in 1 : vector<32x48xf32>, vector<32x208xf32> -> vector<32x256xf32>
    %cst_247 = arith.constant 0.000000e+00 : f32
    %561 = vector.broadcast %cst_247 : f32 to vector<32x256xf32>
    %562 = vector.shape_cast %557 : vector<1x256xi1> to vector<1x256xi1>
    %563 = vector.broadcast %562 : vector<1x256xi1> to vector<32x256xi1>
    %564 = arith.select %563, %560, %561 : vector<32x256xi1>, vector<32x256xf32>
    %c1_248 = arith.constant 1 : index
    %c0_249 = arith.constant 0 : index
    %c0_250 = arith.constant 0 : index
    %565 = vector.load %arg7[%c1_248, %c0_249, %c0_250] : memref<9x4x32xf32, #tpu.memory_space<vmem>>, vector<1x4x32xf32>
    %566 = vector.shape_cast %565 : vector<1x4x32xf32> to vector<4x32xf32>
    %cst_251 = arith.constant dense<0.000000e+00> : vector<4x256xf32>
    %567 = tpu.matmul %566, %564, %cst_251 {dimension_numbers = #tpu.dot_dimension_numbers<[1], [0], [0], [1], [0, 0, 1, 1], [], []>} : vector<4x32xf32>, vector<32x256xf32>, vector<4x256xf32> -> vector<4x256xf32>
    %568 = arith.addf %538, %567 : vector<4x256xf32>
    %c-3_i32_252 = arith.constant -3 : i32
    %569 = vector.broadcast %c-3_i32_252 : i32 to vector<1x256xi32>
    %570 = arith.addi %5, %569 : vector<1x256xi32>
    %c0_i32_253 = arith.constant 0 : i32
    %571 = vector.broadcast %c0_i32_253 : i32 to vector<1x256xi32>
    %572 = arith.cmpi sge, %570, %571 : vector<1x256xi32>
    %c-3_i32_254 = arith.constant -3 : i32
    %573 = vector.broadcast %c-3_i32_254 : i32 to vector<1x256xi32>
    %574 = arith.addi %5, %573 : vector<1x256xi32>
    %c16_i32_255 = arith.constant 16 : i32
    %575 = vector.broadcast %c16_i32_255 : i32 to vector<1x256xi32>
    %576 = arith.cmpi slt, %574, %575 : vector<1x256xi32>
    %577 = arith.andi %572, %576 : vector<1x256xi1>
    %c3_i32 = arith.constant 3 : i32
    %578 = vector.broadcast %c3_i32 : i32 to vector<1x256xi32>
    %579 = arith.addi %6, %578 : vector<1x256xi32>
    %c0_i32_256 = arith.constant 0 : i32
    %580 = vector.broadcast %c0_i32_256 : i32 to vector<1x256xi32>
    %581 = arith.cmpi sge, %579, %580 : vector<1x256xi32>
    %582 = arith.andi %577, %581 : vector<1x256xi1>
    %c3_i32_257 = arith.constant 3 : i32
    %583 = vector.broadcast %c3_i32_257 : i32 to vector<1x256xi32>
    %584 = arith.addi %6, %583 : vector<1x256xi32>
    %c16_i32_258 = arith.constant 16 : i32
    %585 = vector.broadcast %c16_i32_258 : i32 to vector<1x256xi32>
    %586 = arith.cmpi slt, %584, %585 : vector<1x256xi32>
    %587 = arith.andi %582, %586 : vector<1x256xi1>
    %588 = vector.extract_strided_slice %4 {offsets = [0, 211], sizes = [32, 45], strides = [1, 1]} : vector<32x256xf32> to vector<32x45xf32>
    %589 = vector.extract_strided_slice %4 {offsets = [0, 0], sizes = [32, 211], strides = [1, 1]} : vector<32x256xf32> to vector<32x211xf32>
    %590 = tpu.concatenate %588, %589 in 1 : vector<32x45xf32>, vector<32x211xf32> -> vector<32x256xf32>
    %cst_259 = arith.constant 0.000000e+00 : f32
    %591 = vector.broadcast %cst_259 : f32 to vector<32x256xf32>
    %592 = vector.shape_cast %587 : vector<1x256xi1> to vector<1x256xi1>
    %593 = vector.broadcast %592 : vector<1x256xi1> to vector<32x256xi1>
    %594 = arith.select %593, %590, %591 : vector<32x256xi1>, vector<32x256xf32>
    %c2_260 = arith.constant 2 : index
    %c0_261 = arith.constant 0 : index
    %c0_262 = arith.constant 0 : index
    %595 = vector.load %arg7[%c2_260, %c0_261, %c0_262] : memref<9x4x32xf32, #tpu.memory_space<vmem>>, vector<1x4x32xf32>
    %596 = vector.shape_cast %595 : vector<1x4x32xf32> to vector<4x32xf32>
    %cst_263 = arith.constant dense<0.000000e+00> : vector<4x256xf32>
    %597 = tpu.matmul %596, %594, %cst_263 {dimension_numbers = #tpu.dot_dimension_numbers<[1], [0], [0], [1], [0, 0, 1, 1], [], []>} : vector<4x32xf32>, vector<32x256xf32>, vector<4x256xf32> -> vector<4x256xf32>
    %598 = arith.addf %568, %597 : vector<4x256xf32>
    %c0_i32_264 = arith.constant 0 : i32
    %599 = vector.broadcast %c0_i32_264 : i32 to vector<1x256xi32>
    %600 = arith.addi %5, %599 : vector<1x256xi32>
    %c0_i32_265 = arith.constant 0 : i32
    %601 = vector.broadcast %c0_i32_265 : i32 to vector<1x256xi32>
    %602 = arith.cmpi sge, %600, %601 : vector<1x256xi32>
    %c0_i32_266 = arith.constant 0 : i32
    %603 = vector.broadcast %c0_i32_266 : i32 to vector<1x256xi32>
    %604 = arith.addi %5, %603 : vector<1x256xi32>
    %c16_i32_267 = arith.constant 16 : i32
    %605 = vector.broadcast %c16_i32_267 : i32 to vector<1x256xi32>
    %606 = arith.cmpi slt, %604, %605 : vector<1x256xi32>
    %607 = arith.andi %602, %606 : vector<1x256xi1>
    %c-3_i32_268 = arith.constant -3 : i32
    %608 = vector.broadcast %c-3_i32_268 : i32 to vector<1x256xi32>
    %609 = arith.addi %6, %608 : vector<1x256xi32>
    %c0_i32_269 = arith.constant 0 : i32
    %610 = vector.broadcast %c0_i32_269 : i32 to vector<1x256xi32>
    %611 = arith.cmpi sge, %609, %610 : vector<1x256xi32>
    %612 = arith.andi %607, %611 : vector<1x256xi1>
    %c-3_i32_270 = arith.constant -3 : i32
    %613 = vector.broadcast %c-3_i32_270 : i32 to vector<1x256xi32>
    %614 = arith.addi %6, %613 : vector<1x256xi32>
    %c16_i32_271 = arith.constant 16 : i32
    %615 = vector.broadcast %c16_i32_271 : i32 to vector<1x256xi32>
    %616 = arith.cmpi slt, %614, %615 : vector<1x256xi32>
    %617 = arith.andi %612, %616 : vector<1x256xi1>
    %618 = vector.extract_strided_slice %4 {offsets = [0, 253], sizes = [32, 3], strides = [1, 1]} : vector<32x256xf32> to vector<32x3xf32>
    %619 = vector.extract_strided_slice %4 {offsets = [0, 0], sizes = [32, 253], strides = [1, 1]} : vector<32x256xf32> to vector<32x253xf32>
    %620 = tpu.concatenate %618, %619 in 1 : vector<32x3xf32>, vector<32x253xf32> -> vector<32x256xf32>
    %cst_272 = arith.constant 0.000000e+00 : f32
    %621 = vector.broadcast %cst_272 : f32 to vector<32x256xf32>
    %622 = vector.shape_cast %617 : vector<1x256xi1> to vector<1x256xi1>
    %623 = vector.broadcast %622 : vector<1x256xi1> to vector<32x256xi1>
    %624 = arith.select %623, %620, %621 : vector<32x256xi1>, vector<32x256xf32>
    %c3_273 = arith.constant 3 : index
    %c0_274 = arith.constant 0 : index
    %c0_275 = arith.constant 0 : index
    %625 = vector.load %arg7[%c3_273, %c0_274, %c0_275] : memref<9x4x32xf32, #tpu.memory_space<vmem>>, vector<1x4x32xf32>
    %626 = vector.shape_cast %625 : vector<1x4x32xf32> to vector<4x32xf32>
    %cst_276 = arith.constant dense<0.000000e+00> : vector<4x256xf32>
    %627 = tpu.matmul %626, %624, %cst_276 {dimension_numbers = #tpu.dot_dimension_numbers<[1], [0], [0], [1], [0, 0, 1, 1], [], []>} : vector<4x32xf32>, vector<32x256xf32>, vector<4x256xf32> -> vector<4x256xf32>
    %628 = arith.addf %598, %627 : vector<4x256xf32>
    %c4_277 = arith.constant 4 : index
    %c0_278 = arith.constant 0 : index
    %c0_279 = arith.constant 0 : index
    %629 = vector.load %arg7[%c4_277, %c0_278, %c0_279] : memref<9x4x32xf32, #tpu.memory_space<vmem>>, vector<1x4x32xf32>
    %630 = vector.shape_cast %629 : vector<1x4x32xf32> to vector<4x32xf32>
    %cst_280 = arith.constant dense<0.000000e+00> : vector<4x256xf32>
    %631 = tpu.matmul %630, %4, %cst_280 {dimension_numbers = #tpu.dot_dimension_numbers<[1], [0], [0], [1], [0, 0, 1, 1], [], []>} : vector<4x32xf32>, vector<32x256xf32>, vector<4x256xf32> -> vector<4x256xf32>
    %632 = arith.addf %628, %631 : vector<4x256xf32>
    %c0_i32_281 = arith.constant 0 : i32
    %633 = vector.broadcast %c0_i32_281 : i32 to vector<1x256xi32>
    %634 = arith.addi %5, %633 : vector<1x256xi32>
    %c0_i32_282 = arith.constant 0 : i32
    %635 = vector.broadcast %c0_i32_282 : i32 to vector<1x256xi32>
    %636 = arith.cmpi sge, %634, %635 : vector<1x256xi32>
    %c0_i32_283 = arith.constant 0 : i32
    %637 = vector.broadcast %c0_i32_283 : i32 to vector<1x256xi32>
    %638 = arith.addi %5, %637 : vector<1x256xi32>
    %c16_i32_284 = arith.constant 16 : i32
    %639 = vector.broadcast %c16_i32_284 : i32 to vector<1x256xi32>
    %640 = arith.cmpi slt, %638, %639 : vector<1x256xi32>
    %641 = arith.andi %636, %640 : vector<1x256xi1>
    %c3_i32_285 = arith.constant 3 : i32
    %642 = vector.broadcast %c3_i32_285 : i32 to vector<1x256xi32>
    %643 = arith.addi %6, %642 : vector<1x256xi32>
    %c0_i32_286 = arith.constant 0 : i32
    %644 = vector.broadcast %c0_i32_286 : i32 to vector<1x256xi32>
    %645 = arith.cmpi sge, %643, %644 : vector<1x256xi32>
    %646 = arith.andi %641, %645 : vector<1x256xi1>
    %c3_i32_287 = arith.constant 3 : i32
    %647 = vector.broadcast %c3_i32_287 : i32 to vector<1x256xi32>
    %648 = arith.addi %6, %647 : vector<1x256xi32>
    %c16_i32_288 = arith.constant 16 : i32
    %649 = vector.broadcast %c16_i32_288 : i32 to vector<1x256xi32>
    %650 = arith.cmpi slt, %648, %649 : vector<1x256xi32>
    %651 = arith.andi %646, %650 : vector<1x256xi1>
    %652 = vector.extract_strided_slice %4 {offsets = [0, 3], sizes = [32, 253], strides = [1, 1]} : vector<32x256xf32> to vector<32x253xf32>
    %653 = vector.extract_strided_slice %4 {offsets = [0, 0], sizes = [32, 3], strides = [1, 1]} : vector<32x256xf32> to vector<32x3xf32>
    %654 = tpu.concatenate %652, %653 in 1 : vector<32x253xf32>, vector<32x3xf32> -> vector<32x256xf32>
    %cst_289 = arith.constant 0.000000e+00 : f32
    %655 = vector.broadcast %cst_289 : f32 to vector<32x256xf32>
    %656 = vector.shape_cast %651 : vector<1x256xi1> to vector<1x256xi1>
    %657 = vector.broadcast %656 : vector<1x256xi1> to vector<32x256xi1>
    %658 = arith.select %657, %654, %655 : vector<32x256xi1>, vector<32x256xf32>
    %c5_290 = arith.constant 5 : index
    %c0_291 = arith.constant 0 : index
    %c0_292 = arith.constant 0 : index
    %659 = vector.load %arg7[%c5_290, %c0_291, %c0_292] : memref<9x4x32xf32, #tpu.memory_space<vmem>>, vector<1x4x32xf32>
    %660 = vector.shape_cast %659 : vector<1x4x32xf32> to vector<4x32xf32>
    %cst_293 = arith.constant dense<0.000000e+00> : vector<4x256xf32>
    %661 = tpu.matmul %660, %658, %cst_293 {dimension_numbers = #tpu.dot_dimension_numbers<[1], [0], [0], [1], [0, 0, 1, 1], [], []>} : vector<4x32xf32>, vector<32x256xf32>, vector<4x256xf32> -> vector<4x256xf32>
    %662 = arith.addf %632, %661 : vector<4x256xf32>
    %c3_i32_294 = arith.constant 3 : i32
    %663 = vector.broadcast %c3_i32_294 : i32 to vector<1x256xi32>
    %664 = arith.addi %5, %663 : vector<1x256xi32>
    %c0_i32_295 = arith.constant 0 : i32
    %665 = vector.broadcast %c0_i32_295 : i32 to vector<1x256xi32>
    %666 = arith.cmpi sge, %664, %665 : vector<1x256xi32>
    %c3_i32_296 = arith.constant 3 : i32
    %667 = vector.broadcast %c3_i32_296 : i32 to vector<1x256xi32>
    %668 = arith.addi %5, %667 : vector<1x256xi32>
    %c16_i32_297 = arith.constant 16 : i32
    %669 = vector.broadcast %c16_i32_297 : i32 to vector<1x256xi32>
    %670 = arith.cmpi slt, %668, %669 : vector<1x256xi32>
    %671 = arith.andi %666, %670 : vector<1x256xi1>
    %c-3_i32_298 = arith.constant -3 : i32
    %672 = vector.broadcast %c-3_i32_298 : i32 to vector<1x256xi32>
    %673 = arith.addi %6, %672 : vector<1x256xi32>
    %c0_i32_299 = arith.constant 0 : i32
    %674 = vector.broadcast %c0_i32_299 : i32 to vector<1x256xi32>
    %675 = arith.cmpi sge, %673, %674 : vector<1x256xi32>
    %676 = arith.andi %671, %675 : vector<1x256xi1>
    %c-3_i32_300 = arith.constant -3 : i32
    %677 = vector.broadcast %c-3_i32_300 : i32 to vector<1x256xi32>
    %678 = arith.addi %6, %677 : vector<1x256xi32>
    %c16_i32_301 = arith.constant 16 : i32
    %679 = vector.broadcast %c16_i32_301 : i32 to vector<1x256xi32>
    %680 = arith.cmpi slt, %678, %679 : vector<1x256xi32>
    %681 = arith.andi %676, %680 : vector<1x256xi1>
    %682 = vector.extract_strided_slice %4 {offsets = [0, 45], sizes = [32, 211], strides = [1, 1]} : vector<32x256xf32> to vector<32x211xf32>
    %683 = vector.extract_strided_slice %4 {offsets = [0, 0], sizes = [32, 45], strides = [1, 1]} : vector<32x256xf32> to vector<32x45xf32>
    %684 = tpu.concatenate %682, %683 in 1 : vector<32x211xf32>, vector<32x45xf32> -> vector<32x256xf32>
    %cst_302 = arith.constant 0.000000e+00 : f32
    %685 = vector.broadcast %cst_302 : f32 to vector<32x256xf32>
    %686 = vector.shape_cast %681 : vector<1x256xi1> to vector<1x256xi1>
    %687 = vector.broadcast %686 : vector<1x256xi1> to vector<32x256xi1>
    %688 = arith.select %687, %684, %685 : vector<32x256xi1>, vector<32x256xf32>
    %c6_303 = arith.constant 6 : index
    %c0_304 = arith.constant 0 : index
    %c0_305 = arith.constant 0 : index
    %689 = vector.load %arg7[%c6_303, %c0_304, %c0_305] : memref<9x4x32xf32, #tpu.memory_space<vmem>>, vector<1x4x32xf32>
    %690 = vector.shape_cast %689 : vector<1x4x32xf32> to vector<4x32xf32>
    %cst_306 = arith.constant dense<0.000000e+00> : vector<4x256xf32>
    %691 = tpu.matmul %690, %688, %cst_306 {dimension_numbers = #tpu.dot_dimension_numbers<[1], [0], [0], [1], [0, 0, 1, 1], [], []>} : vector<4x32xf32>, vector<32x256xf32>, vector<4x256xf32> -> vector<4x256xf32>
    %692 = arith.addf %662, %691 : vector<4x256xf32>
    %c3_i32_307 = arith.constant 3 : i32
    %693 = vector.broadcast %c3_i32_307 : i32 to vector<1x256xi32>
    %694 = arith.addi %5, %693 : vector<1x256xi32>
    %c0_i32_308 = arith.constant 0 : i32
    %695 = vector.broadcast %c0_i32_308 : i32 to vector<1x256xi32>
    %696 = arith.cmpi sge, %694, %695 : vector<1x256xi32>
    %c3_i32_309 = arith.constant 3 : i32
    %697 = vector.broadcast %c3_i32_309 : i32 to vector<1x256xi32>
    %698 = arith.addi %5, %697 : vector<1x256xi32>
    %c16_i32_310 = arith.constant 16 : i32
    %699 = vector.broadcast %c16_i32_310 : i32 to vector<1x256xi32>
    %700 = arith.cmpi slt, %698, %699 : vector<1x256xi32>
    %701 = arith.andi %696, %700 : vector<1x256xi1>
    %c0_i32_311 = arith.constant 0 : i32
    %702 = vector.broadcast %c0_i32_311 : i32 to vector<1x256xi32>
    %703 = arith.addi %6, %702 : vector<1x256xi32>
    %c0_i32_312 = arith.constant 0 : i32
    %704 = vector.broadcast %c0_i32_312 : i32 to vector<1x256xi32>
    %705 = arith.cmpi sge, %703, %704 : vector<1x256xi32>
    %706 = arith.andi %701, %705 : vector<1x256xi1>
    %c0_i32_313 = arith.constant 0 : i32
    %707 = vector.broadcast %c0_i32_313 : i32 to vector<1x256xi32>
    %708 = arith.addi %6, %707 : vector<1x256xi32>
    %c16_i32_314 = arith.constant 16 : i32
    %709 = vector.broadcast %c16_i32_314 : i32 to vector<1x256xi32>
    %710 = arith.cmpi slt, %708, %709 : vector<1x256xi32>
    %711 = arith.andi %706, %710 : vector<1x256xi1>
    %712 = vector.extract_strided_slice %4 {offsets = [0, 48], sizes = [32, 208], strides = [1, 1]} : vector<32x256xf32> to vector<32x208xf32>
    %713 = vector.extract_strided_slice %4 {offsets = [0, 0], sizes = [32, 48], strides = [1, 1]} : vector<32x256xf32> to vector<32x48xf32>
    %714 = tpu.concatenate %712, %713 in 1 : vector<32x208xf32>, vector<32x48xf32> -> vector<32x256xf32>
    %cst_315 = arith.constant 0.000000e+00 : f32
    %715 = vector.broadcast %cst_315 : f32 to vector<32x256xf32>
    %716 = vector.shape_cast %711 : vector<1x256xi1> to vector<1x256xi1>
    %717 = vector.broadcast %716 : vector<1x256xi1> to vector<32x256xi1>
    %718 = arith.select %717, %714, %715 : vector<32x256xi1>, vector<32x256xf32>
    %c7_316 = arith.constant 7 : index
    %c0_317 = arith.constant 0 : index
    %c0_318 = arith.constant 0 : index
    %719 = vector.load %arg7[%c7_316, %c0_317, %c0_318] : memref<9x4x32xf32, #tpu.memory_space<vmem>>, vector<1x4x32xf32>
    %720 = vector.shape_cast %719 : vector<1x4x32xf32> to vector<4x32xf32>
    %cst_319 = arith.constant dense<0.000000e+00> : vector<4x256xf32>
    %721 = tpu.matmul %720, %718, %cst_319 {dimension_numbers = #tpu.dot_dimension_numbers<[1], [0], [0], [1], [0, 0, 1, 1], [], []>} : vector<4x32xf32>, vector<32x256xf32>, vector<4x256xf32> -> vector<4x256xf32>
    %722 = arith.addf %692, %721 : vector<4x256xf32>
    %c3_i32_320 = arith.constant 3 : i32
    %723 = vector.broadcast %c3_i32_320 : i32 to vector<1x256xi32>
    %724 = arith.addi %5, %723 : vector<1x256xi32>
    %c0_i32_321 = arith.constant 0 : i32
    %725 = vector.broadcast %c0_i32_321 : i32 to vector<1x256xi32>
    %726 = arith.cmpi sge, %724, %725 : vector<1x256xi32>
    %c3_i32_322 = arith.constant 3 : i32
    %727 = vector.broadcast %c3_i32_322 : i32 to vector<1x256xi32>
    %728 = arith.addi %5, %727 : vector<1x256xi32>
    %c16_i32_323 = arith.constant 16 : i32
    %729 = vector.broadcast %c16_i32_323 : i32 to vector<1x256xi32>
    %730 = arith.cmpi slt, %728, %729 : vector<1x256xi32>
    %731 = arith.andi %726, %730 : vector<1x256xi1>
    %c3_i32_324 = arith.constant 3 : i32
    %732 = vector.broadcast %c3_i32_324 : i32 to vector<1x256xi32>
    %733 = arith.addi %6, %732 : vector<1x256xi32>
    %c0_i32_325 = arith.constant 0 : i32
    %734 = vector.broadcast %c0_i32_325 : i32 to vector<1x256xi32>
    %735 = arith.cmpi sge, %733, %734 : vector<1x256xi32>
    %736 = arith.andi %731, %735 : vector<1x256xi1>
    %c3_i32_326 = arith.constant 3 : i32
    %737 = vector.broadcast %c3_i32_326 : i32 to vector<1x256xi32>
    %738 = arith.addi %6, %737 : vector<1x256xi32>
    %c16_i32_327 = arith.constant 16 : i32
    %739 = vector.broadcast %c16_i32_327 : i32 to vector<1x256xi32>
    %740 = arith.cmpi slt, %738, %739 : vector<1x256xi32>
    %741 = arith.andi %736, %740 : vector<1x256xi1>
    %742 = vector.extract_strided_slice %4 {offsets = [0, 51], sizes = [32, 205], strides = [1, 1]} : vector<32x256xf32> to vector<32x205xf32>
    %743 = vector.extract_strided_slice %4 {offsets = [0, 0], sizes = [32, 51], strides = [1, 1]} : vector<32x256xf32> to vector<32x51xf32>
    %744 = tpu.concatenate %742, %743 in 1 : vector<32x205xf32>, vector<32x51xf32> -> vector<32x256xf32>
    %cst_328 = arith.constant 0.000000e+00 : f32
    %745 = vector.broadcast %cst_328 : f32 to vector<32x256xf32>
    %746 = vector.shape_cast %741 : vector<1x256xi1> to vector<1x256xi1>
    %747 = vector.broadcast %746 : vector<1x256xi1> to vector<32x256xi1>
    %748 = arith.select %747, %744, %745 : vector<32x256xi1>, vector<32x256xf32>
    %c8_329 = arith.constant 8 : index
    %c0_330 = arith.constant 0 : index
    %c0_331 = arith.constant 0 : index
    %749 = vector.load %arg7[%c8_329, %c0_330, %c0_331] : memref<9x4x32xf32, #tpu.memory_space<vmem>>, vector<1x4x32xf32>
    %750 = vector.shape_cast %749 : vector<1x4x32xf32> to vector<4x32xf32>
    %cst_332 = arith.constant dense<0.000000e+00> : vector<4x256xf32>
    %751 = tpu.matmul %750, %748, %cst_332 {dimension_numbers = #tpu.dot_dimension_numbers<[1], [0], [0], [1], [0, 0, 1, 1], [], []>} : vector<4x32xf32>, vector<32x256xf32>, vector<4x256xf32> -> vector<4x256xf32>
    %752 = arith.addf %722, %751 : vector<4x256xf32>
    %c12 = arith.constant 12 : index
    %c0_333 = arith.constant 0 : index
    %753 = vector.load %arg12[%c12, %c0_333] : memref<16x256xf32, #tpu.memory_space<vmem>>, vector<4x256xf32>
    %754 = arith.addf %753, %752 : vector<4x256xf32>
    %c12_334 = arith.constant 12 : index
    %c0_335 = arith.constant 0 : index
    %755 = vector.load %arg12[%c12_334, %c0_335] : memref<16x256xf32, #tpu.memory_space<vmem>>, vector<4x256xf32>
    tpu.vector_store %arg12[%c12_334, %c0_335], %754 {strides = array<i32>} : memref<16x256xf32, #tpu.memory_space<vmem>>, vector<4x256xf32>,
    %c0_336 = arith.constant 0 : index
    %c0_337 = arith.constant 0 : index
    %756 = vector.load %arg8[%c0_336, %c0_337] : memref<4x32xf32, #tpu.memory_space<vmem>>, vector<4x32xf32>
    %cst_338 = arith.constant dense<0.000000e+00> : vector<4x256xf32>
    %757 = tpu.matmul %756, %4, %cst_338 {dimension_numbers = #tpu.dot_dimension_numbers<[1], [0], [0], [1], [0, 0, 1, 1], [], []>} : vector<4x32xf32>, vector<32x256xf32>, vector<4x256xf32> -> vector<4x256xf32>
    %c0_339 = arith.constant 0 : index
    %c0_340 = arith.constant 0 : index
    %758 = vector.load %arg13[%c0_339, %c0_340] : memref<4x1xf32, #tpu.memory_space<vmem>>, vector<4x1xf32>
    %cst_341 = arith.constant dense<0.000000e+00> : vector<4xf32>
    %759 = vector.multi_reduction <add>, %757, %cst_341 [1] : vector<4x256xf32> to vector<4xf32>
    %760 = vector.shape_cast %759 : vector<4xf32> to vector<4x1xf32>
    %761 = arith.addf %758, %760 : vector<4x1xf32>
    %c0_342 = arith.constant 0 : index
    %c0_343 = arith.constant 0 : index
    %762 = vector.load %arg13[%c0_342, %c0_343] : memref<4x1xf32, #tpu.memory_space<vmem>>, vector<4x1xf32>
    tpu.vector_store %arg13[%c0_342, %c0_343], %761 {strides = array<i32>} : memref<4x1xf32, #tpu.memory_space<vmem>>, vector<4x1xf32>,
    %c0_i32_344 = arith.constant 0 : i32
    %763 = arith.cmpi eq, %arg1, %c0_i32_344 : i32
    %764 = arith.extui %763 : i1 to i32
    %c0_i32_345 = arith.constant 0 : i32
    %765 = arith.cmpi ne, %764, %c0_i32_345 : i32
    scf.if %765 {
      %c0_346 = arith.constant 0 : index
      %c0_347 = arith.constant 0 : index
      %766 = vector.load %arg9[%c0_346, %c0_347] : memref<20x1xf32, #tpu.memory_space<vmem>>, vector<20x1xf32>
      %c0_348 = arith.constant 0 : index
      %c0_349 = arith.constant 0 : index
      %767 = vector.load %arg10[%c0_348, %c0_349] : memref<20x1xf32, #tpu.memory_space<vmem>>, vector<20x1xf32>
      %c0_350 = arith.constant 0 : index
      %c0_351 = arith.constant 0 : index
      %768 = vector.load %arg12[%c0_350, %c0_351] : memref<16x256xf32, #tpu.memory_space<vmem>>, vector<16x256xf32>
      %769 = vector.extract_strided_slice %766 {offsets = [0, 0], sizes = [16, 1], strides = [1, 1]} : vector<20x1xf32> to vector<16x1xf32>
      %770 = vector.broadcast %769 : vector<16x1xf32> to vector<16x256xf32>
      %771 = arith.mulf %768, %770 : vector<16x256xf32>
      %772 = vector.extract_strided_slice %767 {offsets = [0, 0], sizes = [16, 1], strides = [1, 1]} : vector<20x1xf32> to vector<16x1xf32>
      %773 = vector.broadcast %772 : vector<16x1xf32> to vector<16x256xf32>
      %774 = arith.addf %771, %773 : vector<16x256xf32>
      %cst_352 = arith.constant 0.000000e+00 : f32
      %775 = vector.broadcast %cst_352 : f32 to vector<16x256xf32>
      %776 = arith.maximumf %774, %775 : vector<16x256xf32>
      %c0_353 = arith.constant 0 : index
      %c0_354 = arith.constant 0 : index
      %c0_355 = arith.constant 0 : index
      %777 = vector.load %arg11[%c0_353, %c0_354, %c0_355] : memref<1x20x256xf32, #tpu.memory_space<vmem>>, vector<1x16x256xf32>
      %778 = vector.shape_cast %777 : vector<1x16x256xf32> to vector<16x256xf32>
      %779 = vector.shape_cast %776 : vector<16x256xf32> to vector<1x16x256xf32>
      tpu.vector_store %arg11[%c0_353, %c0_354, %c0_355], %779 {strides = array<i32>} : memref<1x20x256xf32, #tpu.memory_space<vmem>>, vector<1x16x256xf32>,
      %c0_356 = arith.constant 0 : index
      %c0_357 = arith.constant 0 : index
      %780 = vector.load %arg13[%c0_356, %c0_357] : memref<4x1xf32, #tpu.memory_space<vmem>>, vector<4x1xf32>
      %cst_358 = arith.constant 3.906250e-03 : f32
      %781 = vector.broadcast %cst_358 : f32 to vector<4x1xf32>
      %782 = arith.mulf %780, %781 : vector<4x1xf32>
      %783 = vector.extract_strided_slice %766 {offsets = [16, 0], sizes = [4, 1], strides = [1, 1]} : vector<20x1xf32> to vector<4x1xf32>
      %784 = arith.mulf %782, %783 : vector<4x1xf32>
      %785 = vector.extract_strided_slice %767 {offsets = [16, 0], sizes = [4, 1], strides = [1, 1]} : vector<20x1xf32> to vector<4x1xf32>
      %786 = arith.addf %784, %785 : vector<4x1xf32>
      %cst_359 = arith.constant 0.000000e+00 : f32
      %787 = vector.broadcast %cst_359 : f32 to vector<4x1xf32>
      %788 = arith.maximumf %786, %787 : vector<4x1xf32>
      %789 = vector.shape_cast %788 : vector<4x1xf32> to vector<4x1xf32>
      %790 = vector.broadcast %789 : vector<4x1xf32> to vector<4x256xf32>
      %c0_360 = arith.constant 0 : index
      %c16 = arith.constant 16 : index
      %c0_361 = arith.constant 0 : index
      %791 = vector.load %arg11[%c0_360, %c16, %c0_361] : memref<1x20x256xf32, #tpu.memory_space<vmem>>, vector<1x4x256xf32>
      %792 = vector.shape_cast %791 : vector<1x4x256xf32> to vector<4x256xf32>
      %793 = vector.shape_cast %790 : vector<4x256xf32> to vector<1x4x256xf32>
      tpu.vector_store %arg11[%c0_360, %c16, %c0_361], %793 {strides = array<i32>} : memref<1x20x256xf32, #tpu.memory_space<vmem>>, vector<1x4x256xf32>,
    } else {
    }
    return
  }
  func.func @transform_0(%arg0: i32, %arg1: i32) -> (i32, i32) {
    %c0_i32 = arith.constant 0 : i32
    %c0_i32_0 = arith.constant 0 : i32
    %c0_i32_1 = arith.constant 0 : i32
    return %c0_i32, %c0_i32_0 : i32, i32
  }
  func.func @transform_1(%arg0: i32, %arg1: i32) -> (i32, i32, i32) {
    %c0_i32 = arith.constant 0 : i32
    %c0_i32_0 = arith.constant 0 : i32
    return %arg0, %arg1, %c0_i32 : i32, i32, i32
  }
  func.func @transform_2(%arg0: i32, %arg1: i32) -> (i32, i32) {
    %c0_i32 = arith.constant 0 : i32
    %c0_i32_0 = arith.constant 0 : i32
    return %c0_i32, %arg1 : i32, i32
  }
  func.func @transform_3(%arg0: i32, %arg1: i32) -> (i32, i32, i32) {
    %c0_i32 = arith.constant 0 : i32
    %c0_i32_0 = arith.constant 0 : i32
    %c0_i32_1 = arith.constant 0 : i32
    return %c0_i32, %c0_i32_0, %arg1 : i32, i32, i32
  }
  func.func @transform_4(%arg0: i32, %arg1: i32) -> (i32, i32, i32) {
    %c0_i32 = arith.constant 0 : i32
    %c0_i32_0 = arith.constant 0 : i32
    %c0_i32_1 = arith.constant 0 : i32
    return %c0_i32, %c0_i32_0, %arg1 : i32, i32, i32
  }
  func.func @transform_5(%arg0: i32, %arg1: i32) -> (i32, i32, i32) {
    %c0_i32 = arith.constant 0 : i32
    %c0_i32_0 = arith.constant 0 : i32
    %c0_i32_1 = arith.constant 0 : i32
    return %c0_i32, %c0_i32_0, %arg1 : i32, i32, i32
  }
  func.func @transform_6(%arg0: i32, %arg1: i32) -> (i32, i32) {
    %c0_i32 = arith.constant 0 : i32
    %c0_i32_0 = arith.constant 0 : i32
    return %c0_i32, %arg1 : i32, i32
  }
  func.func @transform_7(%arg0: i32, %arg1: i32) -> (i32, i32) {
    %c0_i32 = arith.constant 0 : i32
    %c0_i32_0 = arith.constant 0 : i32
    %c0_i32_1 = arith.constant 0 : i32
    return %c0_i32, %c0_i32_0 : i32, i32
  }
  func.func @transform_8(%arg0: i32, %arg1: i32) -> (i32, i32) {
    %c0_i32 = arith.constant 0 : i32
    %c0_i32_0 = arith.constant 0 : i32
    %c0_i32_1 = arith.constant 0 : i32
    return %c0_i32, %c0_i32_0 : i32, i32
  }
  func.func @transform_9(%arg0: i32, %arg1: i32) -> (i32, i32, i32) {
    %c0_i32 = arith.constant 0 : i32
    %c0_i32_0 = arith.constant 0 : i32
    %c0_i32_1 = arith.constant 0 : i32
    return %arg0, %c0_i32, %c0_i32_0 : i32, i32, i32
  }
}

</mosaic_0001>

<bundles_post_ra>
// kernel: tpu_custom_call.1
= control target key start
LH: loop header
LB: loop body
LE: loop exit
PB: predicated region body
PF: predicated region fallthrough
CT: control target
= control target key end

     0   :  { %s7977_s0 = inlined_call_operand.vmem [shape: s32[2,256], index: 0, kind: input, shape index: {}]   ;;  %s7978_s1 = inlined_call_operand.hbm [shape: f32[2,32,256], index: 1, kind: input, shape index: {}]   ;;  %s7979_s2 = inlined_call_operand.vmem [shape: f32[4,32], index: 2, kind: input, shape index: {}]   ;;  %s7980_s3 = inlined_call_operand.vmem [shape: f32[9,4,32], index: 3, kind: input, shape index: {}]   ;;  %s7981_s4 = inlined_call_operand.hbm [shape: f32[9,4,32], index: 4, kind: input, shape index: {}]   ;;  %s7982_s5 = inlined_call_operand.hbm [shape: f32[9,4,32], index: 5, kind: input, shape index: {}]   ;;  %s7983_s6 = inlined_call_operand.vmem [shape: f32[4,32], index: 6, kind: input, shape index: {}]   ;;  %s7984_s7 = inlined_call_operand.vmem [shape: f32[20,1], index: 7, kind: input, shape index: {}]   ;;  %s7985_s8 = inlined_call_operand.vmem [shape: f32[20,1], index: 8, kind: input, shape index: {}]   ;;  %s7986_s9 = inlined_call_operand.vmem [shape: f32[2,20,256], index: 9, kind: output, shape index: {}]  }
   0x1   :  { %7999 = sst [smem:[#allocation11_spill]] %s7986_s9 }
   0x2   :  { %14 = vsyncpa [#allocation5], 0 }
   0x3   :  { %16 = vsyncpa [#allocation5 + $0x1], 0 }
   0x4   :  { %17 = vsyncpa [#allocation7], 0  ;;  %s5879_s30 = smov 0   ;;  %s5881_s10 = smov 0  }
   0x5   :  { %s5883_s11 = smov 0   ;;  %s5885_s12 = smov 0  }
   0x6   :  { %s5887_s13 = smov 0   ;;  %s5889_s14 = smov 0  }
   0x7 LB: > { %s4427_s15 = sadd.s32 4294967295, %s5794_s14   ;;  %p78_p0 = scmp.ne.s32.totalorder %s5778_s10, %s5774_s30  ;;  %s5794_s14 = sphi %s5889_s14, %s23_s14   ;;  %s5790_s13 = sphi %s5887_s13, %s8209_s13   ;;  %s5786_s12 = sphi %s5885_s12, %s8208_s12   ;;  %s5782_s11 = sphi %s5883_s11, %s8207_s11   ;;  %s5778_s10 = sphi %s5881_s10, %s8206_s10   ;;  %s5774_s30 = sphi %s5879_s30, %s8205_s30  }
   0x8   : > { %p5909_p1 = scmp.eq.s32.totalorder %s4427_s15, 0  ;;  %p4429_p2 = scmp.ge.s32.totalorder %s5794_s14, 1 }
   0x9   : > { %p287_p3 = scmp.lt.s32.totalorder %s5794_s14, 3  ;;  %s5796_s19 = smov [#allocation6]  }
   0xa   : > { %s8000_s16 = scalar_select %p5909_p1, 1, 0 }
   0xb   : > { %p5917_p4 = por %p5909_p1, %p78_p0  ;;  %p5921_p5 = pnand %p4429_p2, %p287_p3 }
   0xc   : > { %s318_s20 = sshll.u32 %s5796_s19, 4  ;;  %s5797_s22 = smov [#allocation8]   ;;  %s319_s20 = int_to_ptr.vmem [resolvable:$true] %s318_s20 }
   0xd   : > { %s8001_s17 = scalar_select %p5917_p4, 1, 0 }
   0xe   : > { %s8002_s18 = scalar_select %p5921_p5, 1, 0 }
   0xf   : > { %p5064_p6 = pneg %p5921_p5  ;;  %s333_s23 = sshll.u32 %s5797_s22, 4  ;;  %s5933_s23 = int_to_ptr.vmem [resolvable:$true] %s333_s23 }
  0x10   : > { %s5654_s26 = scalar_lea.hbm %s7981_s4, 576 }
  0x11   : > { %p5929_p7 = pnand %p5064_p6, %p5909_p1  ;;  %p5655_p8 = scmp.ne.s32.totalorder %s7981_s4, %s5654_s26 }
  0x12   : > { %p5661_p12 = scmp.lt.u32.totalorder %s5654_s26, %s7981_s4 }
  0x13   : > { %p5656_p9 = pneg %p5929_p7 }
  0x15   : > { %p5657_p10 = pnand %p5656_p9, %p5655_p8 }
  0x17   : > { %p5658_p11 = pneg %p5657_p10 }
  0x19   : > { %p5663_p13 = pnand %p5661_p12, %p5658_p11 }
  0x1b   : > { %5666 = shalt.err (!%p5663_p13)
}
  0x1c   : > { %s5667_s15 = scalar_lea.vmem %s319_s20, 576  ;;  %p5675_p6 = scmp.lt.s32.totalorder %s319_s20, %s319_s20 }
  0x1d   : > { %p5668_p0 = scmp.ne.s32.totalorder %s319_s20, %s5667_s15  ;;  %p5676_p1 = scmp.lt.s32.totalorder %s5667_s15, %s5667_s15 }
  0x1f   : > { %p5670_p2 = pnand %p5668_p0, %p5656_p9  ;;  %p5677_p4 = por %p5676_p1, %p5675_p6 }
  0x21   : > { %p5671_p3 = pneg %p5670_p2 }
  0x23   : > { %p5678_p5 = pnand %p5677_p4, %p5671_p3 }
  0x25   : > { %5681 = shalt.err (!%p5678_p5)
}
  0x26   : > { %s5798_s19 = smov 64   ;;  %s5799_s22 = smov 4  }
  0x27   : > { %5067 = dma.hbm_to_vmem [thread:$0]  (!%p5929_p7), %s7981_s4, 576, %s319_s20, [#allocation7], %s5798_s19, %s5798_s19, %s5799_s22  }
  0x28   : > { %s5682_s28 = scalar_lea.hbm %s7982_s5, 576 }
  0x29   : > { %p5683_p8 = scmp.ne.s32.totalorder %s7982_s5, %s5682_s28  ;;  %p5689_p5 = scmp.lt.u32.totalorder %s5682_s28, %s7982_s5 }
  0x2b   : > { %p5685_p1 = pnand %p5683_p8, %p5656_p9 }
  0x2d   : > { %p5686_p4 = pneg %p5685_p1 }
  0x2f   : > { %p5691_p10 = pnand %p5689_p5, %p5686_p4 }
  0x31   : > { %5694 = shalt.err (!%p5691_p10)
}
  0x32   : > { %s5695_s20 = scalar_lea.vmem %s5933_s23, 576  ;;  %p5703_p0 = scmp.lt.s32.totalorder %s5933_s23, %s5933_s23 }
  0x33   : > { %p5696_p11 = scmp.ne.s32.totalorder %s5933_s23, %s5695_s20  ;;  %p5704_p2 = scmp.lt.s32.totalorder %s5695_s20, %s5695_s20 }
  0x35   : > { %p5698_p12 = pnand %p5696_p11, %p5656_p9  ;;  %p5705_p3 = por %p5704_p2, %p5703_p0 }
  0x37   : > { %p5699_p13 = pneg %p5698_p12 }
  0x39   : > { %p5706_p6 = pnand %p5705_p3, %p5699_p13 }
  0x3b   : > { %5709 = shalt.err (!%p5706_p6)
}
  0x3c   : > { %5070 = dma.hbm_to_vmem [thread:$0]  (!%p5929_p7), %s7982_s5, 576, %s5933_s23, [#allocation7], %s5798_s19, %s5798_s19, %s5799_s22  }
  0x3d   : > { %s35_s25 = sadd.s32 1, %s5790_s13  ;;  %s65_s26 = sadd.s32 1, %s5782_s11 }
  0x3e   : > { %p37_p9 = scmp.ge.s32.totalorder %s35_s25, 2  ;;  %p72_p8 = scmp.ne.s32.totalorder %s5782_s11, %s5778_s10 }
  0x3f   : > { %p73_p1 = scmp.eq.s32.totalorder %s5794_s14, 0  ;;  %p5077_p4 = scmp.lt.s32.totalorder %s5794_s14, 2 }
  0x40   : > { %s8211_s25 = smov (%p37_p9, %s35_s25), 0  ;;  %s360_s21 = sand.u32 1, %s5782_s11  }
  0x41   : > { %p74_p5 = por %p73_p1, %p72_p8  ;;  %s60_s27 = ssub.s32 %s5790_s13, %s8211_s25 }
  0x42   : > { %p63_p10 = scmp.eq.s32.totalorder %s60_s27, 0  ;;  %s4436_s28 = sshll.u32 %s360_s21, 6 }
  0x43   : > { %s4676_s29 = sshll.u32 %s5790_s13, 10  ;;  %s364_s22 = scalar_lea.vmem [#allocation4], %s4436_s28 }
  0x44   : > { %s5995_s30 = scalar_select %p63_p10, %s5782_s11, %s65_s26  }
  0x45   : > { %s6000_s19 = scalar_lea.hbm %s7978_s1, %s4676_s29  ;;  %s374_s20 = sshll.u32 %s364_s22, 4  ;;  %s6002_s20 = int_to_ptr.vmem [resolvable:$true] %s374_s20 }
  0x46   : > { %p6006_p7 = pnand %p5077_p4, %p74_p5  ;;  %s6010_s24 = scalar_lea.sflag [#allocation5], %s360_s21 }
  0x47   : > { %s5710_s26 = scalar_lea.hbm %s6000_s19, 1024  ;;  %s5715_s29 = scalar_lea.hbm %s7978_s1, 2048 }
  0x48   : > { %p5711_p11 = scmp.ne.s32.totalorder %s6000_s19, %s5710_s26  ;;  %p5712_p12 = pneg %p6006_p7 }
  0x49   : > { %p5716_p2 = scmp.lt.u32.totalorder %s6000_s19, %s7978_s1  ;;  %p5717_p3 = scmp.lt.u32.totalorder %s5715_s29, %s5710_s26 }
  0x4a   : > { %p5713_p13 = pnand %p5712_p12, %p5711_p11  ;;  %p5719_p9 = scmp.lt.u32.totalorder %s5710_s26, %s6000_s19 }
  0x4b   : > { %p5718_p6 = por %p5717_p3, %p5716_p2 }
  0x4c   : > { %p5714_p0 = pneg %p5713_p13 }
  0x4d   : > { %p5720_p8 = por %p5719_p9, %p5718_p6 }
  0x4f   : > { %p5721_p1 = pnand %p5720_p8, %p5714_p0 }
  0x51   : > { %5724 = shalt.err (!%p5721_p1)
}
  0x52   : > { %s5725_s21 = scalar_lea.vmem %s6002_s20, 1024  ;;  %s5800_s22 = smov [#allocation4]  }
  0x53   : > { %p5726_p4 = scmp.ne.s32.totalorder %s6002_s20, %s5725_s21  ;;  %s5730_s27 = sshll.u32 %s5800_s22, 4  ;;  %s5731_s27 = int_to_ptr.vmem [resolvable:$false] %s5730_s27 }
  0x54   : > { %s5732_s28 = scalar_lea.vmem %s5731_s27, 2048  ;;  %p5733_p11 = scmp.lt.s32.totalorder %s6002_s20, %s5731_s27 }
  0x55   : > { %p5728_p5 = pnand %p5726_p4, %p5712_p12  ;;  %p5734_p13 = scmp.lt.s32.totalorder %s5732_s28, %s5725_s21 }
  0x57   : > { %p5729_p10 = pneg %p5728_p5  ;;  %p5735_p2 = por %p5734_p13, %p5733_p11 }
  0x59   : > { %p5736_p3 = pnand %p5735_p2, %p5729_p10 }
  0x5b   : > { %5739 = shalt.err (!%p5736_p3)
}
  0x5c   : > { %s5801_s26 = smov 256   ;;  %s5802_s29 = smov 16  }
  0x5d   : > { %5074 = dma.hbm_to_vmem [thread:$0]  (!%p6006_p7), %s6000_s19, 1024, %s6002_s20, %s6010_s24, %s5801_s26, %s5801_s26, %s5802_s29  }
  0x5e   : > { %p8005_p12 = scmp.ne.s32.totalorder %s8002_s18, 0 }
  0x5f   : > { %s388_s15 = sand.u32 (!%p8005_p12), 1, %s5778_s10   ;;  %p8006_p0 = scmp.ne.s32.totalorder (!%p8005_p12), %s8001_s17, 0 }
  0x60   : > { %386 = sbr.rel (%p8005_p12) target bundleno = 845 (0x34d), region = 56  ;;  %s4440_s23 = sshll.u32 (!%p8005_p12), %s388_s15, 6 }
  0x61   : > { %s389_s22 = scalar_lea.sflag (!%p8005_p12), [#allocation5], %s388_s15  ;;  %s6041_s21 = scalar_lea.vmem (!%p8005_p12), [#allocation4], %s4440_s23 }
  0x67   : > { %5765 = dma.done.wait (%p8006_p0), %s389_s22, 1024  }
  0x68   : > { %5767 = vsyncadd (%p8006_p0), %s389_s22, 4294966272  ;;  %p8007_p6 = scmp.ne.s32.totalorder %s8000_s16, 0 }
  0x6a   : > { %5769 = dma.done.wait (%p8007_p6), [#allocation7], 1152  }
  0x6b   : > { %5771 = vsyncadd (%p8007_p6), [#allocation7], 4294966144  ;;  %v5803_v0 = vmov 0   ;;  %v6054_v1 = vld [vmem:[%s6041_s21 + $0x28] sm:$0xff]  ;;  %v6057_v2 = vld [vmem:[%s6041_s21 + $0x38] sm:$0xff]  ;;  %v5804_v4 = vmov 0.0   ;;  %v623_v27 = vlaneseq }
  0x6c   : > { %5640 = vset.pattern.permute.xlu1 %v5803_v0  ;;  %5641 = vset.pattern.permute.xlu0 %v5803_v0  ;;  %v6060_v3 = vld [vmem:[%s6041_s21 + $0x8] sm:$0xff]  ;;  %469 = vst [vmem:[#allocation2] sm:$0xff] %v5804_v4  ;;  %470 = vst [vmem:[#allocation2 + $0x8] sm:$0xff] %v5804_v4  ;;  %v6070_v5 = vpack.i.bf16 %v6057_v2, %v6054_v1  ;;  %v478_v6 = vld [vmem:[%s6041_s21 + $0x18] sm:$0xff]  ;;  %s5805_s16 = smov 16   ;;  %s5806_s17 = smov 17   ;;  %v6106_v16 = vpack.c.bf16 %v6057_v2, %v6054_v1 }
  0x6d   : > { %557 = vmatprep.mubr.f32.mxu0 %v5804_v4  ;;  %471 = vst [vmem:[#allocation2 + $0x10] sm:$0xff] %v5804_v4  ;;  %472 = vst [vmem:[#allocation2 + $0x18] sm:$0xff] %v5804_v4  ;;  %1121 = vmatprep.mubr.f32.mxu1 %v5804_v4  ;;  %v6074_v7 = vld [vmem:[%s6041_s21 + $0x20] sm:$0xff]  ;;  %v6077_v8 = vld [vmem:[%s6041_s21 + $0x30] sm:$0xff]  ;;  %v6080_v9 = vpack.i.bf16 %v478_v6, %v6060_v3  ;;  %v6097_v14 = vpack.c.bf16 %v478_v6, %v6060_v3  ;;  %s5807_s18 = smov 15   ;;  %vm489_vm0 = vcmask 261120  }
  0x6e   : > { %v475_v10 = vld [vmem:[%s6041_s21] sm:$0xff]  ;;  %v477_v11 = vld [vmem:[%s6041_s21 + $0x10] sm:$0xff]  ;;  %5171 = vrot.lane.b32.xlu1 %v6070_v5, %s5805_s16  ;;  %v6087_v12 = vpack.i.bf16 %v6077_v8, %v6074_v7  ;;  %v6111_v17 = vpack.c.bf16 %v6077_v8, %v6074_v7  ;;  %v488_v18 = vld [vmem:[%s7979_s2] sm:$0xf]  ;;  %s5808_s9 = smov 32   ;;  %s5809_s24 = smov 34   ;;  %v6148_v21 = vpack.i.bf16 %v6057_v2, %v6077_v8  ;;  %v6153_v22 = vpack.i.bf16 %v6054_v1, %v6074_v7 }
  0x6f   : > { %5161 = vrot.lane.b32.xlu0 %v6080_v9, %s5805_s16  ;;  %v6090_v13 = vpack.i.bf16 %v477_v11, %v475_v10  ;;  %v6100_v15 = vpack.c.bf16 %v477_v11, %v475_v10  ;;  %4678 = vmatprep.subr.bf16.mxu0 %v6097_v14  ;;  %s5810_s27 = smov 30   ;;  %s5811_s28 = smov 2   ;;  %v6139_v19 = vpack.i.bf16 %v478_v6, %v477_v11  ;;  %v6176_v23 = vld [vmem:[%s7977_s0] ss:$2 sm:$0x3]  ;;  %v624_v29 = vshrl.u32 %v623_v27, 7 }
  0x70   : > { %v6143_v20 = vpack.i.bf16 %v6060_v3, %v475_v10  ;;  %s5812_s26 = smov 126   ;;  %s5813_s29 = smov 98   ;;  %v568_v24 = vadd.s32 4294967295, %v6176_v23  ;;  %v6185_v25 = vld [vmem:[%s7977_s0 + $0x1] ss:$2 sm:$0x3] }
  0x71   : > { %4680 = vmatpush1.bf16.msra.mxu0 %v6100_v15  ;;  %s5814_s15 = smov 96   ;;  %s5815_s23 = smov 94   ;;  %vm7996_vm4 = vcmp.ge.s32.totalorder %v6185_v25, 0  ;;  %v6196_v28 = vadd.s32 4294967295, %v6185_v25  ;;  %vm7995_vm6 = vcmp.lt.s32.totalorder %v6185_v25, 16  ;;  %v6208_v30 = vsub.s32 0, %v624_v29 }
  0x72   : > { %5176 = vrot.lane.b32.xlu1 %v6087_v12, %s5805_s16  ;;  %4682 = vmatprep.subr.bf16.mxu0 %v6106_v16  ;;  %s5816_s22 = smov 1   ;;  %vm569_vm1 = vcmp.ge.s32.totalorder %v568_v24, 0  ;;  %vm570_vm2 = vcmp.lt.s32.totalorder %v568_v24, 16  ;;  %v6210_v31 = vsub.s32 1, %v624_v29  ;;  %v6213_v32 = vadd.s32 1, %v6185_v25  ;;  %s5824_s19 = smov 3  }
  0x73   : > { %5166 = vrot.lane.b32.xlu0 %v6090_v13, %s5805_s16  ;;  %vm6188_vm3 = vmand %vm569_vm1, %vm570_vm2  ;;  %vm7994_vm8 = vcmp.ge.s32.totalorder %v6196_v28, 0  ;;  %vm7993_vm10 = vcmp.lt.s32.totalorder %v6196_v28, 16  ;;  %vm666_vm11 = vcmask 130048   ;;  %vm605_vm12 = vcmask 138240   ;;  %s5823_s16 = smov 45   ;;  %s5825_s20 = smov 125  }
  0x74   : > { %vm643_vm5 = vmand %vm6188_vm3, %vm7996_vm4  ;;  %vm7992_vm14 = vcmp.ge.s32.totalorder %v6213_v32, 0  ;;  %v1768_v39 = vadd.s32 4294967294, %v6176_v23  ;;  %vm7991_vm1 = vcmp.lt.s32.totalorder %v6213_v32, 16  ;;  %v6244_v44 = vadd.s32 4294967294, %v6185_v25  ;;  %p460_p7 = scmp.lt.s32.totalorder %s5786_s12, 1 }
  0x75   : > { %4684 = vmatpush1.bf16.msra.mxu0 %v6111_v17  ;;  %vm645_vm7 = vmand %vm643_vm5, %vm7995_vm6 }
  0x76   : > { %5186 = vrot.lane.b32.xlu1 %v6090_v13, %s5806_s17  ;;  %v683_v33 = vsel %vm645_vm7, 1, %v5803_v0  ;;  %vm574_vm9 = vmand %vm6188_vm3, %vm7994_vm8  ;;  %vm1769_vm7 = vcmp.ge.s32.totalorder %v1768_v39, 0  ;;  %s8213_s12 = smov (!%p460_p7, %s5786_s12), 1 }
  0x77   : > { %5181 = vrot.lane.b32.xlu0 %v6080_v9, %s5806_s17  ;;  %v687_v36 = vrot.slane %v683_v33, %v6208_v30  ;;  %v691_v37 = vrot.slane %v683_v33, %v6210_v31  ;;  %vm576_vm13 = vmand %vm574_vm9, %vm7993_vm10  ;;  %vm1770_vm9 = vcmp.lt.s32.totalorder %v1768_v39, 16 }
  0x78   : > { %4445 = vmatmul.mubr.msk.f32.vlgmr.msra.gmra.mrb[0].mxu0 %vm489_vm0, %v488_v18  ;;  %v6232_v42 = vsel %vm576_vm13, 1, %v5803_v0  ;;  %vm6238_vm15 = vmand %vm6188_vm3, %vm7992_vm14 }
  0x79   : > { %771 = vmatprep.mubr.f32.mxu0 %v5804_v4  ;;  %vm6246_vm2 = vcmp.eq.s32.totalorder %v691_v37, 1  ;;  %vm6250_vm5 = vcmp.eq.s32.totalorder %v687_v36, 1  ;;  %v630_v55 = vrot.slane %v6232_v42, %v6210_v31  ;;  %vm6265_vm3 = vmand %vm6238_vm15, %vm7991_vm1  ;;  %vm877_vm1 = vcmask 121856  }
  0x7a   : > { %5196 = vrot.lane.b32.xlu1 %v6087_v12, %s5806_s17  ;;  %vm4686_vm13 = vmpackc.low %vm6246_vm2, %vm6246_vm2  ;;  %v626_v18 = vrot.slane %v6232_v42, %v6208_v30 }
  0x7b   : > { %5191 = vrot.lane.b32.xlu0 %v6070_v5, %s5806_s17  ;;  %vm4689_vm15 = vmpackc.low %vm6250_vm5, %vm6250_vm5  ;;  %vm6299_vm10 = vcmp.eq.s32.totalorder %v630_v55, 1 }
  0x7c   : > { %vm6286_vm14 = vmand %vm1769_vm7, %vm1770_vm9  ;;  %vm6331_vm7 = vcmp.eq.s32.totalorder %v626_v18, 1 }
  0x7d   : > { %vm4701_vm5 = vmpackc.low %vm6331_vm7, %vm6331_vm7  ;;  %vm1797_vm7 = vcmask 277504  }
  0x7e   : > { %5206 = vrot.lane.b32.xlu1 %v6090_v13, %s5807_s18 }
  0x7f   : > { %5201 = vrot.lane.b32.xlu0 %v6080_v9, %s5807_s18 }
  0x82   : > { %5216 = vrot.lane.b32.xlu1 %v6087_v12, %s5807_s18 }
  0x83   : > { %5211 = vrot.lane.b32.xlu0 %v6070_v5, %s5807_s18  ;;  %s5817_s18 = smov 127  }
  0x86   : > { %5226 = vrot.lane.b32.xlu1 %v6090_v13, %s5808_s9 }
  0x87   : > { %5221 = vrot.lane.b32.xlu0 %v6080_v9, %s5808_s9 }
  0x8a   : > { %5236 = vrot.lane.b32.xlu1 %v6087_v12, %s5808_s9 }
  0x8b   : > { %5231 = vrot.lane.b32.xlu0 %v6070_v5, %s5808_s9  ;;  %s5818_s9 = smov 113  }
  0x8e   : > { %5246 = vrot.lane.b32.xlu1 %v6090_v13, %s5809_s24 }
  0x8f   : > { %5241 = vrot.lane.b32.xlu0 %v6080_v9, %s5809_s24 }
  0x92   : > { %5256 = vrot.lane.b32.xlu1 %v6087_v12, %s5809_s24 }
  0x93   : > { %5251 = vrot.lane.b32.xlu0 %v6070_v5, %s5809_s24  ;;  %s5819_s24 = smov 112  }
  0x96   : > { %5266 = vrot.lane.b32.xlu1 %v6090_v13, %s5810_s27 }
  0x97   : > { %5261 = vrot.lane.b32.xlu0 %v6080_v9, %s5810_s27 }
  0x9a   : > { %5276 = vrot.lane.b32.xlu1 %v6087_v12, %s5810_s27 }
  0x9b   : > { %5271 = vrot.lane.b32.xlu0 %v6070_v5, %s5810_s27  ;;  %s5820_s27 = smov 111  }
  0x9e   : > { %5286 = vrot.lane.b32.xlu1 %v6090_v13, %s5811_s28 }
  0x9f   : > { %5281 = vrot.lane.b32.xlu0 %v6080_v9, %s5811_s28 }
  0xa2   : > { %5296 = vrot.lane.b32.xlu1 %v6087_v12, %s5811_s28 }
  0xa3   : > { %5291 = vrot.lane.b32.xlu0 %v6070_v5, %s5811_s28  ;;  %s5821_s28 = smov 48  }
  0xa6   : > { %5306 = vrot.lane.b32.xlu1 %v6139_v19, %s5812_s26 }
  0xa7   : > { %5301 = vrot.lane.b32.xlu0 %v6143_v20, %s5812_s26 }
  0xaa   : > { %5316 = vrot.lane.b32.xlu1 %v6148_v21, %s5812_s26 }
  0xab   : > { %5311 = vrot.lane.b32.xlu0 %v6153_v22, %s5812_s26 }
  0xae   : > { %5326 = vrot.lane.b32.xlu1 %v6139_v19, %s5813_s29 }
  0xaf   : > { %5321 = vrot.lane.b32.xlu0 %v6143_v20, %s5813_s29 }
  0xb2   : > { %5336 = vrot.lane.b32.xlu1 %v6148_v21, %s5813_s29 }
  0xb3   : > { %5331 = vrot.lane.b32.xlu0 %v6153_v22, %s5813_s29 }
  0xb6   : > { %5346 = vrot.lane.b32.xlu1 %v6139_v19, %s5814_s15 }
  0xb7   : > { %5341 = vrot.lane.b32.xlu0 %v6143_v20, %s5814_s15 }
  0xba   : > { %5356 = vrot.lane.b32.xlu1 %v6148_v21, %s5814_s15 }
  0xbb   : > { %5351 = vrot.lane.b32.xlu0 %v6153_v22, %s5814_s15  ;;  %s5822_s15 = smov 51  }
  0xbe   : > { %5366 = vrot.lane.b32.xlu1 %v6139_v19, %s5815_s23 }
  0xbf   : > { %5361 = vrot.lane.b32.xlu0 %v6143_v20, %s5815_s23 }
  0xc2   : > { %5376 = vrot.lane.b32.xlu1 %v6148_v21, %s5815_s23 }
  0xc3   : > { %5371 = vrot.lane.b32.xlu0 %v6153_v22, %s5815_s23 }
  0xc6   : > { %5386 = vrot.lane.b32.xlu1 %v6090_v13, %s5816_s22 }
  0xc7   : > { %5381 = vrot.lane.b32.xlu0 %v6080_v9, %s5816_s22 }
  0xca   : > { %5396 = vrot.lane.b32.xlu1 %v6087_v12, %s5816_s22 }
  0xcb   : > { %5391 = vrot.lane.b32.xlu0 %v6070_v5, %s5816_s22 }
  0xce   : > { %5406 = vrot.lane.b32.xlu1 %v6139_v19, %s5817_s18 }
  0xcf   : > { %5401 = vrot.lane.b32.xlu0 %v6143_v20, %s5817_s18 }
  0xd2   : > { %5416 = vrot.lane.b32.xlu1 %v6148_v21, %s5817_s18 }
  0xd3   : > { %5411 = vrot.lane.b32.xlu0 %v6153_v22, %s5817_s18 }
  0xd6   : > { %5426 = vrot.lane.b32.xlu1 %v6139_v19, %s5818_s9 }
  0xd7   : > { %5421 = vrot.lane.b32.xlu0 %v6143_v20, %s5818_s9 }
  0xda   : > { %5436 = vrot.lane.b32.xlu1 %v6148_v21, %s5818_s9 }
  0xdb   : > { %5431 = vrot.lane.b32.xlu0 %v6153_v22, %s5818_s9  ;;  %s5826_s9 = smov 83  }
  0xde   : > { %5446 = vrot.lane.b32.xlu1 %v6139_v19, %s5819_s24 }
  0xdf   : > { %5441 = vrot.lane.b32.xlu0 %v6143_v20, %s5819_s24 }
  0xe0   : > { %v5172_v34 = vpop.permute.xlu1 %5171 }
  0xe1   : > { %v5162_v35 = vpop.permute.xlu0 %5161  ;;  %v5174_v38 = vunpack.i.h.bf16 %v5172_v34  ;;  %v5173_v40 = vunpack.i.l.bf16 %v5172_v34 }
  0xe2   : > { %5456 = vrot.lane.b32.xlu1 %v6148_v21, %s5819_s24  ;;  %v5164_v50 = vunpack.i.h.bf16 %v5162_v35  ;;  %v5163_v51 = vunpack.i.l.bf16 %v5162_v35 }
  0xe3   : > { %5451 = vrot.lane.b32.xlu0 %v6153_v22, %s5819_s24  ;;  %s5827_s24 = smov 80  }
  0xe4   : > { %v5177_v41 = vpop.permute.xlu1 %5176 }
  0xe5   : > { %v5179_v45 = vunpack.i.h.bf16 %v5177_v41  ;;  %v5178_v46 = vunpack.i.l.bf16 %v5177_v41  ;;  %v5167_v47 = vpop.permute.xlu0 %5166 }
  0xe6   : > { %v5169_v52 = vunpack.i.h.bf16 %v5167_v47  ;;  %v5168_v53 = vunpack.i.l.bf16 %v5167_v47  ;;  %5466 = vrot.lane.b32.xlu1 %v6139_v19, %s5820_s27 }
  0xe7   : > { %v670_v54 = vsel %vm666_vm11, %v5179_v45, %v5174_v38  ;;  %5461 = vrot.lane.b32.xlu0 %v6143_v20, %s5820_s27  ;;  %v669_v57 = vsel %vm666_vm11, %v5178_v46, %v5173_v40  ;;  %v682_v26 = vsel %vm666_vm11, %v5174_v38, %v5179_v45  ;;  %v681_v27 = vsel %vm666_vm11, %v5173_v40, %v5178_v46 }
  0xe8   : > { %v668_v58 = vsel %vm666_vm11, %v5169_v52, %v5164_v50  ;;  %v680_v59 = vsel %vm666_vm11, %v5164_v50, %v5169_v52  ;;  %v667_v60 = vsel %vm666_vm11, %v5168_v53, %v5163_v51  ;;  %v5187_v61 = vpop.permute.xlu1 %5186  ;;  %v679_v62 = vsel %vm666_vm11, %v5163_v51, %v5168_v53  ;;  %vm6324_vm11 = vmand %vm6286_vm14, %vm7996_vm4 }
  0xe9   : > { %v4685_v63 = vpack.c.bf16 %v668_v58, %v667_v60  ;;  %v5189_v1 = vunpack.i.h.bf16 %v5187_v61  ;;  %v5188_v2 = vunpack.i.l.bf16 %v5187_v61  ;;  %v5182_v3 = vpop.permute.xlu0 %5181  ;;  %v4688_v6 = vpack.c.bf16 %v680_v59, %v679_v62  ;;  %vm6353_vm2 = vmand %vm6324_vm11, %vm7995_vm6 }
  0xea   : > { %v5184_v10 = vunpack.i.h.bf16 %v5182_v3  ;;  %v5183_v11 = vunpack.i.l.bf16 %v5182_v3  ;;  %5476 = vrot.lane.b32.xlu1 %v6148_v21, %s5820_s27  ;;  %v4691_v29 = vpack.c.bf16 %v670_v54, %v669_v57  ;;  %v894_v38 = vsel %vm6265_vm3, 1, %v5803_v0  ;;  %vm4698_vm3 = vmpackc.low %vm6299_vm10, %vm6299_vm10  ;;  %v4446_v57 = vld [vmem:[%s7980_s3 + $0x4] sm:$0xf] }
  0xeb   : > { %4687 = vmatprep.subr.msk.bf16.mxu0 %vm4686_vm13, %v4685_v63  ;;  %5471 = vrot.lane.b32.xlu0 %v6153_v22, %s5820_s27  ;;  %v4694_v46 = vpack.c.bf16 %v682_v26, %v681_v27  ;;  %v902_v48 = vrot.slane %v894_v38, %v6210_v31 }
  0xec   : > { %v607_v34 = vsel %vm605_vm12, %v5189_v1, %v5184_v10  ;;  %v619_v35 = vsel %vm605_vm12, %v5184_v10, %v5189_v1  ;;  %v606_v36 = vsel %vm605_vm12, %v5188_v2, %v5183_v11  ;;  %4690 = vmatpush1.bf16.msk.msra.mxu0 %vm4689_vm15, %v4688_v6  ;;  %v5197_v37 = vpop.permute.xlu1 %5196  ;;  %v618_v39 = vsel %vm605_vm12, %v5183_v11, %v5188_v2 }
  0xed   : > { %v4697_v40 = vpack.c.bf16 %v607_v34, %v606_v36  ;;  %v5199_v41 = vunpack.i.h.bf16 %v5197_v37  ;;  %v5198_v42 = vunpack.i.l.bf16 %v5197_v37  ;;  %v5192_v43 = vpop.permute.xlu0 %5191  ;;  %4693 = vmatprep.subr.msk.bf16.mxu0 %vm4686_vm13, %v4691_v29  ;;  %v4700_v52 = vpack.c.bf16 %v619_v35, %v618_v39 }
  0xee   : > { %v5194_v47 = vunpack.i.h.bf16 %v5192_v43  ;;  %v5193_v50 = vunpack.i.l.bf16 %v5192_v43  ;;  %5486 = vrot.lane.b32.xlu1 %v6090_v13, %s5821_s28  ;;  %v898_v2 = vrot.slane %v894_v38, %v6208_v30  ;;  %vm6371_vm9 = vcmp.eq.s32.totalorder %v902_v48, 1  ;;  %v641_v48 = vld [vmem:[%s7980_s3] sm:$0xf] }
  0xef   : > { %5481 = vrot.lane.b32.xlu0 %v6080_v9, %s5821_s28  ;;  %v6378_v6 = vsel %vm6353_vm2, 1, %v5803_v0  ;;  %vm1775_vm13 = vcmp.lt.s32.totalorder %v6244_v44, 16  ;;  %vm4710_vm11 = vmpackc.low %vm6371_vm9, %vm6371_vm9  ;;  %vm992_vm9 = vcmp.lt.s32.totalorder %v6176_v23, 16 }
  0xf0   : > { %v609_v53 = vsel %vm605_vm12, %v5199_v41, %v5194_v47  ;;  %v621_v54 = vsel %vm605_vm12, %v5194_v47, %v5199_v41  ;;  %v608_v55 = vsel %vm605_vm12, %v5198_v42, %v5193_v50  ;;  %4696 = vmatpush1.bf16.msk.msra.mxu0 %vm4689_vm15, %v4694_v46  ;;  %v5207_v56 = vpop.permute.xlu1 %5206  ;;  %v620_v59 = vsel %vm605_vm12, %v5193_v50, %v5198_v42 }
  0xf1   : > { %v4703_v60 = vpack.c.bf16 %v609_v53, %v608_v55  ;;  %v5209_v61 = vunpack.i.h.bf16 %v5207_v56  ;;  %v5208_v49 = vunpack.i.l.bf16 %v5207_v56  ;;  %v5202_v62 = vpop.permute.xlu0 %5201  ;;  %4699 = vmatprep.subr.msk.bf16.mxu0 %vm4698_vm3, %v4697_v40  ;;  %vm1773_vm12 = vcmp.ge.s32.totalorder %v6244_v44, 0 }
  0xf2   : > { %v5204_v63 = vunpack.i.h.bf16 %v5202_v62  ;;  %v5203_v1 = vunpack.i.l.bf16 %v5202_v62  ;;  %5496 = vrot.lane.b32.xlu1 %v6087_v12, %s5821_s28  ;;  %v4706_v10 = vpack.c.bf16 %v621_v54, %v620_v59  ;;  %vm6400_vm15 = vmand %vm6286_vm14, %vm1773_vm12  ;;  %vm6407_vm2 = vcmp.eq.s32.totalorder %v898_v2, 1 }
  0xf3   : > { %4455 = vmatmul.mubr.msk.f32.vlgmr.msra.gmra.mrb[2].mxu0 %vm489_vm0, %v4446_v57  ;;  %5491 = vrot.lane.b32.xlu0 %v6070_v5, %s5821_s28  ;;  %v6413_v41 = vadd.s32 2, %v6185_v25  ;;  %v1880_v42 = vrot.slane %v6378_v6, %v6210_v31  ;;  %vm6433_vm10 = vmand %vm6400_vm15, %vm1775_vm13  ;;  %v1876_v59 = vrot.slane %v6378_v6, %v6208_v30 }
  0xf4   : > { %v879_v11 = vsel %vm877_vm1, %v5209_v61, %v5204_v63  ;;  %v891_v18 = vsel %vm877_vm1, %v5204_v63, %v5209_v61  ;;  %v878_v26 = vsel %vm877_vm1, %v5208_v49, %v5203_v1  ;;  %4702 = vmatpush1.bf16.msk.msra.mxu0 %vm4701_vm5, %v4700_v52  ;;  %v5217_v27 = vpop.permute.xlu1 %5216  ;;  %v890_v29 = vsel %vm877_vm1, %v5203_v1, %v5208_v49 }
  0xf5   : > { %v4709_v34 = vpack.c.bf16 %v879_v11, %v878_v26  ;;  %v5219_v35 = vunpack.i.h.bf16 %v5217_v27  ;;  %v5218_v36 = vunpack.i.l.bf16 %v5217_v27  ;;  %v5212_v37 = vpop.permute.xlu0 %5211  ;;  %4705 = vmatprep.subr.msk.bf16.mxu0 %vm4698_vm3, %v4703_v60  ;;  %845 = vmatprep.mubr.f32.mxu0 %v5804_v4  ;;  %v4712_v43 = vpack.c.bf16 %v891_v18, %v890_v29  ;;  %vm4713_vm3 = vmpackc.low %vm6407_vm2, %vm6407_vm2 }
  0xf6   : > { %v5214_v39 = vunpack.i.h.bf16 %v5212_v37  ;;  %v5213_v40 = vunpack.i.l.bf16 %v5212_v37  ;;  %5506 = vrot.lane.b32.xlu1 %v6090_v13, %s5822_s15  ;;  %v6459_v61 = vsel %vm6433_vm10, 1, %v5803_v0  ;;  %vm2044_vm15 = vcmp.lt.s32.totalorder %v6413_v41, 16 }
  0xf7   : > { %5501 = vrot.lane.b32.xlu0 %v6080_v9, %s5822_s15  ;;  %vm6488_vm6 = vcmp.eq.s32.totalorder %v1876_v59, 1  ;;  %v1822_v24 = vrot.slane %v6459_v61, %v6210_v31  ;;  %v1818_v52 = vrot.slane %v6459_v61, %v6208_v30 }
  0xf8   : > { %v881_v45 = vsel %vm877_vm1, %v5219_v35, %v5214_v39  ;;  %v893_v46 = vsel %vm877_vm1, %v5214_v39, %v5219_v35  ;;  %v880_v47 = vsel %vm877_vm1, %v5218_v36, %v5213_v40  ;;  %4708 = vmatpush1.bf16.msk.msra.mxu0 %vm4701_vm5, %v4706_v10  ;;  %v5227_v50 = vpop.permute.xlu1 %5226  ;;  %v892_v53 = vsel %vm877_vm1, %v5213_v40, %v5218_v36  ;;  %v4465_v40 = vld [vmem:[%s7980_s3 + $0x8] sm:$0xf]  ;;  %vm4793_vm2 = vmpackc.low %vm6488_vm6, %vm6488_vm6 }
  0xf9   : > { %v4715_v54 = vpack.c.bf16 %v881_v45, %v880_v47  ;;  %v5229_v55 = vunpack.i.h.bf16 %v5227_v50  ;;  %v5228_v51 = vunpack.i.l.bf16 %v5227_v50  ;;  %v5222_v56 = vpop.permute.xlu0 %5221  ;;  %4711 = vmatprep.subr.msk.bf16.mxu0 %vm4710_vm11, %v4709_v34  ;;  %vm2042_vm1 = vcmp.ge.s32.totalorder %v6413_v41, 0 }
  0xfa   : > { %v5224_v57 = vunpack.i.h.bf16 %v5222_v56  ;;  %v5223_v58 = vunpack.i.l.bf16 %v5222_v56  ;;  %5516 = vrot.lane.b32.xlu1 %v6087_v12, %s5822_s15  ;;  %vm6452_vm5 = vcmp.eq.s32.totalorder %v1880_v42, 1  ;;  %v4718_v49 = vpack.c.bf16 %v893_v46, %v892_v53  ;;  %vm6481_vm10 = vmand %vm6286_vm14, %vm2042_vm1 }
  0xfb   : > { %4464 = vmatmul.mubr.msk.f32.vlgmr.msra.gmra.mrb[2].mxu0 %vm489_vm0, %v641_v48  ;;  %5511 = vrot.lane.b32.xlu0 %v6070_v5, %s5822_s15  ;;  %vm4790_vm8 = vmpackc.low %vm6452_vm5, %vm6452_vm5  ;;  %vm991_vm14 = vcmp.ge.s32.totalorder %v6176_v23, 0 }
  0xfc   : > { %v1857_v62 = vsel %vm489_vm0, %v5229_v55, %v5224_v57  ;;  %v1869_v63 = vsel %vm489_vm0, %v5224_v57, %v5229_v55  ;;  %v1856_v1 = vsel %vm489_vm0, %v5228_v51, %v5223_v58  ;;  %4714 = vmatpush1.bf16.msk.msra.mxu0 %vm4713_vm3, %v4712_v43  ;;  %v5237_v2 = vpop.permute.xlu1 %5236  ;;  %v1868_v6 = vsel %vm489_vm0, %v5223_v58, %v5228_v51 }
  0xfd   : > { %v4789_v10 = vpack.c.bf16 %v1857_v62, %v1856_v1  ;;  %v5239_v11 = vunpack.i.h.bf16 %v5237_v2  ;;  %v5238_v18 = vunpack.i.l.bf16 %v5237_v2  ;;  %v5232_v26 = vpop.permute.xlu0 %5231  ;;  %4717 = vmatprep.subr.msk.bf16.mxu0 %vm4710_vm11, %v4715_v54  ;;  %982 = vmatprep.mubr.f32.mxu0 %v5804_v4  ;;  %v4792_v35 = vpack.c.bf16 %v1869_v63, %v1868_v6  ;;  %vm6513_vm11 = vmand %vm6481_vm10, %vm2044_vm15 }
  0xfe   : > { %v5234_v29 = vunpack.i.h.bf16 %v5232_v26  ;;  %v5233_v34 = vunpack.i.l.bf16 %v5232_v26  ;;  %5526 = vrot.lane.b32.xlu1 %v6090_v13, %s5823_s16  ;;  %vm6539_vm10 = vcmp.eq.s32.totalorder %v1822_v24, 1  ;;  %v2083_v55 = vsel %vm6513_vm11, 1, %v5803_v0  ;;  %v1892_v24 = vld [vmem:[#allocation6 + $0x4] sm:$0xf] }
  0xff   : > { %5521 = vrot.lane.b32.xlu0 %v6080_v9, %s5823_s16  ;;  %vm6572_vm11 = vcmp.eq.s32.totalorder %v1818_v52, 1  ;;  %v2530_v54 = vadd.s32 2, %v6176_v23 }
 0x100   : > { %v1859_v36 = vsel %vm489_vm0, %v5239_v11, %v5234_v29  ;;  %v1871_v37 = vsel %vm489_vm0, %v5234_v29, %v5239_v11  ;;  %v1858_v38 = vsel %vm489_vm0, %v5238_v18, %v5233_v34  ;;  %4720 = vmatpush1.bf16.msk.msra.mxu0 %vm4713_vm3, %v4718_v49  ;;  %v5247_v39 = vpop.permute.xlu1 %5246  ;;  %v1870_v43 = vsel %vm489_vm0, %v5233_v34, %v5238_v18  ;;  %vm6533_vm3 = vmand %vm991_vm14, %vm992_vm9 }
 0x101   : > { %v4795_v45 = vpack.c.bf16 %v1859_v36, %v1858_v38  ;;  %v5249_v46 = vunpack.i.h.bf16 %v5247_v39  ;;  %v5248_v33 = vunpack.i.l.bf16 %v5247_v39  ;;  %v5242_v47 = vpop.permute.xlu0 %5241  ;;  %4791 = vmatprep.subr.msk.bf16.mxu0 %vm4790_vm8, %v4789_v10  ;;  %v4798_v51 = vpack.c.bf16 %v1871_v37, %v1870_v43  ;;  %vm6565_vm14 = vmand %vm6533_vm3, %vm1773_vm12 }
 0x102   : > { %v5244_v50 = vunpack.i.h.bf16 %v5242_v47  ;;  %v5243_v48 = vunpack.i.l.bf16 %v5242_v47  ;;  %5536 = vrot.lane.b32.xlu1 %v6087_v12, %s5823_s16  ;;  %vm4802_vm9 = vmpackc.low %vm6539_vm10, %vm6539_vm10  ;;  %v2087_v11 = vrot.slane %v2083_v55, %v6208_v30  ;;  %v2091_v18 = vrot.slane %v2083_v55, %v6210_v31 }
 0x103   : > { %4474 = vmatmul.mubr.msk.f32.vlgmr.msra.gmra.mrb[2].mxu0 %vm489_vm0, %v4465_v40  ;;  %5531 = vrot.lane.b32.xlu0 %v6070_v5, %s5823_s16  ;;  %vm2181_vm5 = vmand %vm6565_vm14, %vm1775_vm13 }
 0x104   : > { %v1799_v56 = vsel %vm1797_vm7, %v5249_v46, %v5244_v50  ;;  %v1811_v57 = vsel %vm1797_vm7, %v5244_v50, %v5249_v46  ;;  %v1798_v58 = vsel %vm1797_vm7, %v5248_v33, %v5243_v48  ;;  %4794 = vmatpush1.bf16.msk.msra.mxu0 %vm4793_vm2, %v4792_v35  ;;  %v5257_v59 = vpop.permute.xlu1 %5256  ;;  %v1810_v61 = vsel %vm1797_vm7, %v5243_v48, %v5248_v33  ;;  %vm4805_vm6 = vmpackc.low %vm6572_vm11, %vm6572_vm11 }
 0x105   : > { %v4801_v49 = vpack.c.bf16 %v1799_v56, %v1798_v58  ;;  %v5259_v62 = vunpack.i.h.bf16 %v5257_v59  ;;  %v5258_v63 = vunpack.i.l.bf16 %v5257_v59  ;;  %v5252_v1 = vpop.permute.xlu0 %5251  ;;  %4797 = vmatprep.subr.msk.bf16.mxu0 %vm4790_vm8, %v4795_v45  ;;  %1960 = vmatprep.mubr.f32.mxu0 %v5804_v4  ;;  %vm2066_vm8 = vcmask 244736  }
 0x106   : > { %v5254_v6 = vunpack.i.h.bf16 %v5252_v1  ;;  %v5253_v10 = vunpack.i.l.bf16 %v5252_v1  ;;  %5546 = vrot.lane.b32.xlu1 %v6090_v13, %s5824_s19  ;;  %v4804_v26 = vpack.c.bf16 %v1811_v57, %v1810_v61  ;;  %v2219_v43 = vsel %vm2181_vm5, 1, %v5803_v0  ;;  %v1833_v1 = vld [vmem:[#allocation6] sm:$0xf] }
 0x107   : > { %5541 = vrot.lane.b32.xlu0 %v6080_v9, %s5824_s19  ;;  %v2227_v57 = vrot.slane %v2219_v43, %v6210_v31  ;;  %vm2202_vm5 = vcmask 15360   ;;  %v2223_v58 = vrot.slane %v2219_v43, %v6208_v30 }
 0x108   : > { %v1801_v27 = vsel %vm1797_vm7, %v5259_v62, %v5254_v6  ;;  %v1813_v29 = vsel %vm1797_vm7, %v5254_v6, %v5259_v62  ;;  %v1800_v34 = vsel %vm1797_vm7, %v5258_v63, %v5253_v10  ;;  %4800 = vmatpush1.bf16.msk.msra.mxu0 %vm4793_vm2, %v4798_v51  ;;  %v5267_v13 = vpop.permute.xlu1 %5266  ;;  %v1812_v9 = vsel %vm1797_vm7, %v5253_v10, %v5258_v63 }
 0x109   : > { %v4807_v35 = vpack.c.bf16 %v1801_v27, %v1800_v34  ;;  %v5269_v36 = vunpack.i.h.bf16 %v5267_v13  ;;  %v5268_v37 = vunpack.i.l.bf16 %v5267_v13  ;;  %v5262_v38 = vpop.permute.xlu0 %5261  ;;  %4803 = vmatprep.subr.msk.bf16.mxu0 %vm4802_vm9, %v4801_v49  ;;  %vm6604_vm7 = vcmp.eq.s32.totalorder %v2091_v18, 1 }
 0x10a   : > { %v5264_v3 = vunpack.i.h.bf16 %v5262_v38  ;;  %v5263_v39 = vunpack.i.l.bf16 %v5262_v38  ;;  %5556 = vrot.lane.b32.xlu1 %v6087_v12, %s5824_s19  ;;  %vm6608_vm2 = vcmp.eq.s32.totalorder %v2087_v11, 1  ;;  %v4810_v45 = vpack.c.bf16 %v1813_v29, %v1812_v9  ;;  %vm4814_vm14 = vmpackc.low %vm6604_vm7, %vm6604_vm7 }
 0x10b   : > { %4535 = vmatmul.mubr.msk.f32.vlgmr.msra.gmra.mrb[4].mxu0 %vm489_vm0, %v1892_v24  ;;  %5551 = vrot.lane.b32.xlu0 %v6070_v5, %s5824_s19  ;;  %vm4817_vm10 = vmpackc.low %vm6608_vm2, %vm6608_vm2  ;;  %vm6659_vm11 = vcmp.eq.s32.totalorder %v2223_v58, 1 }
 0x10c   : > { %v2068_v46 = vsel %vm2066_vm8, %v5269_v36, %v5264_v3  ;;  %v2080_v33 = vsel %vm2066_vm8, %v5264_v3, %v5269_v36  ;;  %v2067_v12 = vsel %vm2066_vm8, %v5268_v37, %v5263_v39  ;;  %4806 = vmatpush1.bf16.msk.msra.mxu0 %vm4805_vm6, %v4804_v26  ;;  %v5277_v5 = vpop.permute.xlu1 %5276  ;;  %v2079_v47 = vsel %vm2066_vm8, %v5263_v39, %v5268_v37  ;;  %v5642_v39 = vld [vmem:[%s6041_s21 + $0x38] sm:$0xff]  ;;  %vm6689_vm7 = vmand %vm6533_vm3, %vm2042_vm1  ;;  %v2239_v26 = vld [vmem:[#allocation6 + $0xc] sm:$0xf] }
 0x10d   : > { %v4813_v50 = vpack.c.bf16 %v2068_v46, %v2067_v12  ;;  %v5279_v48 = vunpack.i.h.bf16 %v5277_v5  ;;  %v5278_v52 = vunpack.i.l.bf16 %v5277_v5  ;;  %v5272_v55 = vpop.permute.xlu0 %5271  ;;  %4809 = vmatprep.subr.msk.bf16.mxu0 %vm4802_vm9, %v4807_v35  ;;  %2034 = vmatprep.mubr.f32.mxu0 %v5804_v4  ;;  %v4816_v59 = vpack.c.bf16 %v2080_v33, %v2079_v47  ;;  %vm6725_vm2 = vmand %vm6689_vm7, %vm2044_vm15 }
 0x10e   : > { %v5274_v51 = vunpack.i.h.bf16 %v5272_v55  ;;  %v5273_v56 = vunpack.i.l.bf16 %v5272_v55  ;;  %5566 = vrot.lane.b32.xlu1 %v6139_v19, %s5825_s20  ;;  %vm6653_vm9 = vcmp.eq.s32.totalorder %v2227_v57, 1  ;;  %v5595_v43 = vpack.i.bf16 %v5642_v39, %v6077_v8  ;;  %v5647_v57 = vld [vmem:[%s6041_s21] sm:$0xff] }
 0x10f   : > { %5561 = vrot.lane.b32.xlu0 %v6143_v20, %s5825_s20  ;;  %vm4826_vm4 = vmpackc.low %vm6653_vm9, %vm6653_vm9  ;;  %vm2552_vm9 = vcmask 801792  }
 0x110   : > { %v2070_v61 = vsel %vm2066_vm8, %v5279_v48, %v5274_v51  ;;  %v2082_v49 = vsel %vm2066_vm8, %v5274_v51, %v5279_v48  ;;  %v2069_v62 = vsel %vm2066_vm8, %v5278_v52, %v5273_v56  ;;  %4812 = vmatpush1.bf16.msk.msra.mxu0 %vm4805_vm6, %v4810_v45  ;;  %v5287_v63 = vpop.permute.xlu1 %5286  ;;  %v2081_v2 = vsel %vm2066_vm8, %v5273_v56, %v5278_v52  ;;  %v5644_v48 = vld [vmem:[%s6041_s21 + $0x18] sm:$0xff]  ;;  %v5645_v52 = vld [vmem:[%s6041_s21 + $0x10] sm:$0xff]  ;;  %v5646_v56 = vld [vmem:[%s6041_s21 + $0x8] sm:$0xff] }
 0x111   : > { %v4819_v6 = vpack.c.bf16 %v2070_v61, %v2069_v62  ;;  %v5289_v10 = vunpack.i.h.bf16 %v5287_v63  ;;  %v5288_v23 = vunpack.i.l.bf16 %v5287_v63  ;;  %v5282_v11 = vpop.permute.xlu0 %5281  ;;  %4815 = vmatprep.subr.msk.bf16.mxu0 %vm4814_vm14, %v4813_v50  ;;  %vm2531_vm8 = vcmp.ge.s32.totalorder %v2530_v54, 0  ;;  %v6753_v61 = vld [vmem:[#allocation2] sm:$0xff] }
 0x112   : > { %v5284_v60 = vunpack.i.h.bf16 %v5282_v11  ;;  %v5283_v18 = vunpack.i.l.bf16 %v5282_v11  ;;  %5576 = vrot.lane.b32.xlu1 %v6148_v21, %s5825_s20  ;;  %vm2532_vm6 = vcmp.lt.s32.totalorder %v2530_v54, 16  ;;  %v4822_v29 = vpack.c.bf16 %v2082_v49, %v2081_v2 }
 0x113   : > { %4544 = vmatmul.mubr.msk.f32.vlgmr.msra.gmra.mrb[4].mxu0 %vm489_vm0, %v1833_v1  ;;  %5571 = vrot.lane.b32.xlu0 %v6153_v22, %s5825_s20  ;;  %v6731_v55 = vpack.i.bf16 %v5644_v48, %v5645_v52  ;;  %v6744_v58 = vpack.i.bf16 %v5646_v56, %v5647_v57  ;;  %v2433_v49 = vsel %vm6725_vm2, 1, %v5803_v0  ;;  %s5053_s20 = smul.u32 48, %s8213_s12 }
 0x114   : > { %v2204_v34 = vsel %vm2202_vm5, %v5289_v10, %v5284_v60  ;;  %v2216_v13 = vsel %vm2202_vm5, %v5284_v60, %v5289_v10  ;;  %v2203_v24 = vsel %vm2202_vm5, %v5288_v23, %v5283_v18  ;;  %4818 = vmatpush1.bf16.msk.msra.mxu0 %vm4817_vm10, %v4816_v59  ;;  %v5297_v21 = vpop.permute.xlu1 %5296  ;;  %v2215_v9 = vsel %vm2202_vm5, %v5283_v18, %v5288_v23  ;;  %v5649_v10 = vld [vmem:[%s6041_s21 + $0x30] sm:$0xff]  ;;  %v5650_v60 = vld [vmem:[%s6041_s21 + $0x20] sm:$0xff] }
 0x115   : > { %v4825_v22 = vpack.c.bf16 %v2204_v34, %v2203_v24  ;;  %v5299_v35 = vunpack.i.h.bf16 %v5297_v21  ;;  %v5298_v36 = vunpack.i.l.bf16 %v5297_v21  ;;  %v5292_v37 = vpop.permute.xlu0 %5291  ;;  %4821 = vmatprep.subr.msk.bf16.mxu0 %vm4814_vm14, %v4819_v6  ;;  %2171 = vmatprep.mubr.f32.mxu0 %v5804_v4  ;;  %v5643_v4 = vld [vmem:[%s6041_s21 + $0x28] sm:$0xff]  ;;  %vm6698_vm14 = vmand %vm2531_vm8, %vm2532_vm6  ;;  %v4828_v8 = vpack.c.bf16 %v2216_v13, %v2215_v9  ;;  %s5828_s21 = smov 77  }
 0x116   : > { %v5294_v38 = vunpack.i.h.bf16 %v5292_v37  ;;  %v5293_v3 = vunpack.i.l.bf16 %v5292_v37  ;;  %5586 = vrot.lane.b32.xlu1 %v6139_v19, %s5826_s9  ;;  %v5590_v45 = vpack.i.bf16 %v5643_v4, %v6074_v7  ;;  %vm4829_vm8 = vmpackc.low %vm6659_vm11, %vm6659_vm11  ;;  %v6772_v23 = vpack.i.bf16 %v5642_v39, %v5649_v10 }
 0x117   : > { %5581 = vrot.lane.b32.xlu0 %v6143_v20, %s5826_s9  ;;  %v2103_v20 = vld [vmem:[#allocation6 + $0x8] sm:$0xf]  ;;  %v2441_v11 = vrot.slane %v2433_v49, %v6210_v31  ;;  %v6777_v18 = vpack.i.bf16 %v5643_v4, %v5650_v60  ;;  %vm8073_vm6 = vcmp.lt.s32.totalorder %v6185_v25, 16 }
 0x118   : > { %v2206_v46 = vsel %vm2202_vm5, %v5299_v35, %v5294_v38  ;;  %v2205_v33 = vsel %vm2202_vm5, %v5298_v36, %v5293_v3  ;;  %4824 = vmatpush1.bf16.msk.msra.mxu0 %vm4817_vm10, %v4822_v29  ;;  %v6709_v7 = vpop.permute.xlu1 %5306  ;;  %v2218_v12 = vsel %vm2202_vm5, %v5294_v38, %v5299_v35  ;;  %v2217_v5 = vsel %vm2202_vm5, %v5293_v3, %v5298_v36  ;;  %vm6737_vm5 = vmand %vm6698_vm14, %vm1773_vm12 }
 0x119   : > { %v4831_v47 = vpack.c.bf16 %v2206_v46, %v2205_v33  ;;  %v5302_v50 = vpop.permute.xlu0 %5301  ;;  %4827 = vmatprep.subr.msk.bf16.mxu0 %vm4826_vm4, %v4825_v22  ;;  %v4834_v54 = vpack.c.bf16 %v2218_v12, %v2217_v5  ;;  %v5309_v62 = vunpack.i.h.bf16 %v6709_v7  ;;  %v5308_v63 = vunpack.i.l.bf16 %v6709_v7  ;;  %vm2535_vm12 = vmand %vm6737_vm5, %vm1775_vm13 }
 0x11a   : > { %5596 = vrot.lane.b32.xlu1 %v5595_v43, %s5826_s9  ;;  %v5304_v1 = vunpack.i.h.bf16 %v5302_v50  ;;  %v5303_v2 = vunpack.i.l.bf16 %v5302_v50  ;;  %vm2412_vm10 = vcmask 1031168   ;;  %v2437_v29 = vrot.slane %v2433_v49, %v6208_v30 }
 0x11b   : > { %4553 = vmatmul.mubr.msk.f32.vlgmr.msra.gmra.mrb[4].mxu0 %vm489_vm0, %v2103_v20  ;;  %5591 = vrot.lane.b32.xlu0 %v5590_v45, %s5826_s9  ;;  %v6788_v34 = vsel %vm2535_vm12, 1, %v5803_v0  ;;  %v2430_v27 = vsel %vm2412_vm10, %v5309_v62, %v5308_v63  ;;  %vm6805_vm11 = vcmp.eq.s32.totalorder %v2441_v11, 1  ;;  %v2414_v39 = vsel %vm2412_vm10, %v5308_v63, %v5309_v62 }
 0x11c   : > { %4830 = vmatpush1.bf16.msk.msra.mxu0 %vm4829_vm8, %v4828_v8  ;;  %v6751_v59 = vpop.permute.xlu1 %5316  ;;  %2307 = vmatprep.mubr.f32.mxu0 %v6753_v61  ;;  %v2429_v24 = vsel %vm2412_vm10, %v5304_v1, %v5303_v2  ;;  %v2581_v38 = vrot.slane %v6788_v34, %v6210_v31  ;;  %v2413_v43 = vsel %vm2412_vm10, %v5303_v2, %v5304_v1  ;;  %vm4846_vm2 = vmpackc.low %vm6805_vm11, %vm6805_vm11  ;;  %vm8078_vm12 = vcmp.ge.s32.totalorder %v6196_v28, 0 }
 0x11d   : > { %v5312_v6 = vpop.permute.xlu0 %5311  ;;  %4833 = vmatprep.subr.msk.bf16.mxu0 %vm4826_vm4, %v4831_v47  ;;  %vm8068_vm4 = vcmp.ge.s32.totalorder %v6185_v25, 0  ;;  %v5319_v9 = vunpack.i.h.bf16 %v6751_v59  ;;  %v5318_v22 = vunpack.i.l.bf16 %v6751_v59  ;;  %v4845_v40 = vpack.c.bf16 %v2430_v27, %v2429_v24 }
 0x11e   : > { %5606 = vrot.lane.b32.xlu1 %v6731_v55, %s5827_s24  ;;  %vm6794_vm13 = vmand %vm6698_vm14, %vm8068_vm4  ;;  %v5314_v35 = vunpack.i.h.bf16 %v5312_v6  ;;  %v5313_v36 = vunpack.i.l.bf16 %v5312_v6  ;;  %v4848_v50 = vpack.c.bf16 %v2414_v39, %v2413_v43  ;;  %v2577_v2 = vrot.slane %v6788_v34, %v6208_v30 }
 0x11f   : > { %5601 = vrot.lane.b32.xlu0 %v6744_v58, %s5827_s24  ;;  %vm6816_vm7 = vmand %vm6794_vm13, %vm8073_vm6  ;;  %v2432_v12 = vsel %vm2412_vm10, %v5319_v9, %v5318_v22  ;;  %v2416_v42 = vsel %vm2412_vm10, %v5318_v22, %v5319_v9  ;;  %vm6886_vm13 = vcmp.eq.s32.totalorder %v2581_v38, 1  ;;  %vm2688_vm6 = vcmask 785408  }
 0x120   : > { %4836 = vmatpush1.bf16.msk.msra.mxu0 %vm4829_vm8, %v4834_v54  ;;  %v6784_v44 = vpop.permute.xlu1 %5326  ;;  %vm6826_vm8 = vcmp.eq.s32.totalorder %v2437_v29, 1  ;;  %v2431_v5 = vsel %vm2412_vm10, %v5314_v35, %v5313_v36  ;;  %v6842_v47 = vsel %vm6816_vm7, 1, %v5803_v0  ;;  %v2415_v48 = vsel %vm2412_vm10, %v5313_v36, %v5314_v35  ;;  %v2317_v54 = vld [vmem:[#allocation6 + $0x10] sm:$0xf]  ;;  %vm6859_vm10 = vmand %vm6533_vm3, %vm8078_vm12 }
 0x121   : > { %v5322_v21 = vpop.permute.xlu0 %5321  ;;  %4838 = vmatprep.subr.bf16.mxu0 %v6097_v14  ;;  %v5329_v8 = vunpack.i.h.bf16 %v6784_v44  ;;  %v5328_v46 = vunpack.i.l.bf16 %v6784_v44  ;;  %vm4849_vm5 = vmpackc.low %vm6826_vm8, %vm6826_vm8  ;;  %v2717_v6 = vrot.slane %v6842_v47, %v6210_v31  ;;  %v4854_v10 = vpack.c.bf16 %v2416_v42, %v2415_v48 }
 0x122   : > { %5616 = vrot.lane.b32.xlu1 %v6772_v23, %s5827_s24  ;;  %v5324_v33 = vunpack.i.h.bf16 %v5322_v21  ;;  %v5323_v7 = vunpack.i.l.bf16 %v5322_v21  ;;  %vm6874_vm4 = vmand %vm6698_vm14, %vm2042_vm1  ;;  %vm8085_vm1 = vcmp.lt.s32.totalorder %v6196_v28, 16  ;;  %vm2824_vm12 = vcmask 769024  }
 0x123   : > { %4562 = vmatmul.mubr.msk.f32.vlgmr.msra.gmra.mrb[4].mxu0 %vm489_vm0, %v2239_v26  ;;  %5611 = vrot.lane.b32.xlu0 %v6777_v18, %s5827_s24  ;;  %v2570_v49 = vsel %vm2552_vm9, %v5329_v8, %v5328_v46  ;;  %v2554_v11 = vsel %vm2552_vm9, %v5328_v46, %v5329_v8  ;;  %vm6895_vm14 = vmand %vm6859_vm10, %vm8085_vm1  ;;  %vm6921_vm1 = vcmp.eq.s32.totalorder %v2577_v2, 1  ;;  %v2713_v9 = vrot.slane %v6842_v47, %v6208_v30  ;;  %v2453_v8 = vld [vmem:[#allocation6 + $0x14] sm:$0xf] }
 0x124   : > { %4840 = vmatpush1.bf16.msra.mxu0 %v6100_v15  ;;  %v6823_v4 = vpop.permute.xlu1 %5336  ;;  %2385 = vmatprep.mubr.f32.mxu0 %v6753_v61  ;;  %v2569_v62 = vsel %vm2552_vm9, %v5324_v33, %v5323_v7  ;;  %v2553_v60 = vsel %vm2552_vm9, %v5323_v7, %v5324_v33  ;;  %vm2807_vm7 = vmand %vm6874_vm4, %vm2044_vm15  ;;  %vm6927_vm15 = vcmp.eq.s32.totalorder %v2717_v6, 1  ;;  %v1033_v37 = vsel %vm6895_vm14, 1, %v5803_v0 }
 0x125   : > { %v5332_v20 = vpop.permute.xlu0 %5331  ;;  %4842 = vmatprep.subr.bf16.mxu0 %v6106_v16  ;;  %v5339_v52 = vunpack.i.h.bf16 %v6823_v4  ;;  %v4857_v44 = vpack.c.bf16 %v2570_v49, %v2569_v62  ;;  %vm4858_vm10 = vmpackc.low %vm6886_vm13, %vm6886_vm13  ;;  %v4860_v35 = vpack.c.bf16 %v2554_v11, %v2553_v60  ;;  %v2845_v38 = vsel %vm2807_vm7, 1, %v5803_v0 }
 0x126   : > { %5626 = vrot.lane.b32.xlu1 %v6731_v55, %s5828_s21  ;;  %v5338_v55 = vunpack.i.l.bf16 %v6823_v4  ;;  %v5334_v51 = vunpack.i.h.bf16 %v5332_v20  ;;  %v5333_v56 = vunpack.i.l.bf16 %v5332_v20  ;;  %v1041_v45 = vrot.slane %v1033_v37, %v6210_v31  ;;  %vm4870_vm8 = vmpackc.low %vm6927_vm15, %vm6927_vm15 }
 0x127   : > { %5621 = vrot.lane.b32.xlu0 %v6744_v58, %s5828_s21  ;;  %v4851_v58 = vpack.c.bf16 %v2432_v12, %v2431_v5  ;;  %v1037_v5 = vrot.slane %v1033_v37, %v6208_v30  ;;  %v2849_v47 = vrot.slane %v2845_v38, %v6208_v30  ;;  %vm6979_vm11 = vcmp.eq.s32.totalorder %v2713_v9, 1 }
 0x128   : > { %4844 = vmatpush1.bf16.msra.mxu0 %v6111_v17  ;;  %v6853_v57 = vpop.permute.xlu1 %5346  ;;  %v2572_v26 = vsel %vm2552_vm9, %v5339_v52, %v5338_v55  ;;  %v2571_v29 = vsel %vm2552_vm9, %v5334_v51, %v5333_v56  ;;  %v2556_v36 = vsel %vm2552_vm9, %v5338_v55, %v5339_v52  ;;  %v2555_v3 = vsel %vm2552_vm9, %v5333_v56, %v5334_v51  ;;  %vm4861_vm9 = vmpackc.low %vm6921_vm1, %vm6921_vm1  ;;  %v6962_v55 = vld [vmem:[%s7977_s0] ss:$2 sm:$0x3] }
 0x129   : > { %v5342_v63 = vpop.permute.xlu0 %5341  ;;  %4847 = vmatprep.subr.msk.bf16.mxu0 %vm4846_vm2, %v4845_v40  ;;  %v5349_v34 = vunpack.i.h.bf16 %v6853_v57  ;;  %v5348_v13 = vunpack.i.l.bf16 %v6853_v57  ;;  %v4863_v39 = vpack.c.bf16 %v2572_v26, %v2571_v29  ;;  %v4866_v42 = vpack.c.bf16 %v2556_v36, %v2555_v3  ;;  %vm4873_vm1 = vmpackc.low %vm6979_vm11, %vm6979_vm11 }
 0x12a   : > { %5636 = vrot.lane.b32.xlu1 %v6772_v23, %s5828_s21  ;;  %v5344_v27 = vunpack.i.h.bf16 %v5342_v63  ;;  %v5343_v24 = vunpack.i.l.bf16 %v5342_v63  ;;  %v6965_v51 = vadd.s32 1, %v6962_v55  ;;  %vm7001_vm4 = vcmp.eq.s32.totalorder %v1037_v5, 1 }
 0x12b   : > { %4563 = vmatmul.mubr.msk.f32.vlgmr.msra.gmra.mrb[4].mxu0 %vm489_vm0, %v2317_v54  ;;  %5631 = vrot.lane.b32.xlu0 %v6777_v18, %s5828_s21  ;;  %v2706_v46 = vsel %vm2688_vm6, %v5349_v34, %v5348_v13  ;;  %v2690_v48 = vsel %vm2688_vm6, %v5348_v13, %v5349_v34  ;;  %vm7009_vm13 = vcmp.eq.s32.totalorder %v2849_v47, 1  ;;  %v2593_v13 = vld [vmem:[#allocation6 + $0x18] sm:$0xf]  ;;  %vm8102_vm7 = vcmp.ge.s32.totalorder %v6213_v32, 0  ;;  %s8203_s21 = sld [smem:[#allocation11_spill]] }
 0x12c   : > { %4850 = vmatpush1.bf16.msk.msra.mxu0 %vm4849_vm5, %v4848_v50  ;;  %v5357_v18 = vpop.permute.xlu1 %5356  ;;  %2521 = vmatprep.mubr.f32.mxu0 %v6753_v61  ;;  %v2705_v33 = vsel %vm2688_vm6, %v5344_v27, %v5343_v24  ;;  %v2853_v50 = vrot.slane %v2845_v38, %v6210_v31  ;;  %v2689_v52 = vsel %vm2688_vm6, %v5343_v24, %v5344_v27  ;;  %vm8108_vm15 = vcmp.lt.s32.totalorder %v6965_v51, 16 }
 0x12d   : > { %v5352_v21 = vpop.permute.xlu0 %5351  ;;  %4853 = vmatprep.subr.msk.bf16.mxu0 %vm4846_vm2, %v4851_v58  ;;  %v5359_v43 = vunpack.i.h.bf16 %v5357_v18  ;;  %v5358_v40 = vunpack.i.l.bf16 %v5357_v18  ;;  %v4869_v56 = vpack.c.bf16 %v2706_v46, %v2705_v33  ;;  %vm1016_vm2 = vcmask 7168   ;;  %v4224_v46 = vld [vmem:[%s7984_s7 + $0x8] sm:$0xff] }
 0x12e   : > { %v5354_v7 = vunpack.i.h.bf16 %v5352_v21  ;;  %v5353_v20 = vunpack.i.l.bf16 %v5352_v21  ;;  %vm7005_vm14 = vcmp.eq.s32.totalorder %v2853_v50, 1  ;;  %v4872_v26 = vpack.c.bf16 %v2690_v48, %v2689_v52 }
 0x12f   : > { %v6968_v57 = vsel %vm2688_vm6, %v5358_v40, %v5359_v43  ;;  %v2708_v54 = vsel %vm2688_vm6, %v5359_v43, %v5358_v40  ;;  %vm8112_vm11 = vcmp.ge.s32.totalorder %v6196_v28, 0 }
 0x130   : > { %4856 = vmatpush1.bf16.msk.msra.mxu0 %vm4849_vm5, %v4854_v10  ;;  %v5367_v4 = vpop.permute.xlu1 %5366  ;;  %v6984_v49 = vsel %vm2688_vm6, %v5353_v20, %v5354_v7  ;;  %v2707_v62 = vsel %vm2688_vm6, %v5354_v7, %v5353_v20  ;;  %vm6997_vm5 = vcmp.eq.s32.totalorder %v1041_v45, 1 }
 0x131   : > { %v5362_v12 = vpop.permute.xlu0 %5361  ;;  %4859 = vmatprep.subr.msk.bf16.mxu0 %vm4858_vm10, %v4857_v44  ;;  %v5369_v63 = vunpack.i.h.bf16 %v5367_v4  ;;  %v5368_v1 = vunpack.i.l.bf16 %v5367_v4  ;;  %v4223_v44 = vld [vmem:[%s7984_s7] sm:$0xff]  ;;  %v4875_v29 = vpack.c.bf16 %v2708_v54, %v2707_v62  ;;  %v4878_v18 = vpack.c.bf16 %v6968_v57, %v6984_v49  ;;  %s7944_s27 = scalar_lea.vmem %s8203_s21, %s5053_s20 }
 0x132   : > { %v5364_v6 = vunpack.i.h.bf16 %v5362_v12  ;;  %v5363_v10 = vunpack.i.l.bf16 %v5362_v12  ;;  %4235 = vperm.xlu1 %5640, %v4223_v44  }
 0x133   : > { %4572 = vmatmul.mubr.msk.f32.vlgmr.msra.gmra.mrb[4].mxu0 %vm489_vm0, %v2453_v8  ;;  %v7034_v24 = vsel %vm2824_vm12, %v5368_v1, %v5369_v63  ;;  %v7037_v21 = vsel %vm2824_vm12, %v5369_v63, %v5368_v1  ;;  %v4226_v1 = vld [vmem:[%s7985_s8] sm:$0xff] }
 0x134   : > { %4862 = vmatpush1.bf16.msk.msra.mxu0 %vm4861_vm9, %v4860_v35  ;;  %v6976_v59 = vpop.permute.xlu1 %5376  ;;  %2661 = vmatprep.mubr.f32.mxu0 %v6753_v61  ;;  %v7048_v36 = vsel %vm2824_vm12, %v5363_v10, %v5364_v6  ;;  %v2841_v37 = vsel %vm2824_vm12, %v5364_v6, %v5363_v10 }
 0x135   : > { %v6987_v2 = vpop.permute.xlu0 %5371  ;;  %4865 = vmatprep.subr.msk.bf16.mxu0 %vm4858_vm10, %v4863_v39  ;;  %vm7028_vm10 = vmand %vm6533_vm3, %vm8102_vm7  ;;  %v5379_v39 = vunpack.i.h.bf16 %v6976_v59  ;;  %v5378_v43 = vunpack.i.l.bf16 %v6976_v59  ;;  %vm8105_vm7 = vcmp.lt.s32.totalorder %v6213_v32, 16  ;;  %v4881_v52 = vpack.c.bf16 %v7037_v21, %v2841_v37 }
 0x136   : > { %v5374_v40 = vunpack.i.h.bf16 %v6987_v2  ;;  %v5373_v4 = vunpack.i.l.bf16 %v6987_v2  ;;  %vm7060_vm6 = vmand %vm7028_vm10, %vm8105_vm7  ;;  %4240 = vperm.xlu1 %5640, %v4224_v46   ;;  %v4884_v54 = vpack.c.bf16 %v7034_v24, %v7048_v36  ;;  %v4475_v36 = vld [vmem:[%s7980_s3 + $0xc] sm:$0xf] }
 0x137   : > { %vm4722_vm10 = vmpackc.low %vm6997_vm5, %vm6997_vm5  ;;  %v1247_v22 = vsel %vm7060_vm6, 1, %v5803_v0  ;;  %v2828_v59 = vsel %vm2824_vm12, %v5378_v43, %v5379_v39  ;;  %v2844_v49 = vsel %vm2824_vm12, %v5379_v39, %v5378_v43 }
 0x138   : > { %4868 = vmatpush1.bf16.msk.msra.mxu0 %vm4861_vm9, %v4866_v42  ;;  %v5387_v34 = vpop.permute.xlu1 %5386  ;;  %vm4725_vm7 = vmpackc.low %vm7001_vm4, %vm7001_vm4  ;;  %v2843_v62 = vsel %vm2824_vm12, %v5374_v40, %v5373_v4  ;;  %v2827_v21 = vsel %vm2824_vm12, %v5373_v4, %v5374_v40  ;;  %vm8115_vm12 = vcmask 1039360   ;;  %vm8117_vm4 = vcmp.lt.s32.totalorder %v6196_v28, 16 }
 0x139   : > { %v5389_v41 = vunpack.i.h.bf16 %v5387_v34  ;;  %v5388_v9 = vunpack.i.l.bf16 %v5387_v34  ;;  %v5382_v35 = vpop.permute.xlu0 %5381  ;;  %4871 = vmatprep.subr.msk.bf16.mxu0 %vm4870_vm8, %v4869_v56  ;;  %vm4882_vm9 = vmpackc.low %vm7005_vm14, %vm7005_vm14  ;;  %v2729_v34 = vld [vmem:[#allocation6 + $0x1c] sm:$0xf]  ;;  %v4890_v11 = vpack.c.bf16 %v2828_v59, %v2827_v21 }
 0x13a   : > { %v5384_v38 = vunpack.i.h.bf16 %v5382_v35  ;;  %v5383_v3 = vunpack.i.l.bf16 %v5382_v35  ;;  %4249 = vperm.xlu1 %5640, %v4226_v1   ;;  %v1255_v35 = vrot.slane %v1247_v22, %v6210_v31  ;;  %vm8116_vm5 = vmmov %vm8115_vm12 }
 0x13b   : > { %4581 = vmatmul.mubr.msk.f32.vlgmr.msra.gmra.mrb[4].mxu0 %vm489_vm0, %v2593_v13 }
 0x13c   : > { %4874 = vmatpush1.bf16.msk.msra.mxu0 %vm4873_vm1, %v4872_v26  ;;  %v5397_v33 = vpop.permute.xlu1 %5396  ;;  %v1017_v7 = vsel %vm1016_vm2, %v5388_v9, %v5383_v3  ;;  %v1018_v20 = vsel %vm1016_vm2, %v5389_v41, %v5384_v38  ;;  %v1029_v12 = vsel %vm1016_vm2, %v5383_v3, %v5388_v9  ;;  %v1030_v45 = vsel %vm1016_vm2, %v5384_v38, %v5389_v41 }
 0x13d   : > { %v5399_v5 = vunpack.i.h.bf16 %v5397_v33  ;;  %v5398_v47 = vunpack.i.l.bf16 %v5397_v33  ;;  %v5392_v50 = vpop.permute.xlu0 %5391  ;;  %v4721_v42 = vpack.c.bf16 %v1018_v20, %v1017_v7  ;;  %4877 = vmatprep.subr.msk.bf16.mxu0 %vm4870_vm8, %v4875_v29  ;;  %v4724_v48 = vpack.c.bf16 %v1030_v45, %v1029_v12  ;;  %2797 = vmatprep.mubr.f32.mxu0 %v6753_v61  ;;  %v2865_v45 = vld [vmem:[#allocation6 + $0x20] sm:$0xf] }
 0x13e   : > { %v5394_v56 = vunpack.i.h.bf16 %v5392_v50  ;;  %v5393_v57 = vunpack.i.l.bf16 %v5392_v50  ;;  %vm8109_vm8 = vcmp.ge.s32.totalorder %v6965_v51, 0  ;;  %v4887_v41 = vpack.c.bf16 %v2844_v49, %v2843_v62  ;;  %v4485_v62 = vld [vmem:[%s7980_s3 + $0x10] sm:$0xf] }
 0x13f   : > { %4723 = vmatprep.subr.msk.bf16.mxu1 %vm4722_vm10, %v4721_v42  ;;  %vm7109_vm6 = vmand %vm8109_vm8, %vm8108_vm15  ;;  %v1251_v38 = vrot.slane %v1247_v22, %v6208_v30  ;;  %v487_v42 = vld [vmem:[#allocation2 + $0x8] sm:$0xf] }
 0x140   : > { %v1020_v2 = vsel %vm1016_vm2, %v5399_v5, %v5394_v56  ;;  %v1032_v6 = vsel %vm1016_vm2, %v5394_v56, %v5399_v5  ;;  %v1019_v10 = vsel %vm1016_vm2, %v5398_v47, %v5393_v57  ;;  %v1031_v44 = vsel %vm1016_vm2, %v5393_v57, %v5398_v47  ;;  %4726 = vmatpush1.bf16.msk.msra.mxu1 %vm4725_vm7, %v4724_v48  ;;  %v5407_v51 = vpop.permute.xlu1 %5406  ;;  %vm4885_vm2 = vmpackc.low %vm7009_vm13, %vm7009_vm13 }
 0x141   : > { %v4727_v26 = vpack.c.bf16 %v1020_v2, %v1019_v10  ;;  %v4730_v29 = vpack.c.bf16 %v1032_v6, %v1031_v44  ;;  %4880 = vmatpush1.bf16.msk.msra.mxu0 %vm4873_vm1, %v4878_v18  ;;  %v5409_v13 = vunpack.i.h.bf16 %v5407_v51  ;;  %v5408_v27 = vunpack.i.l.bf16 %v5407_v51  ;;  %v5402_v24 = vpop.permute.xlu0 %5401  ;;  %vm7143_vm1 = vmand %vm7109_vm6, %vm8112_vm11  ;;  %v4227_v2 = vld [vmem:[%s7985_s8 + $0x8] sm:$0xff] }
 0x142   : > { %4883 = vmatprep.subr.msk.bf16.mxu0 %vm4882_vm9, %v4881_v52  ;;  %v5404_v58 = vunpack.i.h.bf16 %v5402_v24  ;;  %v5403_v9 = vunpack.i.l.bf16 %v5402_v24  ;;  %vm8120_vm15 = vmmov %vm8116_vm5  ;;  %vm7189_vm14 = vcmp.eq.s32.totalorder %v1251_v38, 1  ;;  %vm8124_vm11 = vcmp.ge.s32.totalorder %v6185_v25, 0  ;;  %4254 = vperm.xlu1 %5640, %v4227_v2  }
 0x143   : > { %4729 = vmatprep.subr.msk.bf16.mxu1 %vm4722_vm10, %v4727_v26  ;;  %v1244_v60 = vsel %vm8115_vm12, %v5409_v13, %v5408_v27  ;;  %vm1349_vm10 = vmand %vm7143_vm1, %vm8117_vm4  ;;  %v1228_v28 = vsel %vm8120_vm15, %v5408_v27, %v5409_v13  ;;  %v2948_v6 = vadd.s32 4294967293, %v6962_v55 }
 0x144   : > { %4590 = vmatmul.mubr.msk.f32.vlgmr.msra.gmra.mrb[4].mxu0 %vm489_vm0, %v2729_v34  ;;  %4732 = vmatpush1.bf16.msk.msra.mxu1 %vm4725_vm7, %v4730_v29  ;;  %v5417_v37 = vpop.permute.xlu1 %5416  ;;  %v1243_v3 = vsel %vm8116_vm5, %v5404_v58, %v5403_v9  ;;  %vm7182_vm7 = vcmp.eq.s32.totalorder %v1255_v35, 1  ;;  %v1387_v7 = vsel %vm1349_vm10, 1, %v5803_v0  ;;  %vm8123_vm8 = vmmov %vm8116_vm5  ;;  %vm8131_vm10 = vcmp.lt.s32.totalorder %v6185_v25, 16 }
 0x145   : > { %4886 = vmatpush1.bf16.msk.msra.mxu0 %vm4885_vm2, %v4884_v54  ;;  %4734 = vmatprep.subr.bf16.mxu1 %v6097_v14  ;;  %v5412_v39 = vpop.permute.xlu0 %5411  ;;  %v5419_v43 = vunpack.i.h.bf16 %v5417_v37  ;;  %v5418_v40 = vunpack.i.l.bf16 %v5417_v37  ;;  %v1227_v20 = vsel %vm8123_vm8, %v5403_v9, %v5404_v58  ;;  %v4741_v12 = vpack.c.bf16 %v1244_v60, %v1243_v3  ;;  %vm7205_vm1 = vmand %vm7109_vm6, %vm8124_vm11  ;;  %v4135_v37 = vld [vmem:[%s7983_s6] sm:$0xf] }
 0x146   : > { %4889 = vmatprep.subr.msk.bf16.mxu0 %vm4882_vm9, %v4887_v41  ;;  %2933 = vmatprep.mubr.f32.mxu0 %v6753_v61  ;;  %v5414_v4 = vunpack.i.h.bf16 %v5412_v39  ;;  %v5413_v8 = vunpack.i.l.bf16 %v5412_v39  ;;  %vm1366_vm9 = vcmask 924672   ;;  %vm8127_vm13 = vmmov %vm8116_vm5  ;;  %v1391_v57 = vrot.slane %v1387_v7, %v6208_v30 }
 0x147   : > { %4484 = vmatmul.mubr.msk.f32.vlgmr.msra.gmra.mrb[0].mxu1 %vm489_vm0, %v4475_v36  ;;  %v1246_v19 = vsel %vm8127_vm13, %v5419_v43, %v5418_v40  ;;  %vm4742_vm12 = vmpackc.low %vm7182_vm7, %vm7182_vm7  ;;  %v1395_v22 = vrot.slane %v1387_v7, %v6210_v31  ;;  %v4744_v54 = vpack.c.bf16 %v1228_v28, %v1227_v20  ;;  %vm8134_vm11 = vcmp.ge.s32.totalorder %v6213_v32, 0 }
 0x148   : > { %4736 = vmatpush1.bf16.msra.mxu1 %v6100_v15  ;;  %1199 = vmatprep.mubr.f32.mxu1 %v6753_v61  ;;  %v5427_v33 = vpop.permute.xlu1 %5426  ;;  %vm7228_vm15 = vmand %vm7205_vm1, %vm8131_vm10  ;;  %vm8141_vm10 = vcmp.lt.s32.totalorder %v6213_v32, 16 }
 0x149   : > { %4892 = vmatpush1.bf16.msk.msra.mxu0 %vm4885_vm2, %v4890_v11  ;;  %4738 = vmatprep.subr.bf16.mxu1 %v6106_v16  ;;  %v5429_v5 = vunpack.i.h.bf16 %v5427_v33  ;;  %v5428_v47 = vunpack.i.l.bf16 %v5427_v33  ;;  %v5422_v50 = vpop.permute.xlu0 %5421  ;;  %vm8128_vm2 = vmmov %vm8116_vm5  ;;  %vm7255_vm13 = vcmp.eq.s32.totalorder %v1395_v22, 1  ;;  %v1523_v58 = vsel %vm7228_vm15, 1, %v5803_v0  ;;  %v4487_v33 = vld [vmem:[%s7980_s3 + $0x14] sm:$0xf] }
 0x14a   : > { %4998 = vmatprep.subr.bf16.mxu0 %v6097_v14  ;;  %v1245_v48 = vsel %vm8128_vm2, %v5414_v4, %v5413_v8  ;;  %v5424_v52 = vunpack.i.h.bf16 %v5422_v50  ;;  %v5423_v56 = vunpack.i.l.bf16 %v5422_v50  ;;  %vm8129_vm5 = vmmov %vm8128_vm2 }
 0x14b   : > { %v1230_v59 = vsel %vm8129_vm5, %v5418_v40, %v5419_v43  ;;  %vm8130_vm4 = vmmov %vm8128_vm2  ;;  %v4747_v10 = vpack.c.bf16 %v1246_v19, %v1245_v48  ;;  %v1384_v44 = vsel %vm1366_vm9, %v5429_v5, %v5428_v47  ;;  %vm7259_vm2 = vcmp.eq.s32.totalorder %v1391_v57, 1  ;;  %v559_v22 = vpop.f32.mrb[0].mxu0 }
 0x14c   : > { %4599 = vmatmul.mubr.msk.f32.vlgmr.msra.gmra.mrb[4].mxu0 %vm489_vm0, %v2865_v45  ;;  %4740 = vmatpush1.bf16.msra.mxu1 %v6111_v17  ;;  %v1229_v49 = vsel %vm8130_vm4, %v5413_v8, %v5414_v4  ;;  %v5437_v1 = vpop.permute.xlu1 %5436  ;;  %vm4745_vm8 = vmpackc.low %vm7189_vm14, %vm7189_vm14  ;;  %v1383_v51 = vsel %vm1366_vm9, %v5424_v52, %v5423_v56  ;;  %vm1502_vm5 = vcmask 916480   ;;  %v1368_v9 = vsel %vm1366_vm9, %v5428_v47, %v5429_v5 }
 0x14d   : > { %5000 = vmatpush1.bf16.msra.mxu0 %v6100_v15  ;;  %4743 = vmatprep.subr.msk.bf16.mxu1 %vm4742_vm12, %v4741_v12  ;;  %v5432_v26 = vpop.permute.xlu0 %5431  ;;  %v5439_v29 = vunpack.i.h.bf16 %v5437_v1  ;;  %v5438_v34 = vunpack.i.l.bf16 %v5437_v1  ;;  %vm7250_vm1 = vmand %vm7109_vm6, %vm8134_vm11  ;;  %v4750_v63 = vpack.c.bf16 %v1230_v59, %v1229_v49  ;;  %vm2949_vm6 = vcmp.ge.s32.totalorder %v2948_v6, 0  ;;  %v486_v12 = vld [vmem:[#allocation2] sm:$0xf]  ;;  %v561_v1 = vpop.f32.mrb[1].mxu0 }
 0x14e   : > { %5002 = vmatprep.subr.bf16.mxu0 %v6106_v16  ;;  %4203 = vmatprep.mubr.f32.mxu0 %v6753_v61  ;;  %v5434_v13 = vunpack.i.h.bf16 %v5432_v26  ;;  %v5433_v27 = vunpack.i.l.bf16 %v5432_v26  ;;  %vm2950_vm4 = vcmp.lt.s32.totalorder %v2948_v6, 16  ;;  %v1367_v35 = vsel %vm1366_vm9, %v5423_v56, %v5424_v52  ;;  %vm1621_vm15 = vmand %vm7250_vm1, %vm8141_vm10 }
 0x14f   : > { %4486 = vmatmul.mubr.msk.f32.vlgmr.msra.gmra.mrb[0].mxu1 %vm489_vm0, %v4485_v62  ;;  %v4753_v36 = vpack.c.bf16 %v1384_v44, %v1383_v51  ;;  %v1386_v3 = vsel %vm1366_vm9, %v5439_v29, %v5438_v34  ;;  %vm4754_vm7 = vmpackc.low %vm7255_vm13, %vm7255_vm13  ;;  %v1527_v4 = vrot.slane %v1523_v58, %v6208_v30  ;;  %v1531_v8 = vrot.slane %v1523_v58, %v6210_v31 }
 0x150   : > { %4746 = vmatpush1.bf16.msk.msra.mxu1 %vm4745_vm8, %v4744_v54  ;;  %1335 = vmatprep.mubr.f32.mxu1 %v6753_v61  ;;  %v5447_v18 = vpop.permute.xlu1 %5446  ;;  %v1385_v39 = vsel %vm1366_vm9, %v5434_v13, %v5433_v27  ;;  %v4756_v46 = vpack.c.bf16 %v1368_v9, %v1367_v35  ;;  %v1370_v28 = vsel %vm1366_vm9, %v5438_v34, %v5439_v29  ;;  %v7311_v20 = vsel %vm1621_vm15, 1, %v5803_v0  ;;  %vm4757_vm14 = vmpackc.low %vm7259_vm2, %vm7259_vm2  ;;  %v5652_v35 = vld [vmem:[%s7977_s0 + $0x1] ss:$2 sm:$0x3] }
 0x151   : > { %5004 = vmatpush1.bf16.msra.mxu0 %v6111_v17  ;;  %4749 = vmatprep.subr.msk.bf16.mxu1 %vm4742_vm12, %v4747_v10  ;;  %v5449_v38 = vunpack.i.h.bf16 %v5447_v18  ;;  %v5448_v11 = vunpack.i.l.bf16 %v5447_v18  ;;  %v5442_v60 = vpop.permute.xlu0 %5441  ;;  %vm7296_vm12 = vmand %vm2949_vm6, %vm2950_vm4  ;;  %v1369_v45 = vsel %vm1366_vm9, %v5433_v27, %v5434_v13  ;;  %v4759_v5 = vpack.c.bf16 %v1386_v3, %v1385_v39 }
 0x152   : > { %v5444_v43 = vunpack.i.h.bf16 %v5442_v60  ;;  %v5443_v40 = vunpack.i.l.bf16 %v5442_v60  ;;  %vm8144_vm9 = vcmp.ge.s32.totalorder %v6185_v25, 0  ;;  %vm7333_vm11 = vcmp.eq.s32.totalorder %v1531_v8, 1 }
 0x153   : > { %v1520_v23 = vsel %vm1502_vm5, %v5449_v38, %v5448_v11  ;;  %vm7337_vm1 = vcmp.eq.s32.totalorder %v1527_v4, 1  ;;  %v1667_v49 = vrot.slane %v7311_v20, %v6210_v31  ;;  %v564_v62 = vadd.f32 %v559_v22, %v486_v12  ;;  %vm4766_vm13 = vmpackc.low %vm7333_vm11, %vm7333_vm11 }
 0x154   : > { %4673 = vmatmul.mubr.msk.f32.vlgmr.msra.gmra.mrb[6].mxu0 %vm489_vm0, %v4135_v37  ;;  %4752 = vmatpush1.bf16.msk.msra.mxu1 %vm4745_vm8, %v4750_v63  ;;  %v5457_v7 = vpop.permute.xlu1 %5456  ;;  %v1519_v47 = vsel %vm1502_vm5, %v5444_v43, %v5443_v40  ;;  %vm7328_vm8 = vmand %vm7296_vm12, %vm8144_vm9  ;;  %v4762_v6 = vpack.c.bf16 %v1370_v28, %v1369_v45  ;;  %v1504_v10 = vsel %vm1502_vm5, %v5448_v11, %v5449_v38  ;;  %vm1638_vm6 = vcmask 908288   ;;  %v4497_v11 = vld [vmem:[%s7980_s3 + $0x18] sm:$0xf] }
 0x155   : > { %4755 = vmatprep.subr.msk.bf16.mxu1 %vm4754_vm7, %v4753_v36  ;;  %v5452_v50 = vpop.permute.xlu0 %5451  ;;  %v5459_v19 = vunpack.i.h.bf16 %v5457_v7  ;;  %v5458_v48 = vunpack.i.l.bf16 %v5457_v7  ;;  %v565_v51 = vadd.f32 %v561_v1, %v487_v42  ;;  %v1503_v26 = vsel %vm1502_vm5, %v5443_v40, %v5444_v43  ;;  %566 = vst [vmem:[#allocation2] sm:$0xf] %v564_v62  ;;  %vm4769_vm2 = vmpackc.low %vm7337_vm1, %vm7337_vm1 }
 0x156   : > { %v5454_v52 = vunpack.i.h.bf16 %v5452_v50  ;;  %v5453_v56 = vunpack.i.l.bf16 %v5452_v50  ;;  %v4765_v29 = vpack.c.bf16 %v1520_v23, %v1519_v47  ;;  %vm8151_vm4 = vcmp.lt.s32.totalorder %v6185_v25, 16 }
 0x157   : > { %4496 = vmatmul.mubr.msk.f32.vlgmr.msra.gmra.mrb[0].mxu1 %vm489_vm0, %v4487_v33  ;;  %vm7363_vm10 = vmand %vm7328_vm8, %vm8151_vm4  ;;  %v1522_v58 = vsel %vm1502_vm5, %v5459_v19, %v5458_v48  ;;  %567 = vst [vmem:[#allocation2 + $0x8] sm:$0xf] %v565_v51  ;;  %v1663_v18 = vrot.slane %v7311_v20, %v6208_v30  ;;  %v7377_v36 = vadd.s32 4294967293, %v5652_v35  ;;  %v4768_v37 = vpack.c.bf16 %v1504_v10, %v1503_v26 }
 0x158   : > { %4758 = vmatpush1.bf16.msk.msra.mxu1 %vm4757_vm14, %v4756_v46  ;;  %1475 = vmatprep.mubr.f32.mxu1 %v6753_v61  ;;  %v5467_v44 = vpop.permute.xlu1 %5466  ;;  %v1521_v63 = vsel %vm1502_vm5, %v5454_v52, %v5453_v56  ;;  %v1506_v38 = vsel %vm1502_vm5, %v5458_v48, %v5459_v19  ;;  %vm7388_vm15 = vcmp.eq.s32.totalorder %v1667_v49, 1  ;;  %v3053_v39 = vsel %vm7363_vm10, 1, %v5803_v0 }
 0x159   : > { %4761 = vmatprep.subr.msk.bf16.mxu1 %vm4754_vm7, %v4759_v5  ;;  %v5469_v34 = vunpack.i.h.bf16 %v5467_v44  ;;  %v5468_v13 = vunpack.i.l.bf16 %v5467_v44  ;;  %v5462_v27 = vpop.permute.xlu0 %5461  ;;  %v1505_v43 = vsel %vm1502_vm5, %v5453_v56, %v5454_v52  ;;  %v4771_v41 = vpack.c.bf16 %v1522_v58, %v1521_v63  ;;  %vm4778_vm8 = vmpackc.low %vm7388_vm15, %vm7388_vm15 }
 0x15a   : > { %v5464_v21 = vunpack.i.h.bf16 %v5462_v27  ;;  %v5463_v9 = vunpack.i.l.bf16 %v5462_v27  ;;  %vm7407_vm5 = vcmp.eq.s32.totalorder %v1663_v18, 1  ;;  %vm3036_vm7 = vcmask 392192  }
 0x15b   : > { %v1656_v40 = vsel %vm1638_vm6, %v5469_v34, %v5468_v13  ;;  %v4774_v12 = vpack.c.bf16 %v1506_v38, %v1505_v43  ;;  %v1640_v45 = vsel %vm1638_vm6, %v5468_v13, %v5469_v34  ;;  %v3061_v23 = vrot.slane %v3053_v39, %v6210_v31  ;;  %vm4781_vm11 = vmpackc.low %vm7407_vm5, %vm7407_vm5 }
 0x15c   : > { %4764 = vmatpush1.bf16.msk.msra.mxu1 %vm4757_vm14, %v4762_v6  ;;  %v5477_v60 = vpop.permute.xlu1 %5476  ;;  %v1655_v4 = vsel %vm1638_vm6, %v5464_v21, %v5463_v9  ;;  %vm7998_vm14 = vcmp.ge.s32.totalorder %v7377_v36, 0  ;;  %vm7997_vm9 = vcmp.lt.s32.totalorder %v7377_v36, 16  ;;  %v1639_v47 = vsel %vm1638_vm6, %v5463_v9, %v5464_v21  ;;  %v4507_v6 = vld [vmem:[%s7980_s3 + $0x1c] sm:$0xf] }
 0x15d   : > { %4767 = vmatprep.subr.msk.bf16.mxu1 %vm4766_vm13, %v4765_v29  ;;  %v5472_v8 = vpop.permute.xlu0 %5471  ;;  %v5479_v46 = vunpack.i.h.bf16 %v5477_v60  ;;  %v5478_v28 = vunpack.i.l.bf16 %v5477_v60  ;;  %v4777_v50 = vpack.c.bf16 %v1656_v40, %v1655_v4  ;;  %vm7436_vm4 = vmand %vm7296_vm12, %vm7998_vm14  ;;  %v3057_v49 = vrot.slane %v3053_v39, %v6208_v30 }
 0x15e   : > { %v5474_v33 = vunpack.i.h.bf16 %v5472_v8  ;;  %v5473_v7 = vunpack.i.l.bf16 %v5472_v8  ;;  %v7441_v62 = vadd.s32 3, %v5652_v35  ;;  %v4780_v1 = vpack.c.bf16 %v1640_v45, %v1639_v47  ;;  %vm2956_vm1 = vmand %vm7436_vm4, %vm7997_vm9 }
 0x15f   : > { %4506 = vmatmul.mubr.msk.f32.vlgmr.msra.gmra.mrb[0].mxu1 %vm489_vm0, %v4497_v11  ;;  %v1658_v52 = vsel %vm1638_vm6, %v5479_v46, %v5478_v28  ;;  %v1642_v2 = vsel %vm1638_vm6, %v5478_v28, %v5479_v46  ;;  %vm7455_vm10 = vcmp.eq.s32.totalorder %v3061_v23, 1  ;;  %v2994_v35 = vsel %vm2956_vm1, 1, %v5803_v0 }
 0x160   : > { %4770 = vmatpush1.bf16.msk.msra.mxu1 %vm4769_vm2, %v4768_v37  ;;  %1611 = vmatprep.mubr.f32.mxu1 %v6753_v61  ;;  %v5487_v5 = vpop.permute.xlu1 %5486  ;;  %v1657_v56 = vsel %vm1638_vm6, %v5474_v33, %v5473_v7  ;;  %v1641_v51 = vsel %vm1638_vm6, %v5473_v7, %v5474_v33  ;;  %vm7472_vm6 = vcmp.eq.s32.totalorder %v3057_v49, 1  ;;  %vm3225_vm4 = vcmp.lt.s32.totalorder %v7441_v62, 16  ;;  %vm4894_vm9 = vmpackc.low %vm7455_vm10, %vm7455_vm10  ;;  %v4517_v33 = vld [vmem:[%s7980_s3 + $0x20] sm:$0xf] }
 0x161   : > { %4773 = vmatprep.subr.msk.bf16.mxu1 %vm4766_vm13, %v4771_v41  ;;  %v5489_v42 = vunpack.i.h.bf16 %v5487_v5  ;;  %v5488_v19 = vunpack.i.l.bf16 %v5487_v5  ;;  %v5482_v48 = vpop.permute.xlu0 %5481  ;;  %v4783_v59 = vpack.c.bf16 %v1658_v52, %v1657_v56  ;;  %vm2977_vm13 = vcmask 416768  }
 0x162   : > { %v5484_v57 = vunpack.i.h.bf16 %v5482_v48  ;;  %v5483_v22 = vunpack.i.l.bf16 %v5482_v48  ;;  %v4786_v21 = vpack.c.bf16 %v1642_v2, %v1641_v51  ;;  %v3002_v8 = vrot.slane %v2994_v35, %v6210_v31 }
 0x163   : > { %v2998_v7 = vrot.slane %v2994_v35, %v6208_v30  ;;  %vm3383_vm10 = vcmask 23552  }
 0x164   : > { %4776 = vmatpush1.bf16.msk.msra.mxu1 %vm4769_vm2, %v4774_v12  ;;  %v5497_v10 = vpop.permute.xlu1 %5496  ;;  %v3038_v26 = vsel %vm3036_vm7, %v5489_v42, %v5484_v57  ;;  %v3037_v29 = vsel %vm3036_vm7, %v5488_v19, %v5483_v22  ;;  %vm3223_vm2 = vcmp.ge.s32.totalorder %v7441_v62, 0  ;;  %v3050_v9 = vsel %vm3036_vm7, %v5484_v57, %v5489_v42 }
 0x165   : > { %4779 = vmatprep.subr.msk.bf16.mxu1 %vm4778_vm8, %v4777_v50  ;;  %v5492_v34 = vpop.permute.xlu0 %5491  ;;  %v5499_v13 = vunpack.i.h.bf16 %v5497_v10  ;;  %v5498_v27 = vunpack.i.l.bf16 %v5497_v10  ;;  %v3049_v37 = vsel %vm3036_vm7, %v5483_v22, %v5488_v19  ;;  %v4893_v38 = vpack.c.bf16 %v3038_v26, %v3037_v29  ;;  %vm7501_vm15 = vmand %vm7296_vm12, %vm3223_vm2 }
 0x166   : > { %v5494_v24 = vunpack.i.h.bf16 %v5492_v34  ;;  %v5493_v58 = vunpack.i.l.bf16 %v5492_v34  ;;  %v4896_v46 = vpack.c.bf16 %v3050_v9, %v3049_v37  ;;  %vm4897_vm12 = vmpackc.low %vm7472_vm6, %vm7472_vm6  ;;  %vm7550_vm1 = vcmp.eq.s32.totalorder %v2998_v7, 1 }
 0x167   : > { %4516 = vmatmul.mubr.msk.f32.vlgmr.msra.gmra.mrb[0].mxu1 %vm489_vm0, %v4507_v6  ;;  %vm3226_vm5 = vmand %vm7501_vm15, %vm3225_vm4  ;;  %vm8172_vm15 = vcmp.lt.s32.totalorder %v7377_v36, 16 }
 0x168   : > { %4782 = vmatpush1.bf16.msk.msra.mxu1 %vm4781_vm11, %v4780_v1  ;;  %v5507_v18 = vpop.permute.xlu1 %5506  ;;  %1747 = vmatprep.mubr.f32.mxu1 %v6753_v61  ;;  %v3040_v43 = vsel %vm3036_vm7, %v5499_v13, %v5494_v24  ;;  %v3039_v41 = vsel %vm3036_vm7, %v5498_v27, %v5493_v58  ;;  %v3052_v28 = vsel %vm3036_vm7, %v5494_v24, %v5499_v13  ;;  %v3264_v49 = vsel %vm3226_vm5, 1, %v5803_v0 }
 0x169   : > { %4785 = vmatprep.subr.msk.bf16.mxu1 %vm4778_vm8, %v4783_v59  ;;  %v5509_v11 = vunpack.i.h.bf16 %v5507_v18  ;;  %v5508_v60 = vunpack.i.l.bf16 %v5507_v18  ;;  %v5502_v39 = vpop.permute.xlu0 %5501  ;;  %v3051_v12 = vsel %vm3036_vm7, %v5493_v58, %v5498_v27  ;;  %v4899_v45 = vpack.c.bf16 %v3040_v43, %v3039_v41  ;;  %vm7535_vm7 = vmand %vm6533_vm3, %vm7998_vm14  ;;  %v3073_v27 = vld [vmem:[#allocation8 + $0x4] sm:$0xf] }
 0x16a   : > { %v5504_v40 = vunpack.i.h.bf16 %v5502_v39  ;;  %v5503_v4 = vunpack.i.l.bf16 %v5502_v39  ;;  %vm7540_vm8 = vcmp.eq.s32.totalorder %v3002_v8, 1  ;;  %v4902_v56 = vpack.c.bf16 %v3052_v28, %v3051_v12  ;;  %vm3362_vm14 = vmand %vm7535_vm7, %vm8172_vm15 }
 0x16b   : > { %vm4906_vm5 = vmpackc.low %vm7540_vm8, %vm7540_vm8  ;;  %v3268_v58 = vrot.slane %v3264_v49, %v6208_v30 }
 0x16c   : > { %4788 = vmatpush1.bf16.msk.msra.mxu1 %vm4781_vm11, %v4786_v21  ;;  %v5517_v32 = vpop.permute.xlu1 %5516  ;;  %v2979_v20 = vsel %vm2977_vm13, %v5509_v11, %v5504_v40  ;;  %v2978_v5 = vsel %vm2977_vm13, %v5508_v60, %v5503_v4  ;;  %vm3247_vm11 = vcmask 367616   ;;  %v2991_v57 = vsel %vm2977_vm13, %v5504_v40, %v5509_v11 }
 0x16d   : > { %4895 = vmatprep.subr.msk.bf16.mxu1 %vm4894_vm9, %v4893_v38  ;;  %v5512_v23 = vpop.permute.xlu0 %5511  ;;  %v5519_v47 = vunpack.i.h.bf16 %v5517_v32  ;;  %v5518_v50 = vunpack.i.l.bf16 %v5517_v32  ;;  %v2990_v1 = vsel %vm2977_vm13, %v5503_v4, %v5508_v60  ;;  %v4905_v2 = vpack.c.bf16 %v2979_v20, %v2978_v5 }
 0x16e   : > { %v5514_v42 = vunpack.i.h.bf16 %v5512_v23  ;;  %v5513_v19 = vunpack.i.l.bf16 %v5512_v23  ;;  %v4908_v34 = vpack.c.bf16 %v2991_v57, %v2990_v1  ;;  %v7580_v21 = vsel %vm3362_vm14, 1, %v5803_v0 }
 0x16f   : > { %4526 = vmatmul.mubr.msk.f32.vlgmr.msra.gmra.mrb[0].mxu1 %vm489_vm0, %v4517_v33  ;;  %vm7604_vm6 = vcmp.eq.s32.totalorder %v3268_v58, 1  ;;  %v3408_v8 = vrot.slane %v7580_v21, %v6210_v31  ;;  %v7616_v33 = vld [vmem:[#allocation2 + $0x10] sm:$0xff] }
 0x170   : > { %4898 = vmatpush1.bf16.msk.msra.mxu1 %vm4897_vm12, %v4896_v46  ;;  %v5527_v54 = vpop.permute.xlu1 %5526  ;;  %3141 = vmatprep.mubr.f32.mxu1 %v6753_v61  ;;  %v2981_v59 = vsel %vm2977_vm13, %v5519_v47, %v5514_v42  ;;  %v2980_v26 = vsel %vm2977_vm13, %v5518_v50, %v5513_v19  ;;  %v3272_v61 = vrot.slane %v3264_v49, %v6210_v31  ;;  %vm4921_vm7 = vmpackc.low %vm7604_vm6, %vm7604_vm6  ;;  %vm8183_vm6 = vcmp.ge.s32.totalorder %v7377_v36, 0 }
 0x171   : > { %4901 = vmatprep.subr.msk.bf16.mxu1 %vm4894_vm9, %v4899_v45  ;;  %v5529_v6 = vunpack.i.h.bf16 %v5527_v54  ;;  %v5528_v10 = vunpack.i.l.bf16 %v5527_v54  ;;  %v5522_v51 = vpop.permute.xlu0 %5521  ;;  %v2993_v13 = vsel %vm2977_vm13, %v5514_v42, %v5519_v47  ;;  %v2992_v9 = vsel %vm2977_vm13, %v5513_v19, %v5518_v50  ;;  %vm4909_vm9 = vmpackc.low %vm7550_vm1, %vm7550_vm1  ;;  %v3013_v19 = vld [vmem:[#allocation8] sm:$0xf] }
 0x172   : > { %v5524_v44 = vunpack.i.h.bf16 %v5522_v51  ;;  %v5523_v29 = vunpack.i.l.bf16 %v5522_v51  ;;  %v4911_v18 = vpack.c.bf16 %v2981_v59, %v2980_v26  ;;  %vm7594_vm14 = vcmp.eq.s32.totalorder %v3272_v61, 1 }
 0x173   : > { %v4914_v41 = vpack.c.bf16 %v2993_v13, %v2992_v9  ;;  %vm4918_vm13 = vmpackc.low %vm7594_vm14, %vm7594_vm14  ;;  %v3404_v47 = vrot.slane %v7580_v21, %v6208_v30  ;;  %v3284_v21 = vld [vmem:[#allocation8 + $0x8] sm:$0xf] }
 0x174   : > { %4904 = vmatpush1.bf16.msk.msra.mxu1 %vm4897_vm12, %v4902_v56  ;;  %v5537_v24 = vpop.permute.xlu1 %5536  ;;  %v3249_v63 = vsel %vm3247_vm11, %v5529_v6, %v5524_v44  ;;  %v3248_v35 = vsel %vm3247_vm11, %v5528_v10, %v5523_v29  ;;  %v3261_v40 = vsel %vm3247_vm11, %v5524_v44, %v5529_v6  ;;  %v3260_v46 = vsel %vm3247_vm11, %v5523_v29, %v5528_v10 }
 0x175   : > { %4907 = vmatprep.subr.msk.bf16.mxu1 %vm4906_vm5, %v4905_v2  ;;  %v5532_v37 = vpop.permute.xlu0 %5531  ;;  %v5539_v38 = vunpack.i.h.bf16 %v5537_v24  ;;  %v5538_v11 = vunpack.i.l.bf16 %v5537_v24  ;;  %v4917_v28 = vpack.c.bf16 %v3249_v63, %v3248_v35  ;;  %v4920_v50 = vpack.c.bf16 %v3261_v40, %v3260_v46 }
 0x176   : > { %v5534_v60 = vunpack.i.h.bf16 %v5532_v37  ;;  %v5533_v39 = vunpack.i.l.bf16 %v5532_v37  ;;  %vm7632_vm12 = vcmp.eq.s32.totalorder %v3408_v8, 1  ;;  %v3711_v56 = vadd.s32 3, %v6962_v55 }
 0x177   : > { %4608 = vmatmul.mubr.msk.f32.vlgmr.msra.gmra.mrb[2].mxu1 %vm489_vm0, %v3073_v27  ;;  %vm4930_vm1 = vmpackc.low %vm7632_vm12, %vm7632_vm12  ;;  %vm7665_vm15 = vcmp.eq.s32.totalorder %v3404_v47, 1 }
 0x178   : > { %4910 = vmatpush1.bf16.msk.msra.mxu1 %vm4909_vm9, %v4908_v34  ;;  %v5547_v3 = vpop.permute.xlu1 %5546  ;;  %3215 = vmatprep.mubr.f32.mxu1 %v7616_v33  ;;  %v3251_v45 = vsel %vm3247_vm11, %v5539_v38, %v5534_v60  ;;  %v3250_v20 = vsel %vm3247_vm11, %v5538_v11, %v5533_v39  ;;  %v3263_v42 = vsel %vm3247_vm11, %v5534_v60, %v5539_v38  ;;  %vm3712_vm8 = vcmp.ge.s32.totalorder %v3711_v56, 0  ;;  %vm4933_vm14 = vmpackc.low %vm7665_vm15, %vm7665_vm15 }
 0x179   : > { %4913 = vmatprep.subr.msk.bf16.mxu1 %vm4906_vm5, %v4911_v18  ;;  %v5549_v32 = vunpack.i.h.bf16 %v5547_v3  ;;  %v5548_v7 = vunpack.i.l.bf16 %v5547_v3  ;;  %v5542_v12 = vpop.permute.xlu0 %5541  ;;  %v3262_v57 = vsel %vm3247_vm11, %v5533_v39, %v5538_v11  ;;  %v4923_v54 = vpack.c.bf16 %v3251_v45, %v3250_v20  ;;  %vm3575_vm5 = vmand %vm6533_vm3, %vm3223_vm2  ;;  %v3420_v3 = vld [vmem:[#allocation8 + $0xc] sm:$0xf] }
 0x17a   : > { %v5544_v5 = vunpack.i.h.bf16 %v5542_v12  ;;  %v5543_v23 = vunpack.i.l.bf16 %v5542_v12  ;;  %v4926_v51 = vpack.c.bf16 %v3263_v42, %v3262_v57  ;;  %vm3713_vm11 = vcmp.lt.s32.totalorder %v3711_v56, 16  ;;  %vm3576_vm3 = vmand %vm3575_vm5, %vm3225_vm4 }
 0x17b   : > { %v3614_v38 = vsel %vm3576_vm3, 1, %v5803_v0  ;;  %vm8190_vm3 = vcmp.lt.s32.totalorder %v6185_v25, 16 }
 0x17c   : > { %4916 = vmatpush1.bf16.msk.msra.mxu1 %vm4909_vm9, %v4914_v41  ;;  %v5557_v48 = vpop.permute.xlu1 %5556  ;;  %v3385_v22 = vsel %vm3383_vm10, %v5549_v32, %v5544_v5  ;;  %v3384_v49 = vsel %vm3383_vm10, %v5548_v7, %v5543_v23  ;;  %v3397_v26 = vsel %vm3383_vm10, %v5544_v5, %v5549_v32  ;;  %v3396_v44 = vsel %vm3383_vm10, %v5543_v23, %v5548_v7  ;;  %vm7675_vm9 = vmand %vm3712_vm8, %vm3713_vm11 }
 0x17d   : > { %4919 = vmatprep.subr.msk.bf16.mxu1 %vm4918_vm13, %v4917_v28  ;;  %v5552_v1 = vpop.permute.xlu0 %5551  ;;  %v5559_v2 = vunpack.i.h.bf16 %v5557_v48  ;;  %v5558_v55 = vunpack.i.l.bf16 %v5557_v48  ;;  %v4929_v29 = vpack.c.bf16 %v3385_v22, %v3384_v49  ;;  %v4932_v58 = vpack.c.bf16 %v3397_v26, %v3396_v44 }
 0x17e   : > { %v5554_v6 = vunpack.i.h.bf16 %v5552_v1  ;;  %v5553_v10 = vunpack.i.l.bf16 %v5552_v1  ;;  %vm3593_vm8 = vcmask 1022976   ;;  %v3622_v4 = vrot.slane %v3614_v38, %v6210_v31 }
 0x17f   : > { %4617 = vmatmul.mubr.msk.f32.vlgmr.msra.gmra.mrb[2].mxu1 %vm489_vm0, %v3013_v19  ;;  %v3618_v32 = vrot.slane %v3614_v38, %v6208_v30  ;;  %vm8187_vm11 = vcmp.ge.s32.totalorder %v6185_v25, 0 }
 0x180   : > { %4922 = vmatpush1.bf16.msk.msra.mxu1 %vm4921_vm7, %v4920_v50  ;;  %v5567_v59 = vpop.permute.xlu1 %5566  ;;  %3352 = vmatprep.mubr.f32.mxu1 %v7616_v33  ;;  %v3387_v13 = vsel %vm3383_vm10, %v5559_v2, %v5554_v6  ;;  %v3386_v27 = vsel %vm3383_vm10, %v5558_v55, %v5553_v10  ;;  %v3399_v53 = vsel %vm3383_vm10, %v5554_v6, %v5559_v2  ;;  %vm7735_vm12 = vcmp.eq.s32.totalorder %v3622_v4, 1  ;;  %v3634_v4 = vld [vmem:[#allocation8 + $0x14] sm:$0xf] }
 0x181   : > { %4925 = vmatprep.subr.msk.bf16.mxu1 %vm4918_vm13, %v4923_v54  ;;  %v5562_v34 = vpop.permute.xlu0 %5561  ;;  %v3398_v18 = vsel %vm3383_vm10, %v5553_v10, %v5558_v55  ;;  %v4935_v63 = vpack.c.bf16 %v3387_v13, %v3386_v27  ;;  %vm3715_vm13 = vmand %vm7675_vm9, %vm8183_vm6  ;;  %v5569_v60 = vunpack.i.h.bf16 %v5567_v59  ;;  %v5568_v39 = vunpack.i.l.bf16 %v5567_v59  ;;  %v3498_v55 = vld [vmem:[#allocation8 + $0x10] sm:$0xf] }
 0x182   : > { %v4938_v37 = vpack.c.bf16 %v3399_v53, %v3398_v18  ;;  %v5564_v43 = vunpack.i.h.bf16 %v5562_v34  ;;  %v5563_v41 = vunpack.i.l.bf16 %v5562_v34  ;;  %vm8184_vm10 = vcmp.lt.s32.totalorder %v7377_v36, 16  ;;  %vm4950_vm15 = vmpackc.low %vm7735_vm12, %vm7735_vm12 }
 0x183   : > { %v3611_v28 = vsel %vm3593_vm8, %v5569_v60, %v5568_v39  ;;  %v3595_v47 = vsel %vm3593_vm8, %v5568_v39, %v5569_v60  ;;  %vm7762_vm5 = vcmp.eq.s32.totalorder %v3618_v32, 1  ;;  %vm7826_vm12 = vmand %vm7675_vm9, %vm3223_vm2 }
 0x184   : > { %4928 = vmatpush1.bf16.msk.msra.mxu1 %vm4921_vm7, %v4926_v51  ;;  %v5577_v9 = vpop.permute.xlu1 %5576  ;;  %vm3716_vm7 = vmand %vm3715_vm13, %vm8184_vm10  ;;  %v3610_v36 = vsel %vm3593_vm8, %v5564_v43, %v5563_v41  ;;  %v3594_v50 = vsel %vm3593_vm8, %v5563_v41, %v5564_v43 }
 0x185   : > { %4931 = vmatprep.subr.msk.bf16.mxu1 %vm4930_vm1, %v4929_v29  ;;  %v5572_v35 = vpop.permute.xlu0 %5571  ;;  %v3754_v46 = vsel %vm3716_vm7, 1, %v5803_v0  ;;  %v5579_v12 = vunpack.i.h.bf16 %v5577_v9  ;;  %v5578_v45 = vunpack.i.l.bf16 %v5577_v9  ;;  %v4949_v42 = vpack.c.bf16 %v3611_v28, %v3610_v36  ;;  %vm4953_vm13 = vmpackc.low %vm7762_vm5, %vm7762_vm5 }
 0x186   : > { %v5574_v20 = vunpack.i.h.bf16 %v5572_v35  ;;  %v5573_v5 = vunpack.i.l.bf16 %v5572_v35  ;;  %v4952_v49 = vpack.c.bf16 %v3595_v47, %v3594_v50  ;;  %v3758_v6 = vrot.slane %v3754_v46, %v6208_v30 }
 0x187   : > { %4626 = vmatmul.mubr.msk.f32.vlgmr.msra.gmra.mrb[2].mxu1 %vm489_vm0, %v3284_v21  ;;  %v3613_v54 = vsel %vm3593_vm8, %v5579_v12, %v5578_v45  ;;  %v3597_v1 = vsel %vm3593_vm8, %v5578_v45, %v5579_v12  ;;  %vm4005_vm5 = vcmask 629760  }
 0x188   : > { %4934 = vmatpush1.bf16.msk.msra.mxu1 %vm4933_vm14, %v4932_v58  ;;  %3488 = vmatprep.mubr.f32.mxu1 %v7616_v33  ;;  %v7708_v11 = vpop.permute.xlu1 %5586  ;;  %v3596_v2 = vsel %vm3593_vm8, %v5573_v5, %v5574_v20  ;;  %vm7804_vm7 = vcmp.eq.s32.totalorder %v3758_v6, 1 }
 0x189   : > { %4937 = vmatprep.subr.msk.bf16.mxu1 %vm4930_vm1, %v4935_v63  ;;  %v7715_v40 = vpop.permute.xlu0 %5581  ;;  %v5589_v19 = vunpack.i.h.bf16 %v7708_v11  ;;  %v5588_v48 = vunpack.i.l.bf16 %v7708_v11  ;;  %vm3851_vm1 = vmand %vm7675_vm9, %vm8187_vm11  ;;  %v4958_v61 = vpack.c.bf16 %v3597_v1, %v3596_v2  ;;  %vm3869_vm11 = vcmask 654336  }
 0x18a   : > { %v5584_v52 = vunpack.i.h.bf16 %v7715_v40  ;;  %v5583_v56 = vunpack.i.l.bf16 %v7715_v40  ;;  %vm3852_vm6 = vmand %vm3851_vm1, %vm8190_vm3 }
 0x18b   : > { %v3890_v27 = vsel %vm3852_vm6, 1, %v5803_v0  ;;  %vm4965_vm2 = vmpackc.low %vm7804_vm7, %vm7804_vm7  ;;  %vm473_vm7 = vcmask 3072  }
 0x18c   : > { %4940 = vmatpush1.bf16.msk.msra.mxu1 %vm4933_vm14, %v4938_v37  ;;  %v7725_v8 = vpop.permute.xlu1 %5596  ;;  %vm3733_vm14 = vcmask 678912   ;;  %v3898_v39 = vrot.slane %v3890_v27, %v6210_v31  ;;  %vm3988_vm9 = vmand %vm7826_vm12, %vm3225_vm4  ;;  %474 = vst.msk [vmem:[#allocation3] sm:$0xf] %vm473_vm7, %v7616_v33 }
 0x18d   : > { %4942 = vmatprep.subr.bf16.mxu1 %v6097_v14  ;;  %v7732_v7 = vpop.permute.xlu0 %5591  ;;  %v3762_v14 = vrot.slane %v3754_v46, %v6210_v31  ;;  %v3750_v51 = vsel %vm3733_vm14, %v5584_v52, %v5583_v56  ;;  %v5599_v25 = vunpack.i.h.bf16 %v7725_v8  ;;  %v5598_v26 = vunpack.i.l.bf16 %v7725_v8 }
 0x18e   : > { %v5594_v44 = vunpack.i.h.bf16 %v7732_v7  ;;  %v5593_v29 = vunpack.i.l.bf16 %v7732_v7  ;;  %v3735_v58 = vsel %vm3733_vm14, %v5588_v48, %v5589_v19  ;;  %v3734_v21 = vsel %vm3733_vm14, %v5583_v56, %v5584_v52 }
 0x18f   : > { %4635 = vmatmul.mubr.msk.f32.vlgmr.msra.gmra.mrb[2].mxu1 %vm489_vm0, %v3420_v3  ;;  %vm7782_vm10 = vcmp.eq.s32.totalorder %v3762_v14, 1  ;;  %v3753_v38 = vsel %vm3733_vm14, %v5599_v25, %v5598_v26  ;;  %v4964_v43 = vpack.c.bf16 %v3735_v58, %v3734_v21  ;;  %v3737_v41 = vsel %vm3733_vm14, %v5598_v26, %v5599_v25 }
 0x190   : > { %4944 = vmatpush1.bf16.msra.mxu1 %v6100_v15  ;;  %3566 = vmatprep.mubr.f32.mxu1 %v7616_v33  ;;  %v7749_v57 = vpop.permute.xlu1 %5606  ;;  %v3752_v11 = vsel %vm3733_vm14, %v5594_v44, %v5593_v29  ;;  %v3736_v40 = vsel %vm3733_vm14, %v5593_v29, %v5594_v44  ;;  %v3894_v46 = vrot.slane %v3890_v27, %v6208_v30  ;;  %vm7858_vm1 = vcmp.eq.s32.totalorder %v3898_v39, 1  ;;  %v3910_v27 = vld [vmem:[#allocation8 + $0x1c] sm:$0xf] }
 0x191   : > { %4946 = vmatprep.subr.bf16.mxu1 %v6106_v16  ;;  %v7751_v15 = vpop.permute.xlu0 %5601  ;;  %v3612_v16 = vsel %vm3593_vm8, %v5574_v20, %v5573_v5  ;;  %vm4962_vm8 = vmpackc.low %vm7782_vm10, %vm7782_vm10  ;;  %v5609_v18 = vunpack.i.h.bf16 %v7749_v57  ;;  %v5608_v63 = vunpack.i.l.bf16 %v7749_v57  ;;  %v4967_v24 = vpack.c.bf16 %v3753_v38, %v3752_v11  ;;  %v2943_v38 = vld [vmem:[#allocation2 + $0x18] sm:$0xf] }
 0x192   : > { %v4955_v10 = vpack.c.bf16 %v3613_v54, %v3612_v16  ;;  %v5604_v35 = vunpack.i.h.bf16 %v7751_v15  ;;  %v5603_v37 = vunpack.i.l.bf16 %v7751_v15  ;;  %v4970_v20 = vpack.c.bf16 %v3737_v41, %v3736_v40  ;;  %vm4974_vm4 = vmpackc.low %vm7858_vm1, %vm7858_vm1 }
 0x193   : > { %v3887_v3 = vsel %vm3869_vm11, %v5609_v18, %v5608_v63  ;;  %v3871_v62 = vsel %vm3869_vm11, %v5608_v63, %v5609_v18  ;;  %v4026_v47 = vsel %vm3988_vm9, 1, %v5803_v0  ;;  %v4046_v18 = vld [vmem:[#allocation8 + $0x20] sm:$0xf] }
 0x194   : > { %4948 = vmatpush1.bf16.msra.mxu1 %v6111_v17  ;;  %v3751_v17 = vsel %vm3733_vm14, %v5589_v19, %v5588_v48  ;;  %v7791_v34 = vpop.permute.xlu1 %5616  ;;  %v3886_v8 = vsel %vm3869_vm11, %v5604_v35, %v5603_v37  ;;  %v3870_v23 = vsel %vm3869_vm11, %v5603_v37, %v5604_v35  ;;  %v4034_v54 = vrot.slane %v4026_v47, %v6210_v31  ;;  %v2942_v37 = vld [vmem:[#allocation2 + $0x10] sm:$0xf] }
 0x195   : > { %4951 = vmatprep.subr.msk.bf16.mxu1 %vm4950_vm15, %v4949_v42  ;;  %v7793_v13 = vpop.permute.xlu0 %5611  ;;  %v4961_v9 = vpack.c.bf16 %v3751_v17, %v3750_v51  ;;  %v5619_v32 = vunpack.i.h.bf16 %v7791_v34  ;;  %v5618_v7 = vunpack.i.l.bf16 %v7791_v34  ;;  %v4973_v14 = vpack.c.bf16 %v3887_v3, %v3886_v8 }
 0x196   : > { %v5614_v12 = vunpack.i.h.bf16 %v7793_v13  ;;  %v5613_v45 = vunpack.i.l.bf16 %v7793_v13  ;;  %v4976_v16 = vpack.c.bf16 %v3871_v62, %v3870_v23  ;;  %v4030_v1 = vrot.slane %v4026_v47, %v6208_v30 }
 0x197   : > { %4636 = vmatmul.mubr.msk.f32.vlgmr.msra.gmra.mrb[2].mxu1 %vm489_vm0, %v3498_v55  ;;  %v3889_v52 = vsel %vm3869_vm11, %v5619_v32, %v5618_v7  ;;  %v3873_v22 = vsel %vm3869_vm11, %v5618_v7, %v5619_v32  ;;  %vm7905_vm3 = vcmp.eq.s32.totalorder %v4034_v54, 1 }
 0x198   : > { %4954 = vmatpush1.bf16.msk.msra.mxu1 %vm4953_vm13, %v4952_v49  ;;  %3702 = vmatprep.mubr.f32.mxu1 %v7616_v33  ;;  %v5627_v28 = vpop.permute.xlu1 %5626  ;;  %v3888_v56 = vsel %vm3869_vm11, %v5614_v12, %v5613_v45  ;;  %v3774_v49 = vld [vmem:[#allocation8 + $0x18] sm:$0xf]  ;;  %v3872_v2 = vsel %vm3869_vm11, %v5613_v45, %v5614_v12  ;;  %vm4986_vm6 = vmpackc.low %vm7905_vm3, %vm7905_vm3  ;;  %v1757_v12 = vld [vmem:[#allocation2 + $0x8] sm:$0xf0] }
 0x199   : > { %4957 = vmatprep.subr.msk.bf16.mxu1 %vm4950_vm15, %v4955_v10  ;;  %v5622_v36 = vpop.permute.xlu0 %5621  ;;  %v5629_v50 = vunpack.i.h.bf16 %v5627_v28  ;;  %v5628_v42 = vunpack.i.l.bf16 %v5627_v28  ;;  %vm7881_vm15 = vcmp.eq.s32.totalorder %v3894_v46, 1  ;;  %v4979_v55 = vpack.c.bf16 %v3889_v52, %v3888_v56 }
 0x19a   : > { %v5624_v19 = vunpack.i.h.bf16 %v5622_v36  ;;  %v5623_v48 = vunpack.i.l.bf16 %v5622_v36  ;;  %vm4977_vm14 = vmpackc.low %vm7881_vm15, %vm7881_vm15  ;;  %v4982_v25 = vpack.c.bf16 %v3873_v22, %v3872_v2  ;;  %v1756_v36 = vld [vmem:[#allocation2] sm:$0xf0] }
 0x19b   : > { %v4023_v31 = vsel %vm4005_vm5, %v5629_v50, %v5628_v42  ;;  %v4007_v26 = vsel %vm4005_vm5, %v5628_v42, %v5629_v50 }
 0x19c   : > { %4960 = vmatpush1.bf16.msk.msra.mxu1 %vm4953_vm13, %v4958_v61  ;;  %v5637_v57 = vpop.permute.xlu1 %5636  ;;  %v4022_v6 = vsel %vm4005_vm5, %v5624_v19, %v5623_v48  ;;  %v4006_v44 = vsel %vm4005_vm5, %v5623_v48, %v5624_v19  ;;  %vm4035_vm13 = vcmp.eq.s32.totalorder %v4030_v1, 1 }
 0x19d   : > { %4963 = vmatprep.subr.msk.bf16.mxu1 %vm4962_vm8, %v4961_v9  ;;  %v5632_v15 = vpop.permute.xlu0 %5631  ;;  %v5639_v10 = vunpack.i.h.bf16 %v5637_v57  ;;  %v5638_v17 = vunpack.i.l.bf16 %v5637_v57  ;;  %v4985_v29 = vpack.c.bf16 %v4023_v31, %v4022_v6  ;;  %v4988_v13 = vpack.c.bf16 %v4007_v26, %v4006_v44  ;;  %vm4989_vm10 = vmpackc.low %vm4035_vm13, %vm4035_vm13  ;;  %v4123_v57 = vld [vmem:[#allocation2 + $0x10] sm:$0xf0] }
 0x19e   : > { %v5634_v30 = vunpack.i.h.bf16 %v5632_v15  ;;  %v5633_v51 = vunpack.i.l.bf16 %v5632_v15 }
 0x19f   : > { %4645 = vmatmul.mubr.msk.f32.vlgmr.msra.gmra.mrb[2].mxu1 %vm489_vm0, %v3634_v4  ;;  %v4025_v61 = vsel %vm4005_vm5, %v5639_v10, %v5638_v17  ;;  %v4009_v58 = vsel %vm4005_vm5, %v5638_v17, %v5639_v10 }
 0x1a0   : > { %4966 = vmatpush1.bf16.msk.msra.mxu1 %vm4965_vm2, %v4964_v43  ;;  %3842 = vmatprep.mubr.f32.mxu1 %v7616_v33  ;;  %v4024_v34 = vsel %vm4005_vm5, %v5634_v30, %v5633_v51  ;;  %v4008_v21 = vsel %vm4005_vm5, %v5633_v51, %v5634_v30 }
 0x1a1   : > { %4969 = vmatprep.subr.msk.bf16.mxu1 %vm4962_vm8, %v4967_v24  ;;  %v4991_v9 = vpack.c.bf16 %v4025_v61, %v4024_v34  ;;  %v4994_v53 = vpack.c.bf16 %v4009_v58, %v4008_v21  ;;  %vm4211_vm8 = vcmask 1043456  }
 0x1a4   : > { %4972 = vmatpush1.bf16.msk.msra.mxu1 %vm4965_vm2, %v4970_v20 }
 0x1a5   : > { %4975 = vmatprep.subr.msk.bf16.mxu1 %vm4974_vm4, %v4973_v14 }
 0x1a7   : > { %4654 = vmatmul.mubr.msk.f32.vlgmr.msra.gmra.mrb[2].mxu1 %vm489_vm0, %v3774_v49 }
 0x1a8   : > { %4978 = vmatpush1.bf16.msk.msra.mxu1 %vm4977_vm14, %v4976_v16  ;;  %3978 = vmatprep.mubr.f32.mxu1 %v7616_v33  ;;  %v4124_v16 = vld [vmem:[#allocation2 + $0x18] sm:$0xf0] }
 0x1a9   : > { %4981 = vmatprep.subr.msk.bf16.mxu1 %vm4974_vm4, %v4979_v55 }
 0x1ac   : > { %4984 = vmatpush1.bf16.msk.msra.mxu1 %vm4977_vm14, %v4982_v25  ;;  %v4210_v25 = vld [vmem:[#allocation3] sm:$0xf] }
 0x1ad   : > { %4987 = vmatprep.subr.msk.bf16.mxu1 %vm4986_vm6, %v4985_v29  ;;  %v4225_v29 = vld [vmem:[%s7984_s7 + $0x10] sm:$0xf] }
 0x1af   : > { %4663 = vmatmul.mubr.msk.f32.vlgmr.msra.gmra.mrb[2].mxu1 %vm489_vm0, %v3910_v27 }
 0x1b0   : > { %4990 = vmatpush1.bf16.msk.msra.mxu1 %vm4989_vm10, %v4988_v13  ;;  %4114 = vmatprep.mubr.f32.mxu1 %v7616_v33  ;;  %v4228_v13 = vld [vmem:[%s7985_s8 + $0x10] sm:$0xf] }
 0x1b1   : > { %4993 = vmatprep.subr.msk.bf16.mxu1 %vm4986_vm6, %v4991_v9  ;;  %v4236_v33 = vpop.permute.xlu1 %4235 }
 0x1b4   : > { %4996 = vmatpush1.bf16.msk.msra.mxu1 %vm4989_vm10, %v4994_v53 }
 0x1b5   : > { %v4241_v62 = vpop.permute.xlu1 %4240 }
 0x1b7   : > { %4672 = vmatmul.mubr.msk.f32.vlgmr.msra.gmra.mrb[2].mxu1 %vm489_vm0, %v4046_v18 }
 0x1b9   : > { %v4250_v14 = vpop.permute.xlu1 %4249 }
 0x1c1   : > { %v4255_v2 = vpop.permute.xlu1 %4254 }
 0x1d6   : > { %v984_v63 = vpop.f32.mrb[2].mxu0 }
 0x1d7   : > { %v986_v35 = vpop.f32.mrb[3].mxu0 }
 0x21f   : > { %v2935_v11 = vpop.f32.mrb[4].mxu0 }
 0x220   : > { %v2944_v60 = vadd.f32 %v2942_v37, %v2935_v11  ;;  %v2937_v39 = vpop.f32.mrb[5].mxu0 }
 0x221   : > { %v2945_v43 = vadd.f32 %v2943_v38, %v2937_v39 }
 0x222   : > { %2946 = vst [vmem:[#allocation2 + $0x10] sm:$0xf] %v2944_v60 }
 0x223   : > { %2947 = vst [vmem:[#allocation2 + $0x18] sm:$0xf] %v2945_v43 }
 0x227   : > { %v4205_v41 = vpop.f32.mrb[6].mxu0 }
 0x228   : > { %v4212_v40 = vsel %vm4211_vm8, %v4205_v41, 0.0  ;;  %v4207_v4 = vpop.f32.mrb[7].mxu0 }
 0x229   : > { %v4213_v24 = vsel %vm4211_vm8, %v4207_v4, 0.0 }
 0x22a   : > { %v4214_v3 = vadd.f32 %v4213_v24, %v4212_v40 }
 0x22c   : > { %4215 = vadd.xlane.f32.xlu0 %v4214_v3 }
 0x242   : > { %v1749_v8 = vpop.f32.mrb[0].mxu1 }
 0x243   : > { %v5005_v46 = vadd.f32 %v1749_v8, %v984_v63  ;;  %v1751_v28 = vpop.f32.mrb[1].mxu1 }
 0x244   : > { %v5006_v32 = vadd.f32 %v1751_v28, %v986_v35 }
 0x245   : > { %v1760_v7 = vrot.slane %v5005_v46, 4 }
 0x246   : > { %v1761_v45 = vrot.slane %v5006_v32, 4 }
 0x247   : > { %v1764_v20 = vadd.f32 %v1760_v7, %v1756_v36 }
 0x248   : > { %v1765_v5 = vadd.f32 %v1761_v45, %v1757_v12 }
 0x249   : > { %1766 = vst [vmem:[#allocation2] sm:$0xf0] %v1764_v20 }
 0x24a   : > { %1767 = vst [vmem:[#allocation2 + $0x8] sm:$0xf0] %v1765_v5 }
 0x250   : > { %v4229_v23 = vld [vmem:[#allocation2] sm:$0xff] }
 0x251   : > { %v4230_v47 = vld [vmem:[#allocation2 + $0x8] sm:$0xff]  ;;  %v4243_v50 = vmul.f32 %v4236_v33, %v4229_v23 }
 0x252   : > { %v4244_v42 = vmul.f32 %v4236_v33, %v4230_v47 }
 0x253   : > { %v4257_v19 = vadd.f32 %v4250_v14, %v4243_v50 }
 0x254   : > { %v4258_v48 = vadd.f32 %v4250_v14, %v4244_v42 }
 0x255   : > { %v4261_v52 = vmax.f32 %v4257_v19, 0.0 }
 0x256   : > { %v4262_v56 = vmax.f32 %v4258_v48, 0.0 }
 0x257   : > { %4265 = vst [vmem:[%s7944_s27] sm:$0xff] %v4261_v52 }
 0x258   : > { %4266 = vst [vmem:[%s7944_s27 + $0x8] sm:$0xff] %v4262_v56 }
 0x28a   : > { %v4116_v0 = vpop.f32.mrb[2].mxu1 }
 0x28b   : > { %v4127_v15 = vrot.slane %v4116_v0, 4  ;;  %v4118_v54 = vpop.f32.mrb[3].mxu1 }
 0x28c   : > { %v4128_v22 = vrot.slane %v4118_v54, 4 }
 0x28d   : > { %v4131_v49 = vadd.f32 %v4127_v15, %v4123_v57 }
 0x28e   : > { %v4132_v1 = vadd.f32 %v4128_v22, %v4124_v16 }
 0x28f   : > { %4133 = vst [vmem:[#allocation2 + $0x10] sm:$0xf0] %v4131_v49 }
 0x290   : > { %4134 = vst [vmem:[#allocation2 + $0x18] sm:$0xf0] %v4132_v1 }
 0x296   : > { %v4231_v55 = vld [vmem:[#allocation2 + $0x10] sm:$0xff] }
 0x297   : > { %v4232_v31 = vld [vmem:[#allocation2 + $0x18] sm:$0xff]  ;;  %v4245_v6 = vmul.f32 %v4241_v62, %v4231_v55 }
 0x298   : > { %v4246_v10 = vmul.f32 %v4241_v62, %v4232_v31 }
 0x299   : > { %v4259_v17 = vadd.f32 %v4255_v2, %v4245_v6 }
 0x29a   : > { %v4260_v30 = vadd.f32 %v4255_v2, %v4246_v10 }
 0x29b   : > { %v4263_v51 = vmax.f32 %v4259_v17, 0.0 }
 0x29c   : > { %v4264_v59 = vmax.f32 %v4260_v30, 0.0 }
 0x29d   : > { %4267 = vst [vmem:[%s7944_s27 + $0x10] sm:$0xff] %v4263_v51 }
 0x29e   : > { %4268 = vst [vmem:[%s7944_s27 + $0x18] sm:$0xff] %v4264_v59 }
 0x2b9   : > { %v4216_v26 = vpop.xlane.xlu0 %4215 }
 0x2ba   : > { %v4217_v44 = vadd.f32 %v4216_v26, %v4210_v25 }
 0x2bc   : > { %4219 = vst.msk [vmem:[#allocation3] sm:$0xf] %vm473_vm7, %v4217_v44 }
 0x2c3   : > { %v4269_v61 = vld [vmem:[#allocation3] sm:$0xf] }
 0x2c4   : > { %v4270_v34 = vmul.f32 0.00390625, %v4269_v61 }
 0x2c6   : > { %v4271_v27 = vmul.f32 %v4270_v34, %v4225_v29 }
 0x2c8   : > { %v4272_v58 = vadd.f32 %v4271_v27, %v4228_v13 }
 0x2ca   : > { %v4273_v21 = vmax.f32 %v4272_v58, 0.0 }
 0x2cc   : > { %4276 = vperm.xlu1 %5640, %v4273_v21  }
 0x34b   : > { %v4277_v9 = vpop.permute.xlu1 %4276 }
 0x34c   : > { %4279 = vst [vmem:[%s7944_s27 + $0x20] sm:$0xf] %v4277_v9  ;;  %4280 = vst [vmem:[%s7944_s27 + $0x28] sm:$0xf] %v4277_v9 }
 0x34d PF: > { %s23_s14 = sadd.s32 1, %s5794_s14   ;;  %s8204_s15 = smov %s5995_s30 }
 0x34e   : > { %p20_p9 = scmp.ge.s32.totalorder %s23_s14, 4   ;;  %s8205_s30 = smov %s5778_s10 }
 0x34f   : > { %s8206_s10 = smov %s5782_s11  ;;  %s8207_s11 = smov %s8204_s15 }
 0x350   : > { %s8208_s12 = smov %s5790_s13  ;;  %s8209_s13 = smov %s8211_s25 }
 0x351   :  { %22 = sbr.rel (!%p20_p9) target bundleno = 7 (0x7), region = 148 }
 0x358   :  { %4302 = vsyncpa [#allocation5], 1 }
 0x359   :  { %4304 = vsyncpa [#allocation5 + $0x1], 1 }
 0x35a   :  { %4305 = vsyncpa [#allocation7], 1 }

</bundles_post_ra>
